<compile_context>
chip_gen: v5e
topology: v5e:2x2
jax: 0.10.0
libtpu: 0.0.40
codegen_flags: <defaults>
</compile_context>

<pallas_src>
import functools
import math

import jax
import jax.numpy as jnp
from jax import lax
from jax.experimental import pallas as pl
from jax.experimental.pallas import tpu as pltpu  # noqa: F401  (TPU backend)

# ---- model config (small, synthetic) ----------------------------------------
N_LAYER = 6
N_HEADS = 4
D_MODEL = 32
D_FF = 64
SEQ = 8
BATCH = 2
LN_EPS = 1e-5
NEG_INF = -1e9


def _layer_norm(v, g, b):
    # v: (BS, D) f32;  g, b: (1, D) f32 (sublane-broadcast at use; no (BS,D) hoists)
    mu = jnp.mean(v, axis=-1, keepdims=True)
    d = v - mu
    var = jnp.mean(d * d, axis=-1, keepdims=True)
    return d * lax.rsqrt(var + LN_EPS) * g + b


def encoder_kernel(xm_ref, p_ref, out_ref, *, n_layer, n_heads, batch, seq, d_ff):
    BS, D = out_ref.shape                     # (16, 32)
    dh = D // n_heads                         # 8
    M = n_heads * batch * seq                 # 64: flattened (head, batch, key) lane axis
    sh_s = int(math.log2(seq))                # 3
    sh_b = int(math.log2(batch))              # 1
    sh_d = int(math.log2(dh))                 # 3
    sh_h = sh_s + sh_b                        # 4
    f32, bf16 = jnp.float32, jnp.bfloat16

    x = xm_ref[0:BS, :]                       # (16, 32) f32 residual stream
    mask_row = xm_ref[BS:BS + 1, 0:BS]        # (1, 16) key mask, lane = b*seq + k
    p = p_ref[...]                            # (112, 128) bf16 packed parameters

    # ---- hoisted parameter views (bf16 stays bf16 for the MXU; f32 for VPU math) ----
    wqkvo = p[0:D, :]                         # (32, 128)  [Wq*scale | Wk | Wv | Wo]
    wo = p[0:D, 3 * D:4 * D]                  # (32, 32)
    w1 = p[D:2 * D, 0:d_ff]                   # (32, 64)
    w2 = p[D:D + d_ff, 2 * D:3 * D]           # (64, 32)
    r0 = D + d_ff                             # 96: bias / LN rows
    vec = p[r0:r0 + 8, :].astype(f32)         # (8, 128) = one vreg of scalars
    b_qkv = vec[0:1, :]                       # (1, 128) fused projection bias (Wq-scaled)
    bo = vec[1:2, 0:D]
    b2 = vec[1:2, D:2 * D]
    b1 = vec[1:2, 2 * D:2 * D + d_ff]
    g1, be1 = vec[2:3, 0:D], vec[2:3, D:2 * D]
    g2, be2 = vec[2:3, 2 * D:3 * D], vec[2:3, 3 * D:4 * D]
    gf, bef = vec[3:4, 0:D], vec[3:4, D:2 * D]

    # ---- hoisted head/batch-batched attention constants (iota-built, VPU only) ----
    def iota(shape, dim):
        return lax.broadcasted_iota(jnp.int32, shape, dim)

    # m = h*(batch*seq) + b*seq + k ;  feature c belongs to head c >> sh_d
    blk_k = ((iota((D, M), 0) >> sh_d) == (iota((D, M), 1) >> sh_h)).astype(f32)  # (32,64)
    blk_v = ((iota((M, D), 0) >> sh_h) == (iota((M, D), 1) >> sh_d)).astype(f32)  # (64,32)

    # additive score mask: -1e9 for cross-batch columns and for masked key positions
    mask_m = jnp.concatenate([mask_row] * n_heads, axis=1)            # (1, 64)
    same_b = ((iota((BS, M), 0) >> sh_s) ==
              ((iota((BS, M), 1) >> sh_s) & (batch - 1)))             # row batch == col batch
    keep = jnp.logical_and(same_b, jnp.broadcast_to(mask_m, (BS, M)) > 0.0)
    neg_mask = jnp.where(keep, 0.0, NEG_INF).astype(f32)              # (16, 64)

    # ---- n_layer identical (weight-shared) pre-LN encoder layers (unrolled) ----
    for _ in range(n_layer):
        # --- self-attention sublayer ---
        xn = _layer_norm(x, g1, be1)
        proj = jnp.dot(xn.astype(bf16), wqkvo,
                       preferred_element_type=f32) + b_qkv            # (16, 128)
        qb = proj[:, 0:D]                                             # already 1/sqrt(dh)-scaled
        kb = proj[:, D:2 * D]
        vb = proj[:, 2 * D:3 * D]

        # block-diagonal K slab: lane-tile K^T across heads, mask per head (VPU/XLU only)
        k_bd = (jnp.concatenate([kb.T] * n_heads, axis=1) * blk_k).astype(bf16)   # (32,64)

        s = jnp.dot(qb.astype(bf16), k_bd, preferred_element_type=f32) + neg_mask  # (16,64)
        e = jnp.exp(s - jnp.max(s, axis=-1, keepdims=True))           # f32 softmax numerators

        # augmented V slab: cols 0:D masked values, cols D:2D per-head indicators, so one
        # MXU pass produces both the unnormalized context and the per-feature denominators.
        v_rep = jnp.concatenate([vb] * n_heads, axis=0)               # (64, 32) sublane tile
        v_aug = jnp.concatenate([v_rep * blk_v, blk_v], axis=1).astype(bf16)       # (64,64)
        cd = jnp.dot(e.astype(bf16), v_aug, preferred_element_type=f32)            # (16,64)
        ctx = cd[:, 0:D] / cd[:, D:2 * D]                             # exact normalization

        x = x + jnp.dot(ctx.astype(bf16), wo, preferred_element_type=f32) + bo

        # --- feed-forward sublayer ---
        xn2 = _layer_norm(x, g2, be2)
        h1 = jnp.maximum(
            jnp.dot(xn2.astype(bf16), w1, preferred_element_type=f32) + b1, 0.0)
        x = x + jnp.dot(h1.astype(bf16), w2, preferred_element_type=f32) + b2

    # final LayerNorm of the Encoder
    out_ref[...] = _layer_norm(x, gf, bef)


def pack_params(p):
    """Pack all 18 parameters into ONE lane-dense (112, 128) bf16 slab (host side).

    rows  0:32            : [Wq/sqrt(dh) | Wk | Wv | Wo]                 (lanes 0:128)
    rows 32:64 lanes 0:64 : W1
    rows 32:96 lanes 64:96: W2
    row  96               : fused qkv bias [bq/sqrt(dh) | bk | bv | (bo)]
    row  97               : [bo | b2 | b1]
    row  98               : [ln1_g | ln1_b | ln2_g | ln2_b]
    row  99               : [lnf_g | lnf_b | 0]
    """
    d, dff, dh = D_MODEL, D_FF, D_MODEL // N_HEADS
    scale = 1.0 / math.sqrt(dh)
    slab = jnp.zeros((112, 4 * d), jnp.float32)
    wqkvo = jnp.concatenate([p["wq"] * scale, p["wk"], p["wv"], p["wo"]], axis=1)
    slab = slab.at[0:d, :].set(wqkvo)
    slab = slab.at[d:2 * d, 0:dff].set(p["w1"])
    slab = slab.at[d:d + dff, 2 * d:3 * d].set(p["w2"])
    r0 = d + dff
    qkv_bias = jnp.concatenate([p["bq"] * scale, p["bk"], p["bv"], p["bo"]], axis=1)[0]
    slab = slab.at[r0, :].set(qkv_bias)
    slab = slab.at[r0 + 1, 0:d].set(p["bo"][0])
    slab = slab.at[r0 + 1, d:2 * d].set(p["b2"][0])
    slab = slab.at[r0 + 1, 2 * d:2 * d + dff].set(p["b1"][0])
    slab = slab.at[r0 + 2, 0:d].set(p["ln1_g"][0])
    slab = slab.at[r0 + 2, d:2 * d].set(p["ln1_b"][0])
    slab = slab.at[r0 + 2, 2 * d:3 * d].set(p["ln2_g"][0])
    slab = slab.at[r0 + 2, 3 * d:4 * d].set(p["ln2_b"][0])
    slab = slab.at[r0 + 3, 0:d].set(p["lnf_g"][0])
    slab = slab.at[r0 + 3, d:2 * d].set(p["lnf_b"][0])
    return slab.astype(jnp.bfloat16)


def encoder_forward(x, mask, param_slab):
    B, S, D = x.shape
    BS = B * S
    # Fold the key mask into the activation DMA: rows 0:BS = tokens, row BS = flat mask.
    x2 = x.reshape(BS, D).astype(jnp.float32)
    mrow = mask.astype(jnp.float32).reshape(1, BS)
    mrow = jnp.pad(mrow, ((0, 0), (0, D - BS)))
    pad_rows = (-(BS + 1)) % 8
    xm = jnp.concatenate([x2, mrow, jnp.zeros((pad_rows, D), jnp.float32)], axis=0)

    kernel = functools.partial(encoder_kernel, n_layer=N_LAYER, n_heads=N_HEADS,
                               batch=B, seq=S, d_ff=D_FF)
    # No grid: the whole working set (one bf16 param slab + activations, ~40 KiB) fits in
    # VMEM; a single invocation with 2 input DMAs avoids all per-grid-step overhead.
    # (On v7x, batching many independent sequences and exposing a PARALLEL leading grid
    #  axis would engage the second TensorCore; on v6e, stacking sequences up to ~256
    #  sublane rows before the projections would amortize the weight pushes.)
    out2 = pl.pallas_call(
        kernel,
        out_shape=jax.ShapeDtypeStruct((BS, D), jnp.float32),
    )(xm, param_slab)
    return out2.reshape(B, S, D)


# ---- pure-JAX f32 reference for verification ---------------------------------
def encoder_ref(x, mask, p):
    def ln(v, g, b):
        mu = jnp.mean(v, axis=-1, keepdims=True)
        var = jnp.mean((v - mu) ** 2, axis=-1, keepdims=True)
        return (v - mu) / jnp.sqrt(var + LN_EPS) * g + b

    B, S, D = x.shape
    dh = D // N_HEADS
    for _ in range(N_LAYER):
        xn = ln(x, p["ln1_g"], p["ln1_b"])
        q = xn @ p["wq"] + p["bq"]
        k = xn @ p["wk"] + p["bk"]
        v = xn @ p["wv"] + p["bv"]
        q = q.reshape(B, S, N_HEADS, dh).transpose(0, 2, 1, 3)
        k = k.reshape(B, S, N_HEADS, dh).transpose(0, 2, 1, 3)
        v = v.reshape(B, S, N_HEADS, dh).transpose(0, 2, 1, 3)
        s = jnp.einsum("bhqd,bhkd->bhqk", q, k) / math.sqrt(dh)
        s = jnp.where(mask[:, None, :, :] > 0, s, -1e9)
        pr = jax.nn.softmax(s, axis=-1)
        ctx = jnp.einsum("bhqk,bhkd->bhqd", pr, v).transpose(0, 2, 1, 3).reshape(B, S, D)
        x = x + (ctx @ p["wo"] + p["bo"])
        xn2 = ln(x, p["ln2_g"], p["ln2_b"])
        x = x + (jnp.maximum(xn2 @ p["w1"] + p["b1"], 0.0) @ p["w2"] + p["b2"])
    return ln(x, p["lnf_g"], p["lnf_b"])


if __name__ == "__main__":
    key = jax.random.PRNGKey(0)
    ks = jax.random.split(key, 8)

    def w(k, shape, fan_in):
        v = jax.random.normal(k, shape, jnp.float32) / math.sqrt(fan_in)
        # Snap the random weights to bf16-representable values so the f32 reference and
        # the bf16-packed kernel weights are identical; the remaining kernel/reference
        # difference is then only the in-kernel bf16 rounding of MXU activation operands.
        return v.astype(jnp.bfloat16).astype(jnp.float32)

    params = {
        "wq": w(ks[0], (D_MODEL, D_MODEL), D_MODEL), "bq": jnp.zeros((1, D_MODEL), jnp.float32),
        "wk": w(ks[1], (D_MODEL, D_MODEL), D_MODEL), "bk": jnp.zeros((1, D_MODEL), jnp.float32),
        "wv": w(ks[2], (D_MODEL, D_MODEL), D_MODEL), "bv": jnp.zeros((1, D_MODEL), jnp.float32),
        "wo": w(ks[3], (D_MODEL, D_MODEL), D_MODEL), "bo": jnp.zeros((1, D_MODEL), jnp.float32),
        "w1": w(ks[4], (D_MODEL, D_FF), D_MODEL), "b1": jnp.zeros((1, D_FF), jnp.float32),
        "w2": w(ks[5], (D_FF, D_MODEL), D_FF), "b2": jnp.zeros((1, D_MODEL), jnp.float32),
        "ln1_g": jnp.ones((1, D_MODEL), jnp.float32), "ln1_b": jnp.zeros((1, D_MODEL), jnp.float32),
        "ln2_g": jnp.ones((1, D_MODEL), jnp.float32), "ln2_b": jnp.zeros((1, D_MODEL), jnp.float32),
        "lnf_g": jnp.ones((1, D_MODEL), jnp.float32), "lnf_b": jnp.zeros((1, D_MODEL), jnp.float32),
    }

    x = jax.random.normal(ks[6], (BATCH, SEQ, D_MODEL), jnp.float32)
    # key-position mask: mask out the last two positions of batch element 1
    mask = jnp.ones((BATCH, 1, SEQ), jnp.float32)
    mask = mask.at[1, 0, -2:].set(0.0)

    slab = pack_params(params)
    out = jax.block_until_ready(encoder_forward(x, mask, slab))

    ref = encoder_ref(x, mask, params)
    assert out.shape == (BATCH, SEQ, D_MODEL)
    # Exact reciprocal restored (no approx EUP recip). The tolerance now only covers
    # bf16 rounding of MXU activation operands accumulated over 6 weight-shared layers.
    assert jnp.allclose(out, ref, rtol=3e-2, atol=3e-2), "mismatch vs JAX reference"

    print("KERNEL_OK")
</pallas_src>

<mosaic_0001>
module attributes {stable_mosaic.version = 11 : i64} {
  func.func @encoder_kernel(%arg0: memref<24x32xf32, #tpu.memory_space<vmem>>, %arg1: memref<112x128xbf16, #tpu.memory_space<vmem>>, %arg2: memref<16x32xf32, #tpu.memory_space<vmem>>) attributes {dimension_semantics = [], scalar_prefetch = 0 : i64, scratch_operands = 0 : i64, tpu.core_type = #tpu.core_type<tc>} {
    %c0 = arith.constant 0 : index
    %c0_0 = arith.constant 0 : index
    %0 = vector.load %arg0[%c0, %c0_0] : memref<24x32xf32, #tpu.memory_space<vmem>>, vector<16x32xf32>
    %c16 = arith.constant 16 : index
    %c0_1 = arith.constant 0 : index
    %1 = vector.load %arg0[%c16, %c0_1] : memref<24x32xf32, #tpu.memory_space<vmem>>, vector<1x16xf32>
    %c0_2 = arith.constant 0 : index
    %c0_3 = arith.constant 0 : index
    %2 = vector.load %arg1[%c0_2, %c0_3] : memref<112x128xbf16, #tpu.memory_space<vmem>>, vector<112x128xbf16>
    %3 = vector.extract_strided_slice %2 {offsets = [0, 0], sizes = [32, 128], strides = [1, 1]} : vector<112x128xbf16> to vector<32x128xbf16>
    %4 = vector.extract_strided_slice %2 {offsets = [0, 96], sizes = [32, 32], strides = [1, 1]} : vector<112x128xbf16> to vector<32x32xbf16>
    %5 = vector.extract_strided_slice %2 {offsets = [32, 0], sizes = [32, 64], strides = [1, 1]} : vector<112x128xbf16> to vector<32x64xbf16>
    %6 = vector.extract_strided_slice %2 {offsets = [32, 64], sizes = [64, 32], strides = [1, 1]} : vector<112x128xbf16> to vector<64x32xbf16>
    %7 = vector.extract_strided_slice %2 {offsets = [96, 0], sizes = [8, 128], strides = [1, 1]} : vector<112x128xbf16> to vector<8x128xbf16>
    %8 = arith.extf %7 : vector<8x128xbf16> to vector<8x128xf32>
    %9 = vector.extract_strided_slice %8 {offsets = [0, 0], sizes = [1, 128], strides = [1, 1]} : vector<8x128xf32> to vector<1x128xf32>
    %10 = vector.extract_strided_slice %8 {offsets = [1, 0], sizes = [1, 32], strides = [1, 1]} : vector<8x128xf32> to vector<1x32xf32>
    %11 = vector.extract_strided_slice %8 {offsets = [1, 32], sizes = [1, 32], strides = [1, 1]} : vector<8x128xf32> to vector<1x32xf32>
    %12 = vector.extract_strided_slice %8 {offsets = [1, 64], sizes = [1, 64], strides = [1, 1]} : vector<8x128xf32> to vector<1x64xf32>
    %13 = vector.extract_strided_slice %8 {offsets = [2, 0], sizes = [1, 32], strides = [1, 1]} : vector<8x128xf32> to vector<1x32xf32>
    %14 = vector.extract_strided_slice %8 {offsets = [2, 32], sizes = [1, 32], strides = [1, 1]} : vector<8x128xf32> to vector<1x32xf32>
    %15 = vector.extract_strided_slice %8 {offsets = [2, 64], sizes = [1, 32], strides = [1, 1]} : vector<8x128xf32> to vector<1x32xf32>
    %16 = vector.extract_strided_slice %8 {offsets = [2, 96], sizes = [1, 32], strides = [1, 1]} : vector<8x128xf32> to vector<1x32xf32>
    %17 = vector.extract_strided_slice %8 {offsets = [3, 0], sizes = [1, 32], strides = [1, 1]} : vector<8x128xf32> to vector<1x32xf32>
    %18 = vector.extract_strided_slice %8 {offsets = [3, 32], sizes = [1, 32], strides = [1, 1]} : vector<8x128xf32> to vector<1x32xf32>
    %19 = tpu.iota {dimensions = array<i32: 0>} : vector<32x64xi32>
    %c3_i32 = arith.constant 3 : i32
    %20 = vector.broadcast %c3_i32 : i32 to vector<32x64xi32>
    %21 = arith.shrsi %19, %20 : vector<32x64xi32>
    %22 = tpu.iota {dimensions = array<i32: 1>} : vector<32x64xi32>
    %c4_i32 = arith.constant 4 : i32
    %23 = vector.broadcast %c4_i32 : i32 to vector<32x64xi32>
    %24 = arith.shrsi %22, %23 : vector<32x64xi32>
    %25 = arith.cmpi eq, %21, %24 : vector<32x64xi32>
    %26 = arith.extui %25 : vector<32x64xi1> to vector<32x64xi32>
    %27 = arith.sitofp %26 : vector<32x64xi32> to vector<32x64xf32>
    %28 = tpu.iota {dimensions = array<i32: 0>} : vector<64x32xi32>
    %c4_i32_4 = arith.constant 4 : i32
    %29 = vector.broadcast %c4_i32_4 : i32 to vector<64x32xi32>
    %30 = arith.shrsi %28, %29 : vector<64x32xi32>
    %31 = tpu.iota {dimensions = array<i32: 1>} : vector<64x32xi32>
    %c3_i32_5 = arith.constant 3 : i32
    %32 = vector.broadcast %c3_i32_5 : i32 to vector<64x32xi32>
    %33 = arith.shrsi %31, %32 : vector<64x32xi32>
    %34 = arith.cmpi eq, %30, %33 : vector<64x32xi32>
    %35 = arith.extui %34 : vector<64x32xi1> to vector<64x32xi32>
    %36 = arith.sitofp %35 : vector<64x32xi32> to vector<64x32xf32>
    %37 = tpu.concatenate %1, %1, %1, %1 in 1 : vector<1x16xf32>, vector<1x16xf32>, vector<1x16xf32>, vector<1x16xf32> -> vector<1x64xf32>
    %38 = tpu.iota {dimensions = array<i32: 0>} : vector<16x64xi32>
    %c3_i32_6 = arith.constant 3 : i32
    %39 = vector.broadcast %c3_i32_6 : i32 to vector<16x64xi32>
    %40 = arith.shrsi %38, %39 : vector<16x64xi32>
    %41 = tpu.iota {dimensions = array<i32: 1>} : vector<16x64xi32>
    %c3_i32_7 = arith.constant 3 : i32
    %42 = vector.broadcast %c3_i32_7 : i32 to vector<16x64xi32>
    %43 = arith.shrsi %41, %42 : vector<16x64xi32>
    %c1_i32 = arith.constant 1 : i32
    %44 = vector.broadcast %c1_i32 : i32 to vector<16x64xi32>
    %45 = arith.andi %43, %44 : vector<16x64xi32>
    %46 = arith.cmpi eq, %40, %45 : vector<16x64xi32>
    %47 = vector.shape_cast %37 : vector<1x64xf32> to vector<1x64xf32>
    %48 = vector.broadcast %47 : vector<1x64xf32> to vector<16x64xf32>
    %cst = arith.constant 0.000000e+00 : f32
    %49 = vector.broadcast %cst : f32 to vector<16x64xf32>
    %50 = arith.cmpf ogt, %48, %49 : vector<16x64xf32>
    %51 = arith.andi %46, %50 : vector<16x64xi1>
    %cst_8 = arith.constant 0.000000e+00 : f32
    %cst_9 = arith.constant -1.000000e+09 : f32
    %52 = vector.broadcast %cst_8 : f32 to vector<16x64xf32>
    %53 = vector.broadcast %cst_9 : f32 to vector<16x64xf32>
    %54 = arith.select %51, %52, %53 : vector<16x64xi1>, vector<16x64xf32>
    %cst_10 = arith.constant dense<0.000000e+00> : vector<16xf32>
    %55 = vector.multi_reduction <add>, %0, %cst_10 [1] : vector<16x32xf32> to vector<16xf32>
    %56 = vector.shape_cast %55 : vector<16xf32> to vector<16x1xf32>
    %cst_11 = arith.constant 3.200000e+01 : f32
    %57 = vector.broadcast %cst_11 : f32 to vector<16x1xf32>
    %58 = arith.divf %56, %57 : vector<16x1xf32>
    %59 = vector.broadcast %58 : vector<16x1xf32> to vector<16x32xf32>
    %60 = arith.subf %0, %59 : vector<16x32xf32>
    %61 = arith.mulf %60, %60 : vector<16x32xf32>
    %cst_12 = arith.constant dense<0.000000e+00> : vector<16xf32>
    %62 = vector.multi_reduction <add>, %61, %cst_12 [1] : vector<16x32xf32> to vector<16xf32>
    %63 = vector.shape_cast %62 : vector<16xf32> to vector<16x1xf32>
    %cst_13 = arith.constant 3.200000e+01 : f32
    %64 = vector.broadcast %cst_13 : f32 to vector<16x1xf32>
    %65 = arith.divf %63, %64 : vector<16x1xf32>
    %cst_14 = arith.constant 9.99999974E-6 : f32
    %66 = vector.broadcast %cst_14 : f32 to vector<16x1xf32>
    %67 = arith.addf %65, %66 : vector<16x1xf32>
    %68 = math.rsqrt %67 : vector<16x1xf32>
    %69 = vector.broadcast %68 : vector<16x1xf32> to vector<16x32xf32>
    %70 = arith.mulf %60, %69 : vector<16x32xf32>
    %71 = vector.broadcast %13 : vector<1x32xf32> to vector<16x32xf32>
    %72 = arith.mulf %70, %71 : vector<16x32xf32>
    %73 = vector.broadcast %14 : vector<1x32xf32> to vector<16x32xf32>
    %74 = arith.addf %72, %73 : vector<16x32xf32>
    %75 = arith.truncf %74 : vector<16x32xf32> to vector<16x32xbf16>
    %cst_15 = arith.constant dense<0.000000e+00> : vector<16x128xf32>
    %76 = tpu.matmul %75, %3, %cst_15 {dimension_numbers = #tpu.dot_dimension_numbers<[1], [0], [0], [1], [0, 0, 1, 1], [], []>} : vector<16x32xbf16>, vector<32x128xbf16>, vector<16x128xf32> -> vector<16x128xf32>
    %77 = vector.broadcast %9 : vector<1x128xf32> to vector<16x128xf32>
    %78 = arith.addf %76, %77 : vector<16x128xf32>
    %79 = vector.extract_strided_slice %78 {offsets = [0, 0], sizes = [16, 32], strides = [1, 1]} : vector<16x128xf32> to vector<16x32xf32>
    %80 = vector.extract_strided_slice %78 {offsets = [0, 32], sizes = [16, 32], strides = [1, 1]} : vector<16x128xf32> to vector<16x32xf32>
    %81 = vector.extract_strided_slice %78 {offsets = [0, 64], sizes = [16, 32], strides = [1, 1]} : vector<16x128xf32> to vector<16x32xf32>
    %82 = tpu.transpose %80, [1, 0] : vector<16x32xf32> -> vector<32x16xf32>
    %83 = tpu.concatenate %82, %82, %82, %82 in 1 : vector<32x16xf32>, vector<32x16xf32>, vector<32x16xf32>, vector<32x16xf32> -> vector<32x64xf32>
    %84 = arith.mulf %83, %27 : vector<32x64xf32>
    %85 = arith.truncf %84 : vector<32x64xf32> to vector<32x64xbf16>
    %86 = arith.truncf %79 : vector<16x32xf32> to vector<16x32xbf16>
    %cst_16 = arith.constant dense<0.000000e+00> : vector<16x64xf32>
    %87 = tpu.matmul %86, %85, %cst_16 {dimension_numbers = #tpu.dot_dimension_numbers<[1], [0], [0], [1], [0, 0, 1, 1], [], []>} : vector<16x32xbf16>, vector<32x64xbf16>, vector<16x64xf32> -> vector<16x64xf32>
    %88 = arith.addf %87, %54 : vector<16x64xf32>
    %cst_17 = arith.constant dense<0xFF800000> : vector<16xf32>
    %89 = vector.multi_reduction <maximumf>, %88, %cst_17 [1] : vector<16x64xf32> to vector<16xf32>
    %90 = vector.shape_cast %89 : vector<16xf32> to vector<16x1xf32>
    %91 = vector.broadcast %90 : vector<16x1xf32> to vector<16x64xf32>
    %92 = arith.subf %88, %91 : vector<16x64xf32>
    %93 = math.exp %92 : vector<16x64xf32>
    %94 = tpu.concatenate %81, %81, %81, %81 in 0 : vector<16x32xf32>, vector<16x32xf32>, vector<16x32xf32>, vector<16x32xf32> -> vector<64x32xf32>
    %95 = arith.mulf %94, %36 : vector<64x32xf32>
    %96 = tpu.concatenate %95, %36 in 1 : vector<64x32xf32>, vector<64x32xf32> -> vector<64x64xf32>
    %97 = arith.truncf %96 : vector<64x64xf32> to vector<64x64xbf16>
    %98 = arith.truncf %93 : vector<16x64xf32> to vector<16x64xbf16>
    %cst_18 = arith.constant dense<0.000000e+00> : vector<16x64xf32>
    %99 = tpu.matmul %98, %97, %cst_18 {dimension_numbers = #tpu.dot_dimension_numbers<[1], [0], [0], [1], [0, 0, 1, 1], [], []>} : vector<16x64xbf16>, vector<64x64xbf16>, vector<16x64xf32> -> vector<16x64xf32>
    %100 = vector.extract_strided_slice %99 {offsets = [0, 0], sizes = [16, 32], strides = [1, 1]} : vector<16x64xf32> to vector<16x32xf32>
    %101 = vector.extract_strided_slice %99 {offsets = [0, 32], sizes = [16, 32], strides = [1, 1]} : vector<16x64xf32> to vector<16x32xf32>
    %102 = arith.divf %100, %101 : vector<16x32xf32>
    %103 = arith.truncf %102 : vector<16x32xf32> to vector<16x32xbf16>
    %cst_19 = arith.constant dense<0.000000e+00> : vector<16x32xf32>
    %104 = tpu.matmul %103, %4, %cst_19 {dimension_numbers = #tpu.dot_dimension_numbers<[1], [0], [0], [1], [0, 0, 1, 1], [], []>} : vector<16x32xbf16>, vector<32x32xbf16>, vector<16x32xf32> -> vector<16x32xf32>
    %105 = arith.addf %0, %104 : vector<16x32xf32>
    %106 = vector.broadcast %10 : vector<1x32xf32> to vector<16x32xf32>
    %107 = arith.addf %105, %106 : vector<16x32xf32>
    %cst_20 = arith.constant dense<0.000000e+00> : vector<16xf32>
    %108 = vector.multi_reduction <add>, %107, %cst_20 [1] : vector<16x32xf32> to vector<16xf32>
    %109 = vector.shape_cast %108 : vector<16xf32> to vector<16x1xf32>
    %cst_21 = arith.constant 3.200000e+01 : f32
    %110 = vector.broadcast %cst_21 : f32 to vector<16x1xf32>
    %111 = arith.divf %109, %110 : vector<16x1xf32>
    %112 = vector.broadcast %111 : vector<16x1xf32> to vector<16x32xf32>
    %113 = arith.subf %107, %112 : vector<16x32xf32>
    %114 = arith.mulf %113, %113 : vector<16x32xf32>
    %cst_22 = arith.constant dense<0.000000e+00> : vector<16xf32>
    %115 = vector.multi_reduction <add>, %114, %cst_22 [1] : vector<16x32xf32> to vector<16xf32>
    %116 = vector.shape_cast %115 : vector<16xf32> to vector<16x1xf32>
    %cst_23 = arith.constant 3.200000e+01 : f32
    %117 = vector.broadcast %cst_23 : f32 to vector<16x1xf32>
    %118 = arith.divf %116, %117 : vector<16x1xf32>
    %cst_24 = arith.constant 9.99999974E-6 : f32
    %119 = vector.broadcast %cst_24 : f32 to vector<16x1xf32>
    %120 = arith.addf %118, %119 : vector<16x1xf32>
    %121 = math.rsqrt %120 : vector<16x1xf32>
    %122 = vector.broadcast %121 : vector<16x1xf32> to vector<16x32xf32>
    %123 = arith.mulf %113, %122 : vector<16x32xf32>
    %124 = vector.broadcast %15 : vector<1x32xf32> to vector<16x32xf32>
    %125 = arith.mulf %123, %124 : vector<16x32xf32>
    %126 = vector.broadcast %16 : vector<1x32xf32> to vector<16x32xf32>
    %127 = arith.addf %125, %126 : vector<16x32xf32>
    %128 = arith.truncf %127 : vector<16x32xf32> to vector<16x32xbf16>
    %cst_25 = arith.constant dense<0.000000e+00> : vector<16x64xf32>
    %129 = tpu.matmul %128, %5, %cst_25 {dimension_numbers = #tpu.dot_dimension_numbers<[1], [0], [0], [1], [0, 0, 1, 1], [], []>} : vector<16x32xbf16>, vector<32x64xbf16>, vector<16x64xf32> -> vector<16x64xf32>
    %130 = vector.broadcast %12 : vector<1x64xf32> to vector<16x64xf32>
    %131 = arith.addf %129, %130 : vector<16x64xf32>
    %cst_26 = arith.constant 0.000000e+00 : f32
    %132 = vector.broadcast %cst_26 : f32 to vector<16x64xf32>
    %133 = arith.maximumf %131, %132 : vector<16x64xf32>
    %134 = arith.truncf %133 : vector<16x64xf32> to vector<16x64xbf16>
    %cst_27 = arith.constant dense<0.000000e+00> : vector<16x32xf32>
    %135 = tpu.matmul %134, %6, %cst_27 {dimension_numbers = #tpu.dot_dimension_numbers<[1], [0], [0], [1], [0, 0, 1, 1], [], []>} : vector<16x64xbf16>, vector<64x32xbf16>, vector<16x32xf32> -> vector<16x32xf32>
    %136 = arith.addf %107, %135 : vector<16x32xf32>
    %137 = vector.broadcast %11 : vector<1x32xf32> to vector<16x32xf32>
    %138 = arith.addf %136, %137 : vector<16x32xf32>
    %cst_28 = arith.constant dense<0.000000e+00> : vector<16xf32>
    %139 = vector.multi_reduction <add>, %138, %cst_28 [1] : vector<16x32xf32> to vector<16xf32>
    %140 = vector.shape_cast %139 : vector<16xf32> to vector<16x1xf32>
    %cst_29 = arith.constant 3.200000e+01 : f32
    %141 = vector.broadcast %cst_29 : f32 to vector<16x1xf32>
    %142 = arith.divf %140, %141 : vector<16x1xf32>
    %143 = vector.broadcast %142 : vector<16x1xf32> to vector<16x32xf32>
    %144 = arith.subf %138, %143 : vector<16x32xf32>
    %145 = arith.mulf %144, %144 : vector<16x32xf32>
    %cst_30 = arith.constant dense<0.000000e+00> : vector<16xf32>
    %146 = vector.multi_reduction <add>, %145, %cst_30 [1] : vector<16x32xf32> to vector<16xf32>
    %147 = vector.shape_cast %146 : vector<16xf32> to vector<16x1xf32>
    %cst_31 = arith.constant 3.200000e+01 : f32
    %148 = vector.broadcast %cst_31 : f32 to vector<16x1xf32>
    %149 = arith.divf %147, %148 : vector<16x1xf32>
    %cst_32 = arith.constant 9.99999974E-6 : f32
    %150 = vector.broadcast %cst_32 : f32 to vector<16x1xf32>
    %151 = arith.addf %149, %150 : vector<16x1xf32>
    %152 = math.rsqrt %151 : vector<16x1xf32>
    %153 = vector.broadcast %152 : vector<16x1xf32> to vector<16x32xf32>
    %154 = arith.mulf %144, %153 : vector<16x32xf32>
    %155 = vector.broadcast %13 : vector<1x32xf32> to vector<16x32xf32>
    %156 = arith.mulf %154, %155 : vector<16x32xf32>
    %157 = vector.broadcast %14 : vector<1x32xf32> to vector<16x32xf32>
    %158 = arith.addf %156, %157 : vector<16x32xf32>
    %159 = arith.truncf %158 : vector<16x32xf32> to vector<16x32xbf16>
    %cst_33 = arith.constant dense<0.000000e+00> : vector<16x128xf32>
    %160 = tpu.matmul %159, %3, %cst_33 {dimension_numbers = #tpu.dot_dimension_numbers<[1], [0], [0], [1], [0, 0, 1, 1], [], []>} : vector<16x32xbf16>, vector<32x128xbf16>, vector<16x128xf32> -> vector<16x128xf32>
    %161 = vector.broadcast %9 : vector<1x128xf32> to vector<16x128xf32>
    %162 = arith.addf %160, %161 : vector<16x128xf32>
    %163 = vector.extract_strided_slice %162 {offsets = [0, 0], sizes = [16, 32], strides = [1, 1]} : vector<16x128xf32> to vector<16x32xf32>
    %164 = vector.extract_strided_slice %162 {offsets = [0, 32], sizes = [16, 32], strides = [1, 1]} : vector<16x128xf32> to vector<16x32xf32>
    %165 = vector.extract_strided_slice %162 {offsets = [0, 64], sizes = [16, 32], strides = [1, 1]} : vector<16x128xf32> to vector<16x32xf32>
    %166 = tpu.transpose %164, [1, 0] : vector<16x32xf32> -> vector<32x16xf32>
    %167 = tpu.concatenate %166, %166, %166, %166 in 1 : vector<32x16xf32>, vector<32x16xf32>, vector<32x16xf32>, vector<32x16xf32> -> vector<32x64xf32>
    %168 = arith.mulf %167, %27 : vector<32x64xf32>
    %169 = arith.truncf %168 : vector<32x64xf32> to vector<32x64xbf16>
    %170 = arith.truncf %163 : vector<16x32xf32> to vector<16x32xbf16>
    %cst_34 = arith.constant dense<0.000000e+00> : vector<16x64xf32>
    %171 = tpu.matmul %170, %169, %cst_34 {dimension_numbers = #tpu.dot_dimension_numbers<[1], [0], [0], [1], [0, 0, 1, 1], [], []>} : vector<16x32xbf16>, vector<32x64xbf16>, vector<16x64xf32> -> vector<16x64xf32>
    %172 = arith.addf %171, %54 : vector<16x64xf32>
    %cst_35 = arith.constant dense<0xFF800000> : vector<16xf32>
    %173 = vector.multi_reduction <maximumf>, %172, %cst_35 [1] : vector<16x64xf32> to vector<16xf32>
    %174 = vector.shape_cast %173 : vector<16xf32> to vector<16x1xf32>
    %175 = vector.broadcast %174 : vector<16x1xf32> to vector<16x64xf32>
    %176 = arith.subf %172, %175 : vector<16x64xf32>
    %177 = math.exp %176 : vector<16x64xf32>
    %178 = tpu.concatenate %165, %165, %165, %165 in 0 : vector<16x32xf32>, vector<16x32xf32>, vector<16x32xf32>, vector<16x32xf32> -> vector<64x32xf32>
    %179 = arith.mulf %178, %36 : vector<64x32xf32>
    %180 = tpu.concatenate %179, %36 in 1 : vector<64x32xf32>, vector<64x32xf32> -> vector<64x64xf32>
    %181 = arith.truncf %180 : vector<64x64xf32> to vector<64x64xbf16>
    %182 = arith.truncf %177 : vector<16x64xf32> to vector<16x64xbf16>
    %cst_36 = arith.constant dense<0.000000e+00> : vector<16x64xf32>
    %183 = tpu.matmul %182, %181, %cst_36 {dimension_numbers = #tpu.dot_dimension_numbers<[1], [0], [0], [1], [0, 0, 1, 1], [], []>} : vector<16x64xbf16>, vector<64x64xbf16>, vector<16x64xf32> -> vector<16x64xf32>
    %184 = vector.extract_strided_slice %183 {offsets = [0, 0], sizes = [16, 32], strides = [1, 1]} : vector<16x64xf32> to vector<16x32xf32>
    %185 = vector.extract_strided_slice %183 {offsets = [0, 32], sizes = [16, 32], strides = [1, 1]} : vector<16x64xf32> to vector<16x32xf32>
    %186 = arith.divf %184, %185 : vector<16x32xf32>
    %187 = arith.truncf %186 : vector<16x32xf32> to vector<16x32xbf16>
    %cst_37 = arith.constant dense<0.000000e+00> : vector<16x32xf32>
    %188 = tpu.matmul %187, %4, %cst_37 {dimension_numbers = #tpu.dot_dimension_numbers<[1], [0], [0], [1], [0, 0, 1, 1], [], []>} : vector<16x32xbf16>, vector<32x32xbf16>, vector<16x32xf32> -> vector<16x32xf32>
    %189 = arith.addf %138, %188 : vector<16x32xf32>
    %190 = vector.broadcast %10 : vector<1x32xf32> to vector<16x32xf32>
    %191 = arith.addf %189, %190 : vector<16x32xf32>
    %cst_38 = arith.constant dense<0.000000e+00> : vector<16xf32>
    %192 = vector.multi_reduction <add>, %191, %cst_38 [1] : vector<16x32xf32> to vector<16xf32>
    %193 = vector.shape_cast %192 : vector<16xf32> to vector<16x1xf32>
    %cst_39 = arith.constant 3.200000e+01 : f32
    %194 = vector.broadcast %cst_39 : f32 to vector<16x1xf32>
    %195 = arith.divf %193, %194 : vector<16x1xf32>
    %196 = vector.broadcast %195 : vector<16x1xf32> to vector<16x32xf32>
    %197 = arith.subf %191, %196 : vector<16x32xf32>
    %198 = arith.mulf %197, %197 : vector<16x32xf32>
    %cst_40 = arith.constant dense<0.000000e+00> : vector<16xf32>
    %199 = vector.multi_reduction <add>, %198, %cst_40 [1] : vector<16x32xf32> to vector<16xf32>
    %200 = vector.shape_cast %199 : vector<16xf32> to vector<16x1xf32>
    %cst_41 = arith.constant 3.200000e+01 : f32
    %201 = vector.broadcast %cst_41 : f32 to vector<16x1xf32>
    %202 = arith.divf %200, %201 : vector<16x1xf32>
    %cst_42 = arith.constant 9.99999974E-6 : f32
    %203 = vector.broadcast %cst_42 : f32 to vector<16x1xf32>
    %204 = arith.addf %202, %203 : vector<16x1xf32>
    %205 = math.rsqrt %204 : vector<16x1xf32>
    %206 = vector.broadcast %205 : vector<16x1xf32> to vector<16x32xf32>
    %207 = arith.mulf %197, %206 : vector<16x32xf32>
    %208 = vector.broadcast %15 : vector<1x32xf32> to vector<16x32xf32>
    %209 = arith.mulf %207, %208 : vector<16x32xf32>
    %210 = vector.broadcast %16 : vector<1x32xf32> to vector<16x32xf32>
    %211 = arith.addf %209, %210 : vector<16x32xf32>
    %212 = arith.truncf %211 : vector<16x32xf32> to vector<16x32xbf16>
    %cst_43 = arith.constant dense<0.000000e+00> : vector<16x64xf32>
    %213 = tpu.matmul %212, %5, %cst_43 {dimension_numbers = #tpu.dot_dimension_numbers<[1], [0], [0], [1], [0, 0, 1, 1], [], []>} : vector<16x32xbf16>, vector<32x64xbf16>, vector<16x64xf32> -> vector<16x64xf32>
    %214 = vector.broadcast %12 : vector<1x64xf32> to vector<16x64xf32>
    %215 = arith.addf %213, %214 : vector<16x64xf32>
    %cst_44 = arith.constant 0.000000e+00 : f32
    %216 = vector.broadcast %cst_44 : f32 to vector<16x64xf32>
    %217 = arith.maximumf %215, %216 : vector<16x64xf32>
    %218 = arith.truncf %217 : vector<16x64xf32> to vector<16x64xbf16>
    %cst_45 = arith.constant dense<0.000000e+00> : vector<16x32xf32>
    %219 = tpu.matmul %218, %6, %cst_45 {dimension_numbers = #tpu.dot_dimension_numbers<[1], [0], [0], [1], [0, 0, 1, 1], [], []>} : vector<16x64xbf16>, vector<64x32xbf16>, vector<16x32xf32> -> vector<16x32xf32>
    %220 = arith.addf %191, %219 : vector<16x32xf32>
    %221 = vector.broadcast %11 : vector<1x32xf32> to vector<16x32xf32>
    %222 = arith.addf %220, %221 : vector<16x32xf32>
    %cst_46 = arith.constant dense<0.000000e+00> : vector<16xf32>
    %223 = vector.multi_reduction <add>, %222, %cst_46 [1] : vector<16x32xf32> to vector<16xf32>
    %224 = vector.shape_cast %223 : vector<16xf32> to vector<16x1xf32>
    %cst_47 = arith.constant 3.200000e+01 : f32
    %225 = vector.broadcast %cst_47 : f32 to vector<16x1xf32>
    %226 = arith.divf %224, %225 : vector<16x1xf32>
    %227 = vector.broadcast %226 : vector<16x1xf32> to vector<16x32xf32>
    %228 = arith.subf %222, %227 : vector<16x32xf32>
    %229 = arith.mulf %228, %228 : vector<16x32xf32>
    %cst_48 = arith.constant dense<0.000000e+00> : vector<16xf32>
    %230 = vector.multi_reduction <add>, %229, %cst_48 [1] : vector<16x32xf32> to vector<16xf32>
    %231 = vector.shape_cast %230 : vector<16xf32> to vector<16x1xf32>
    %cst_49 = arith.constant 3.200000e+01 : f32
    %232 = vector.broadcast %cst_49 : f32 to vector<16x1xf32>
    %233 = arith.divf %231, %232 : vector<16x1xf32>
    %cst_50 = arith.constant 9.99999974E-6 : f32
    %234 = vector.broadcast %cst_50 : f32 to vector<16x1xf32>
    %235 = arith.addf %233, %234 : vector<16x1xf32>
    %236 = math.rsqrt %235 : vector<16x1xf32>
    %237 = vector.broadcast %236 : vector<16x1xf32> to vector<16x32xf32>
    %238 = arith.mulf %228, %237 : vector<16x32xf32>
    %239 = vector.broadcast %13 : vector<1x32xf32> to vector<16x32xf32>
    %240 = arith.mulf %238, %239 : vector<16x32xf32>
    %241 = vector.broadcast %14 : vector<1x32xf32> to vector<16x32xf32>
    %242 = arith.addf %240, %241 : vector<16x32xf32>
    %243 = arith.truncf %242 : vector<16x32xf32> to vector<16x32xbf16>
    %cst_51 = arith.constant dense<0.000000e+00> : vector<16x128xf32>
    %244 = tpu.matmul %243, %3, %cst_51 {dimension_numbers = #tpu.dot_dimension_numbers<[1], [0], [0], [1], [0, 0, 1, 1], [], []>} : vector<16x32xbf16>, vector<32x128xbf16>, vector<16x128xf32> -> vector<16x128xf32>
    %245 = vector.broadcast %9 : vector<1x128xf32> to vector<16x128xf32>
    %246 = arith.addf %244, %245 : vector<16x128xf32>
    %247 = vector.extract_strided_slice %246 {offsets = [0, 0], sizes = [16, 32], strides = [1, 1]} : vector<16x128xf32> to vector<16x32xf32>
    %248 = vector.extract_strided_slice %246 {offsets = [0, 32], sizes = [16, 32], strides = [1, 1]} : vector<16x128xf32> to vector<16x32xf32>
    %249 = vector.extract_strided_slice %246 {offsets = [0, 64], sizes = [16, 32], strides = [1, 1]} : vector<16x128xf32> to vector<16x32xf32>
    %250 = tpu.transpose %248, [1, 0] : vector<16x32xf32> -> vector<32x16xf32>
    %251 = tpu.concatenate %250, %250, %250, %250 in 1 : vector<32x16xf32>, vector<32x16xf32>, vector<32x16xf32>, vector<32x16xf32> -> vector<32x64xf32>
    %252 = arith.mulf %251, %27 : vector<32x64xf32>
    %253 = arith.truncf %252 : vector<32x64xf32> to vector<32x64xbf16>
    %254 = arith.truncf %247 : vector<16x32xf32> to vector<16x32xbf16>
    %cst_52 = arith.constant dense<0.000000e+00> : vector<16x64xf32>
    %255 = tpu.matmul %254, %253, %cst_52 {dimension_numbers = #tpu.dot_dimension_numbers<[1], [0], [0], [1], [0, 0, 1, 1], [], []>} : vector<16x32xbf16>, vector<32x64xbf16>, vector<16x64xf32> -> vector<16x64xf32>
    %256 = arith.addf %255, %54 : vector<16x64xf32>
    %cst_53 = arith.constant dense<0xFF800000> : vector<16xf32>
    %257 = vector.multi_reduction <maximumf>, %256, %cst_53 [1] : vector<16x64xf32> to vector<16xf32>
    %258 = vector.shape_cast %257 : vector<16xf32> to vector<16x1xf32>
    %259 = vector.broadcast %258 : vector<16x1xf32> to vector<16x64xf32>
    %260 = arith.subf %256, %259 : vector<16x64xf32>
    %261 = math.exp %260 : vector<16x64xf32>
    %262 = tpu.concatenate %249, %249, %249, %249 in 0 : vector<16x32xf32>, vector<16x32xf32>, vector<16x32xf32>, vector<16x32xf32> -> vector<64x32xf32>
    %263 = arith.mulf %262, %36 : vector<64x32xf32>
    %264 = tpu.concatenate %263, %36 in 1 : vector<64x32xf32>, vector<64x32xf32> -> vector<64x64xf32>
    %265 = arith.truncf %264 : vector<64x64xf32> to vector<64x64xbf16>
    %266 = arith.truncf %261 : vector<16x64xf32> to vector<16x64xbf16>
    %cst_54 = arith.constant dense<0.000000e+00> : vector<16x64xf32>
    %267 = tpu.matmul %266, %265, %cst_54 {dimension_numbers = #tpu.dot_dimension_numbers<[1], [0], [0], [1], [0, 0, 1, 1], [], []>} : vector<16x64xbf16>, vector<64x64xbf16>, vector<16x64xf32> -> vector<16x64xf32>
    %268 = vector.extract_strided_slice %267 {offsets = [0, 0], sizes = [16, 32], strides = [1, 1]} : vector<16x64xf32> to vector<16x32xf32>
    %269 = vector.extract_strided_slice %267 {offsets = [0, 32], sizes = [16, 32], strides = [1, 1]} : vector<16x64xf32> to vector<16x32xf32>
    %270 = arith.divf %268, %269 : vector<16x32xf32>
    %271 = arith.truncf %270 : vector<16x32xf32> to vector<16x32xbf16>
    %cst_55 = arith.constant dense<0.000000e+00> : vector<16x32xf32>
    %272 = tpu.matmul %271, %4, %cst_55 {dimension_numbers = #tpu.dot_dimension_numbers<[1], [0], [0], [1], [0, 0, 1, 1], [], []>} : vector<16x32xbf16>, vector<32x32xbf16>, vector<16x32xf32> -> vector<16x32xf32>
    %273 = arith.addf %222, %272 : vector<16x32xf32>
    %274 = vector.broadcast %10 : vector<1x32xf32> to vector<16x32xf32>
    %275 = arith.addf %273, %274 : vector<16x32xf32>
    %cst_56 = arith.constant dense<0.000000e+00> : vector<16xf32>
    %276 = vector.multi_reduction <add>, %275, %cst_56 [1] : vector<16x32xf32> to vector<16xf32>
    %277 = vector.shape_cast %276 : vector<16xf32> to vector<16x1xf32>
    %cst_57 = arith.constant 3.200000e+01 : f32
    %278 = vector.broadcast %cst_57 : f32 to vector<16x1xf32>
    %279 = arith.divf %277, %278 : vector<16x1xf32>
    %280 = vector.broadcast %279 : vector<16x1xf32> to vector<16x32xf32>
    %281 = arith.subf %275, %280 : vector<16x32xf32>
    %282 = arith.mulf %281, %281 : vector<16x32xf32>
    %cst_58 = arith.constant dense<0.000000e+00> : vector<16xf32>
    %283 = vector.multi_reduction <add>, %282, %cst_58 [1] : vector<16x32xf32> to vector<16xf32>
    %284 = vector.shape_cast %283 : vector<16xf32> to vector<16x1xf32>
    %cst_59 = arith.constant 3.200000e+01 : f32
    %285 = vector.broadcast %cst_59 : f32 to vector<16x1xf32>
    %286 = arith.divf %284, %285 : vector<16x1xf32>
    %cst_60 = arith.constant 9.99999974E-6 : f32
    %287 = vector.broadcast %cst_60 : f32 to vector<16x1xf32>
    %288 = arith.addf %286, %287 : vector<16x1xf32>
    %289 = math.rsqrt %288 : vector<16x1xf32>
    %290 = vector.broadcast %289 : vector<16x1xf32> to vector<16x32xf32>
    %291 = arith.mulf %281, %290 : vector<16x32xf32>
    %292 = vector.broadcast %15 : vector<1x32xf32> to vector<16x32xf32>
    %293 = arith.mulf %291, %292 : vector<16x32xf32>
    %294 = vector.broadcast %16 : vector<1x32xf32> to vector<16x32xf32>
    %295 = arith.addf %293, %294 : vector<16x32xf32>
    %296 = arith.truncf %295 : vector<16x32xf32> to vector<16x32xbf16>
    %cst_61 = arith.constant dense<0.000000e+00> : vector<16x64xf32>
    %297 = tpu.matmul %296, %5, %cst_61 {dimension_numbers = #tpu.dot_dimension_numbers<[1], [0], [0], [1], [0, 0, 1, 1], [], []>} : vector<16x32xbf16>, vector<32x64xbf16>, vector<16x64xf32> -> vector<16x64xf32>
    %298 = vector.broadcast %12 : vector<1x64xf32> to vector<16x64xf32>
    %299 = arith.addf %297, %298 : vector<16x64xf32>
    %cst_62 = arith.constant 0.000000e+00 : f32
    %300 = vector.broadcast %cst_62 : f32 to vector<16x64xf32>
    %301 = arith.maximumf %299, %300 : vector<16x64xf32>
    %302 = arith.truncf %301 : vector<16x64xf32> to vector<16x64xbf16>
    %cst_63 = arith.constant dense<0.000000e+00> : vector<16x32xf32>
    %303 = tpu.matmul %302, %6, %cst_63 {dimension_numbers = #tpu.dot_dimension_numbers<[1], [0], [0], [1], [0, 0, 1, 1], [], []>} : vector<16x64xbf16>, vector<64x32xbf16>, vector<16x32xf32> -> vector<16x32xf32>
    %304 = arith.addf %275, %303 : vector<16x32xf32>
    %305 = vector.broadcast %11 : vector<1x32xf32> to vector<16x32xf32>
    %306 = arith.addf %304, %305 : vector<16x32xf32>
    %cst_64 = arith.constant dense<0.000000e+00> : vector<16xf32>
    %307 = vector.multi_reduction <add>, %306, %cst_64 [1] : vector<16x32xf32> to vector<16xf32>
    %308 = vector.shape_cast %307 : vector<16xf32> to vector<16x1xf32>
    %cst_65 = arith.constant 3.200000e+01 : f32
    %309 = vector.broadcast %cst_65 : f32 to vector<16x1xf32>
    %310 = arith.divf %308, %309 : vector<16x1xf32>
    %311 = vector.broadcast %310 : vector<16x1xf32> to vector<16x32xf32>
    %312 = arith.subf %306, %311 : vector<16x32xf32>
    %313 = arith.mulf %312, %312 : vector<16x32xf32>
    %cst_66 = arith.constant dense<0.000000e+00> : vector<16xf32>
    %314 = vector.multi_reduction <add>, %313, %cst_66 [1] : vector<16x32xf32> to vector<16xf32>
    %315 = vector.shape_cast %314 : vector<16xf32> to vector<16x1xf32>
    %cst_67 = arith.constant 3.200000e+01 : f32
    %316 = vector.broadcast %cst_67 : f32 to vector<16x1xf32>
    %317 = arith.divf %315, %316 : vector<16x1xf32>
    %cst_68 = arith.constant 9.99999974E-6 : f32
    %318 = vector.broadcast %cst_68 : f32 to vector<16x1xf32>
    %319 = arith.addf %317, %318 : vector<16x1xf32>
    %320 = math.rsqrt %319 : vector<16x1xf32>
    %321 = vector.broadcast %320 : vector<16x1xf32> to vector<16x32xf32>
    %322 = arith.mulf %312, %321 : vector<16x32xf32>
    %323 = vector.broadcast %13 : vector<1x32xf32> to vector<16x32xf32>
    %324 = arith.mulf %322, %323 : vector<16x32xf32>
    %325 = vector.broadcast %14 : vector<1x32xf32> to vector<16x32xf32>
    %326 = arith.addf %324, %325 : vector<16x32xf32>
    %327 = arith.truncf %326 : vector<16x32xf32> to vector<16x32xbf16>
    %cst_69 = arith.constant dense<0.000000e+00> : vector<16x128xf32>
    %328 = tpu.matmul %327, %3, %cst_69 {dimension_numbers = #tpu.dot_dimension_numbers<[1], [0], [0], [1], [0, 0, 1, 1], [], []>} : vector<16x32xbf16>, vector<32x128xbf16>, vector<16x128xf32> -> vector<16x128xf32>
    %329 = vector.broadcast %9 : vector<1x128xf32> to vector<16x128xf32>
    %330 = arith.addf %328, %329 : vector<16x128xf32>
    %331 = vector.extract_strided_slice %330 {offsets = [0, 0], sizes = [16, 32], strides = [1, 1]} : vector<16x128xf32> to vector<16x32xf32>
    %332 = vector.extract_strided_slice %330 {offsets = [0, 32], sizes = [16, 32], strides = [1, 1]} : vector<16x128xf32> to vector<16x32xf32>
    %333 = vector.extract_strided_slice %330 {offsets = [0, 64], sizes = [16, 32], strides = [1, 1]} : vector<16x128xf32> to vector<16x32xf32>
    %334 = tpu.transpose %332, [1, 0] : vector<16x32xf32> -> vector<32x16xf32>
    %335 = tpu.concatenate %334, %334, %334, %334 in 1 : vector<32x16xf32>, vector<32x16xf32>, vector<32x16xf32>, vector<32x16xf32> -> vector<32x64xf32>
    %336 = arith.mulf %335, %27 : vector<32x64xf32>
    %337 = arith.truncf %336 : vector<32x64xf32> to vector<32x64xbf16>
    %338 = arith.truncf %331 : vector<16x32xf32> to vector<16x32xbf16>
    %cst_70 = arith.constant dense<0.000000e+00> : vector<16x64xf32>
    %339 = tpu.matmul %338, %337, %cst_70 {dimension_numbers = #tpu.dot_dimension_numbers<[1], [0], [0], [1], [0, 0, 1, 1], [], []>} : vector<16x32xbf16>, vector<32x64xbf16>, vector<16x64xf32> -> vector<16x64xf32>
    %340 = arith.addf %339, %54 : vector<16x64xf32>
    %cst_71 = arith.constant dense<0xFF800000> : vector<16xf32>
    %341 = vector.multi_reduction <maximumf>, %340, %cst_71 [1] : vector<16x64xf32> to vector<16xf32>
    %342 = vector.shape_cast %341 : vector<16xf32> to vector<16x1xf32>
    %343 = vector.broadcast %342 : vector<16x1xf32> to vector<16x64xf32>
    %344 = arith.subf %340, %343 : vector<16x64xf32>
    %345 = math.exp %344 : vector<16x64xf32>
    %346 = tpu.concatenate %333, %333, %333, %333 in 0 : vector<16x32xf32>, vector<16x32xf32>, vector<16x32xf32>, vector<16x32xf32> -> vector<64x32xf32>
    %347 = arith.mulf %346, %36 : vector<64x32xf32>
    %348 = tpu.concatenate %347, %36 in 1 : vector<64x32xf32>, vector<64x32xf32> -> vector<64x64xf32>
    %349 = arith.truncf %348 : vector<64x64xf32> to vector<64x64xbf16>
    %350 = arith.truncf %345 : vector<16x64xf32> to vector<16x64xbf16>
    %cst_72 = arith.constant dense<0.000000e+00> : vector<16x64xf32>
    %351 = tpu.matmul %350, %349, %cst_72 {dimension_numbers = #tpu.dot_dimension_numbers<[1], [0], [0], [1], [0, 0, 1, 1], [], []>} : vector<16x64xbf16>, vector<64x64xbf16>, vector<16x64xf32> -> vector<16x64xf32>
    %352 = vector.extract_strided_slice %351 {offsets = [0, 0], sizes = [16, 32], strides = [1, 1]} : vector<16x64xf32> to vector<16x32xf32>
    %353 = vector.extract_strided_slice %351 {offsets = [0, 32], sizes = [16, 32], strides = [1, 1]} : vector<16x64xf32> to vector<16x32xf32>
    %354 = arith.divf %352, %353 : vector<16x32xf32>
    %355 = arith.truncf %354 : vector<16x32xf32> to vector<16x32xbf16>
    %cst_73 = arith.constant dense<0.000000e+00> : vector<16x32xf32>
    %356 = tpu.matmul %355, %4, %cst_73 {dimension_numbers = #tpu.dot_dimension_numbers<[1], [0], [0], [1], [0, 0, 1, 1], [], []>} : vector<16x32xbf16>, vector<32x32xbf16>, vector<16x32xf32> -> vector<16x32xf32>
    %357 = arith.addf %306, %356 : vector<16x32xf32>
    %358 = vector.broadcast %10 : vector<1x32xf32> to vector<16x32xf32>
    %359 = arith.addf %357, %358 : vector<16x32xf32>
    %cst_74 = arith.constant dense<0.000000e+00> : vector<16xf32>
    %360 = vector.multi_reduction <add>, %359, %cst_74 [1] : vector<16x32xf32> to vector<16xf32>
    %361 = vector.shape_cast %360 : vector<16xf32> to vector<16x1xf32>
    %cst_75 = arith.constant 3.200000e+01 : f32
    %362 = vector.broadcast %cst_75 : f32 to vector<16x1xf32>
    %363 = arith.divf %361, %362 : vector<16x1xf32>
    %364 = vector.broadcast %363 : vector<16x1xf32> to vector<16x32xf32>
    %365 = arith.subf %359, %364 : vector<16x32xf32>
    %366 = arith.mulf %365, %365 : vector<16x32xf32>
    %cst_76 = arith.constant dense<0.000000e+00> : vector<16xf32>
    %367 = vector.multi_reduction <add>, %366, %cst_76 [1] : vector<16x32xf32> to vector<16xf32>
    %368 = vector.shape_cast %367 : vector<16xf32> to vector<16x1xf32>
    %cst_77 = arith.constant 3.200000e+01 : f32
    %369 = vector.broadcast %cst_77 : f32 to vector<16x1xf32>
    %370 = arith.divf %368, %369 : vector<16x1xf32>
    %cst_78 = arith.constant 9.99999974E-6 : f32
    %371 = vector.broadcast %cst_78 : f32 to vector<16x1xf32>
    %372 = arith.addf %370, %371 : vector<16x1xf32>
    %373 = math.rsqrt %372 : vector<16x1xf32>
    %374 = vector.broadcast %373 : vector<16x1xf32> to vector<16x32xf32>
    %375 = arith.mulf %365, %374 : vector<16x32xf32>
    %376 = vector.broadcast %15 : vector<1x32xf32> to vector<16x32xf32>
    %377 = arith.mulf %375, %376 : vector<16x32xf32>
    %378 = vector.broadcast %16 : vector<1x32xf32> to vector<16x32xf32>
    %379 = arith.addf %377, %378 : vector<16x32xf32>
    %380 = arith.truncf %379 : vector<16x32xf32> to vector<16x32xbf16>
    %cst_79 = arith.constant dense<0.000000e+00> : vector<16x64xf32>
    %381 = tpu.matmul %380, %5, %cst_79 {dimension_numbers = #tpu.dot_dimension_numbers<[1], [0], [0], [1], [0, 0, 1, 1], [], []>} : vector<16x32xbf16>, vector<32x64xbf16>, vector<16x64xf32> -> vector<16x64xf32>
    %382 = vector.broadcast %12 : vector<1x64xf32> to vector<16x64xf32>
    %383 = arith.addf %381, %382 : vector<16x64xf32>
    %cst_80 = arith.constant 0.000000e+00 : f32
    %384 = vector.broadcast %cst_80 : f32 to vector<16x64xf32>
    %385 = arith.maximumf %383, %384 : vector<16x64xf32>
    %386 = arith.truncf %385 : vector<16x64xf32> to vector<16x64xbf16>
    %cst_81 = arith.constant dense<0.000000e+00> : vector<16x32xf32>
    %387 = tpu.matmul %386, %6, %cst_81 {dimension_numbers = #tpu.dot_dimension_numbers<[1], [0], [0], [1], [0, 0, 1, 1], [], []>} : vector<16x64xbf16>, vector<64x32xbf16>, vector<16x32xf32> -> vector<16x32xf32>
    %388 = arith.addf %359, %387 : vector<16x32xf32>
    %389 = vector.broadcast %11 : vector<1x32xf32> to vector<16x32xf32>
    %390 = arith.addf %388, %389 : vector<16x32xf32>
    %cst_82 = arith.constant dense<0.000000e+00> : vector<16xf32>
    %391 = vector.multi_reduction <add>, %390, %cst_82 [1] : vector<16x32xf32> to vector<16xf32>
    %392 = vector.shape_cast %391 : vector<16xf32> to vector<16x1xf32>
    %cst_83 = arith.constant 3.200000e+01 : f32
    %393 = vector.broadcast %cst_83 : f32 to vector<16x1xf32>
    %394 = arith.divf %392, %393 : vector<16x1xf32>
    %395 = vector.broadcast %394 : vector<16x1xf32> to vector<16x32xf32>
    %396 = arith.subf %390, %395 : vector<16x32xf32>
    %397 = arith.mulf %396, %396 : vector<16x32xf32>
    %cst_84 = arith.constant dense<0.000000e+00> : vector<16xf32>
    %398 = vector.multi_reduction <add>, %397, %cst_84 [1] : vector<16x32xf32> to vector<16xf32>
    %399 = vector.shape_cast %398 : vector<16xf32> to vector<16x1xf32>
    %cst_85 = arith.constant 3.200000e+01 : f32
    %400 = vector.broadcast %cst_85 : f32 to vector<16x1xf32>
    %401 = arith.divf %399, %400 : vector<16x1xf32>
    %cst_86 = arith.constant 9.99999974E-6 : f32
    %402 = vector.broadcast %cst_86 : f32 to vector<16x1xf32>
    %403 = arith.addf %401, %402 : vector<16x1xf32>
    %404 = math.rsqrt %403 : vector<16x1xf32>
    %405 = vector.broadcast %404 : vector<16x1xf32> to vector<16x32xf32>
    %406 = arith.mulf %396, %405 : vector<16x32xf32>
    %407 = vector.broadcast %13 : vector<1x32xf32> to vector<16x32xf32>
    %408 = arith.mulf %406, %407 : vector<16x32xf32>
    %409 = vector.broadcast %14 : vector<1x32xf32> to vector<16x32xf32>
    %410 = arith.addf %408, %409 : vector<16x32xf32>
    %411 = arith.truncf %410 : vector<16x32xf32> to vector<16x32xbf16>
    %cst_87 = arith.constant dense<0.000000e+00> : vector<16x128xf32>
    %412 = tpu.matmul %411, %3, %cst_87 {dimension_numbers = #tpu.dot_dimension_numbers<[1], [0], [0], [1], [0, 0, 1, 1], [], []>} : vector<16x32xbf16>, vector<32x128xbf16>, vector<16x128xf32> -> vector<16x128xf32>
    %413 = vector.broadcast %9 : vector<1x128xf32> to vector<16x128xf32>
    %414 = arith.addf %412, %413 : vector<16x128xf32>
    %415 = vector.extract_strided_slice %414 {offsets = [0, 0], sizes = [16, 32], strides = [1, 1]} : vector<16x128xf32> to vector<16x32xf32>
    %416 = vector.extract_strided_slice %414 {offsets = [0, 32], sizes = [16, 32], strides = [1, 1]} : vector<16x128xf32> to vector<16x32xf32>
    %417 = vector.extract_strided_slice %414 {offsets = [0, 64], sizes = [16, 32], strides = [1, 1]} : vector<16x128xf32> to vector<16x32xf32>
    %418 = tpu.transpose %416, [1, 0] : vector<16x32xf32> -> vector<32x16xf32>
    %419 = tpu.concatenate %418, %418, %418, %418 in 1 : vector<32x16xf32>, vector<32x16xf32>, vector<32x16xf32>, vector<32x16xf32> -> vector<32x64xf32>
    %420 = arith.mulf %419, %27 : vector<32x64xf32>
    %421 = arith.truncf %420 : vector<32x64xf32> to vector<32x64xbf16>
    %422 = arith.truncf %415 : vector<16x32xf32> to vector<16x32xbf16>
    %cst_88 = arith.constant dense<0.000000e+00> : vector<16x64xf32>
    %423 = tpu.matmul %422, %421, %cst_88 {dimension_numbers = #tpu.dot_dimension_numbers<[1], [0], [0], [1], [0, 0, 1, 1], [], []>} : vector<16x32xbf16>, vector<32x64xbf16>, vector<16x64xf32> -> vector<16x64xf32>
    %424 = arith.addf %423, %54 : vector<16x64xf32>
    %cst_89 = arith.constant dense<0xFF800000> : vector<16xf32>
    %425 = vector.multi_reduction <maximumf>, %424, %cst_89 [1] : vector<16x64xf32> to vector<16xf32>
    %426 = vector.shape_cast %425 : vector<16xf32> to vector<16x1xf32>
    %427 = vector.broadcast %426 : vector<16x1xf32> to vector<16x64xf32>
    %428 = arith.subf %424, %427 : vector<16x64xf32>
    %429 = math.exp %428 : vector<16x64xf32>
    %430 = tpu.concatenate %417, %417, %417, %417 in 0 : vector<16x32xf32>, vector<16x32xf32>, vector<16x32xf32>, vector<16x32xf32> -> vector<64x32xf32>
    %431 = arith.mulf %430, %36 : vector<64x32xf32>
    %432 = tpu.concatenate %431, %36 in 1 : vector<64x32xf32>, vector<64x32xf32> -> vector<64x64xf32>
    %433 = arith.truncf %432 : vector<64x64xf32> to vector<64x64xbf16>
    %434 = arith.truncf %429 : vector<16x64xf32> to vector<16x64xbf16>
    %cst_90 = arith.constant dense<0.000000e+00> : vector<16x64xf32>
    %435 = tpu.matmul %434, %433, %cst_90 {dimension_numbers = #tpu.dot_dimension_numbers<[1], [0], [0], [1], [0, 0, 1, 1], [], []>} : vector<16x64xbf16>, vector<64x64xbf16>, vector<16x64xf32> -> vector<16x64xf32>
    %436 = vector.extract_strided_slice %435 {offsets = [0, 0], sizes = [16, 32], strides = [1, 1]} : vector<16x64xf32> to vector<16x32xf32>
    %437 = vector.extract_strided_slice %435 {offsets = [0, 32], sizes = [16, 32], strides = [1, 1]} : vector<16x64xf32> to vector<16x32xf32>
    %438 = arith.divf %436, %437 : vector<16x32xf32>
    %439 = arith.truncf %438 : vector<16x32xf32> to vector<16x32xbf16>
    %cst_91 = arith.constant dense<0.000000e+00> : vector<16x32xf32>
    %440 = tpu.matmul %439, %4, %cst_91 {dimension_numbers = #tpu.dot_dimension_numbers<[1], [0], [0], [1], [0, 0, 1, 1], [], []>} : vector<16x32xbf16>, vector<32x32xbf16>, vector<16x32xf32> -> vector<16x32xf32>
    %441 = arith.addf %390, %440 : vector<16x32xf32>
    %442 = vector.broadcast %10 : vector<1x32xf32> to vector<16x32xf32>
    %443 = arith.addf %441, %442 : vector<16x32xf32>
    %cst_92 = arith.constant dense<0.000000e+00> : vector<16xf32>
    %444 = vector.multi_reduction <add>, %443, %cst_92 [1] : vector<16x32xf32> to vector<16xf32>
    %445 = vector.shape_cast %444 : vector<16xf32> to vector<16x1xf32>
    %cst_93 = arith.constant 3.200000e+01 : f32
    %446 = vector.broadcast %cst_93 : f32 to vector<16x1xf32>
    %447 = arith.divf %445, %446 : vector<16x1xf32>
    %448 = vector.broadcast %447 : vector<16x1xf32> to vector<16x32xf32>
    %449 = arith.subf %443, %448 : vector<16x32xf32>
    %450 = arith.mulf %449, %449 : vector<16x32xf32>
    %cst_94 = arith.constant dense<0.000000e+00> : vector<16xf32>
    %451 = vector.multi_reduction <add>, %450, %cst_94 [1] : vector<16x32xf32> to vector<16xf32>
    %452 = vector.shape_cast %451 : vector<16xf32> to vector<16x1xf32>
    %cst_95 = arith.constant 3.200000e+01 : f32
    %453 = vector.broadcast %cst_95 : f32 to vector<16x1xf32>
    %454 = arith.divf %452, %453 : vector<16x1xf32>
    %cst_96 = arith.constant 9.99999974E-6 : f32
    %455 = vector.broadcast %cst_96 : f32 to vector<16x1xf32>
    %456 = arith.addf %454, %455 : vector<16x1xf32>
    %457 = math.rsqrt %456 : vector<16x1xf32>
    %458 = vector.broadcast %457 : vector<16x1xf32> to vector<16x32xf32>
    %459 = arith.mulf %449, %458 : vector<16x32xf32>
    %460 = vector.broadcast %15 : vector<1x32xf32> to vector<16x32xf32>
    %461 = arith.mulf %459, %460 : vector<16x32xf32>
    %462 = vector.broadcast %16 : vector<1x32xf32> to vector<16x32xf32>
    %463 = arith.addf %461, %462 : vector<16x32xf32>
    %464 = arith.truncf %463 : vector<16x32xf32> to vector<16x32xbf16>
    %cst_97 = arith.constant dense<0.000000e+00> : vector<16x64xf32>
    %465 = tpu.matmul %464, %5, %cst_97 {dimension_numbers = #tpu.dot_dimension_numbers<[1], [0], [0], [1], [0, 0, 1, 1], [], []>} : vector<16x32xbf16>, vector<32x64xbf16>, vector<16x64xf32> -> vector<16x64xf32>
    %466 = vector.broadcast %12 : vector<1x64xf32> to vector<16x64xf32>
    %467 = arith.addf %465, %466 : vector<16x64xf32>
    %cst_98 = arith.constant 0.000000e+00 : f32
    %468 = vector.broadcast %cst_98 : f32 to vector<16x64xf32>
    %469 = arith.maximumf %467, %468 : vector<16x64xf32>
    %470 = arith.truncf %469 : vector<16x64xf32> to vector<16x64xbf16>
    %cst_99 = arith.constant dense<0.000000e+00> : vector<16x32xf32>
    %471 = tpu.matmul %470, %6, %cst_99 {dimension_numbers = #tpu.dot_dimension_numbers<[1], [0], [0], [1], [0, 0, 1, 1], [], []>} : vector<16x64xbf16>, vector<64x32xbf16>, vector<16x32xf32> -> vector<16x32xf32>
    %472 = arith.addf %443, %471 : vector<16x32xf32>
    %473 = vector.broadcast %11 : vector<1x32xf32> to vector<16x32xf32>
    %474 = arith.addf %472, %473 : vector<16x32xf32>
    %cst_100 = arith.constant dense<0.000000e+00> : vector<16xf32>
    %475 = vector.multi_reduction <add>, %474, %cst_100 [1] : vector<16x32xf32> to vector<16xf32>
    %476 = vector.shape_cast %475 : vector<16xf32> to vector<16x1xf32>
    %cst_101 = arith.constant 3.200000e+01 : f32
    %477 = vector.broadcast %cst_101 : f32 to vector<16x1xf32>
    %478 = arith.divf %476, %477 : vector<16x1xf32>
    %479 = vector.broadcast %478 : vector<16x1xf32> to vector<16x32xf32>
    %480 = arith.subf %474, %479 : vector<16x32xf32>
    %481 = arith.mulf %480, %480 : vector<16x32xf32>
    %cst_102 = arith.constant dense<0.000000e+00> : vector<16xf32>
    %482 = vector.multi_reduction <add>, %481, %cst_102 [1] : vector<16x32xf32> to vector<16xf32>
    %483 = vector.shape_cast %482 : vector<16xf32> to vector<16x1xf32>
    %cst_103 = arith.constant 3.200000e+01 : f32
    %484 = vector.broadcast %cst_103 : f32 to vector<16x1xf32>
    %485 = arith.divf %483, %484 : vector<16x1xf32>
    %cst_104 = arith.constant 9.99999974E-6 : f32
    %486 = vector.broadcast %cst_104 : f32 to vector<16x1xf32>
    %487 = arith.addf %485, %486 : vector<16x1xf32>
    %488 = math.rsqrt %487 : vector<16x1xf32>
    %489 = vector.broadcast %488 : vector<16x1xf32> to vector<16x32xf32>
    %490 = arith.mulf %480, %489 : vector<16x32xf32>
    %491 = vector.broadcast %13 : vector<1x32xf32> to vector<16x32xf32>
    %492 = arith.mulf %490, %491 : vector<16x32xf32>
    %493 = vector.broadcast %14 : vector<1x32xf32> to vector<16x32xf32>
    %494 = arith.addf %492, %493 : vector<16x32xf32>
    %495 = arith.truncf %494 : vector<16x32xf32> to vector<16x32xbf16>
    %cst_105 = arith.constant dense<0.000000e+00> : vector<16x128xf32>
    %496 = tpu.matmul %495, %3, %cst_105 {dimension_numbers = #tpu.dot_dimension_numbers<[1], [0], [0], [1], [0, 0, 1, 1], [], []>} : vector<16x32xbf16>, vector<32x128xbf16>, vector<16x128xf32> -> vector<16x128xf32>
    %497 = vector.broadcast %9 : vector<1x128xf32> to vector<16x128xf32>
    %498 = arith.addf %496, %497 : vector<16x128xf32>
    %499 = vector.extract_strided_slice %498 {offsets = [0, 0], sizes = [16, 32], strides = [1, 1]} : vector<16x128xf32> to vector<16x32xf32>
    %500 = vector.extract_strided_slice %498 {offsets = [0, 32], sizes = [16, 32], strides = [1, 1]} : vector<16x128xf32> to vector<16x32xf32>
    %501 = vector.extract_strided_slice %498 {offsets = [0, 64], sizes = [16, 32], strides = [1, 1]} : vector<16x128xf32> to vector<16x32xf32>
    %502 = tpu.transpose %500, [1, 0] : vector<16x32xf32> -> vector<32x16xf32>
    %503 = tpu.concatenate %502, %502, %502, %502 in 1 : vector<32x16xf32>, vector<32x16xf32>, vector<32x16xf32>, vector<32x16xf32> -> vector<32x64xf32>
    %504 = arith.mulf %503, %27 : vector<32x64xf32>
    %505 = arith.truncf %504 : vector<32x64xf32> to vector<32x64xbf16>
    %506 = arith.truncf %499 : vector<16x32xf32> to vector<16x32xbf16>
    %cst_106 = arith.constant dense<0.000000e+00> : vector<16x64xf32>
    %507 = tpu.matmul %506, %505, %cst_106 {dimension_numbers = #tpu.dot_dimension_numbers<[1], [0], [0], [1], [0, 0, 1, 1], [], []>} : vector<16x32xbf16>, vector<32x64xbf16>, vector<16x64xf32> -> vector<16x64xf32>
    %508 = arith.addf %507, %54 : vector<16x64xf32>
    %cst_107 = arith.constant dense<0xFF800000> : vector<16xf32>
    %509 = vector.multi_reduction <maximumf>, %508, %cst_107 [1] : vector<16x64xf32> to vector<16xf32>
    %510 = vector.shape_cast %509 : vector<16xf32> to vector<16x1xf32>
    %511 = vector.broadcast %510 : vector<16x1xf32> to vector<16x64xf32>
    %512 = arith.subf %508, %511 : vector<16x64xf32>
    %513 = math.exp %512 : vector<16x64xf32>
    %514 = tpu.concatenate %501, %501, %501, %501 in 0 : vector<16x32xf32>, vector<16x32xf32>, vector<16x32xf32>, vector<16x32xf32> -> vector<64x32xf32>
    %515 = arith.mulf %514, %36 : vector<64x32xf32>
    %516 = tpu.concatenate %515, %36 in 1 : vector<64x32xf32>, vector<64x32xf32> -> vector<64x64xf32>
    %517 = arith.truncf %516 : vector<64x64xf32> to vector<64x64xbf16>
    %518 = arith.truncf %513 : vector<16x64xf32> to vector<16x64xbf16>
    %cst_108 = arith.constant dense<0.000000e+00> : vector<16x64xf32>
    %519 = tpu.matmul %518, %517, %cst_108 {dimension_numbers = #tpu.dot_dimension_numbers<[1], [0], [0], [1], [0, 0, 1, 1], [], []>} : vector<16x64xbf16>, vector<64x64xbf16>, vector<16x64xf32> -> vector<16x64xf32>
    %520 = vector.extract_strided_slice %519 {offsets = [0, 0], sizes = [16, 32], strides = [1, 1]} : vector<16x64xf32> to vector<16x32xf32>
    %521 = vector.extract_strided_slice %519 {offsets = [0, 32], sizes = [16, 32], strides = [1, 1]} : vector<16x64xf32> to vector<16x32xf32>
    %522 = arith.divf %520, %521 : vector<16x32xf32>
    %523 = arith.truncf %522 : vector<16x32xf32> to vector<16x32xbf16>
    %cst_109 = arith.constant dense<0.000000e+00> : vector<16x32xf32>
    %524 = tpu.matmul %523, %4, %cst_109 {dimension_numbers = #tpu.dot_dimension_numbers<[1], [0], [0], [1], [0, 0, 1, 1], [], []>} : vector<16x32xbf16>, vector<32x32xbf16>, vector<16x32xf32> -> vector<16x32xf32>
    %525 = arith.addf %474, %524 : vector<16x32xf32>
    %526 = vector.broadcast %10 : vector<1x32xf32> to vector<16x32xf32>
    %527 = arith.addf %525, %526 : vector<16x32xf32>
    %cst_110 = arith.constant dense<0.000000e+00> : vector<16xf32>
    %528 = vector.multi_reduction <add>, %527, %cst_110 [1] : vector<16x32xf32> to vector<16xf32>
    %529 = vector.shape_cast %528 : vector<16xf32> to vector<16x1xf32>
    %cst_111 = arith.constant 3.200000e+01 : f32
    %530 = vector.broadcast %cst_111 : f32 to vector<16x1xf32>
    %531 = arith.divf %529, %530 : vector<16x1xf32>
    %532 = vector.broadcast %531 : vector<16x1xf32> to vector<16x32xf32>
    %533 = arith.subf %527, %532 : vector<16x32xf32>
    %534 = arith.mulf %533, %533 : vector<16x32xf32>
    %cst_112 = arith.constant dense<0.000000e+00> : vector<16xf32>
    %535 = vector.multi_reduction <add>, %534, %cst_112 [1] : vector<16x32xf32> to vector<16xf32>
    %536 = vector.shape_cast %535 : vector<16xf32> to vector<16x1xf32>
    %cst_113 = arith.constant 3.200000e+01 : f32
    %537 = vector.broadcast %cst_113 : f32 to vector<16x1xf32>
    %538 = arith.divf %536, %537 : vector<16x1xf32>
    %cst_114 = arith.constant 9.99999974E-6 : f32
    %539 = vector.broadcast %cst_114 : f32 to vector<16x1xf32>
    %540 = arith.addf %538, %539 : vector<16x1xf32>
    %541 = math.rsqrt %540 : vector<16x1xf32>
    %542 = vector.broadcast %541 : vector<16x1xf32> to vector<16x32xf32>
    %543 = arith.mulf %533, %542 : vector<16x32xf32>
    %544 = vector.broadcast %15 : vector<1x32xf32> to vector<16x32xf32>
    %545 = arith.mulf %543, %544 : vector<16x32xf32>
    %546 = vector.broadcast %16 : vector<1x32xf32> to vector<16x32xf32>
    %547 = arith.addf %545, %546 : vector<16x32xf32>
    %548 = arith.truncf %547 : vector<16x32xf32> to vector<16x32xbf16>
    %cst_115 = arith.constant dense<0.000000e+00> : vector<16x64xf32>
    %549 = tpu.matmul %548, %5, %cst_115 {dimension_numbers = #tpu.dot_dimension_numbers<[1], [0], [0], [1], [0, 0, 1, 1], [], []>} : vector<16x32xbf16>, vector<32x64xbf16>, vector<16x64xf32> -> vector<16x64xf32>
    %550 = vector.broadcast %12 : vector<1x64xf32> to vector<16x64xf32>
    %551 = arith.addf %549, %550 : vector<16x64xf32>
    %cst_116 = arith.constant 0.000000e+00 : f32
    %552 = vector.broadcast %cst_116 : f32 to vector<16x64xf32>
    %553 = arith.maximumf %551, %552 : vector<16x64xf32>
    %554 = arith.truncf %553 : vector<16x64xf32> to vector<16x64xbf16>
    %cst_117 = arith.constant dense<0.000000e+00> : vector<16x32xf32>
    %555 = tpu.matmul %554, %6, %cst_117 {dimension_numbers = #tpu.dot_dimension_numbers<[1], [0], [0], [1], [0, 0, 1, 1], [], []>} : vector<16x64xbf16>, vector<64x32xbf16>, vector<16x32xf32> -> vector<16x32xf32>
    %556 = arith.addf %527, %555 : vector<16x32xf32>
    %557 = vector.broadcast %11 : vector<1x32xf32> to vector<16x32xf32>
    %558 = arith.addf %556, %557 : vector<16x32xf32>
    %cst_118 = arith.constant dense<0.000000e+00> : vector<16xf32>
    %559 = vector.multi_reduction <add>, %558, %cst_118 [1] : vector<16x32xf32> to vector<16xf32>
    %560 = vector.shape_cast %559 : vector<16xf32> to vector<16x1xf32>
    %cst_119 = arith.constant 3.200000e+01 : f32
    %561 = vector.broadcast %cst_119 : f32 to vector<16x1xf32>
    %562 = arith.divf %560, %561 : vector<16x1xf32>
    %563 = vector.broadcast %562 : vector<16x1xf32> to vector<16x32xf32>
    %564 = arith.subf %558, %563 : vector<16x32xf32>
    %565 = arith.mulf %564, %564 : vector<16x32xf32>
    %cst_120 = arith.constant dense<0.000000e+00> : vector<16xf32>
    %566 = vector.multi_reduction <add>, %565, %cst_120 [1] : vector<16x32xf32> to vector<16xf32>
    %567 = vector.shape_cast %566 : vector<16xf32> to vector<16x1xf32>
    %cst_121 = arith.constant 3.200000e+01 : f32
    %568 = vector.broadcast %cst_121 : f32 to vector<16x1xf32>
    %569 = arith.divf %567, %568 : vector<16x1xf32>
    %cst_122 = arith.constant 9.99999974E-6 : f32
    %570 = vector.broadcast %cst_122 : f32 to vector<16x1xf32>
    %571 = arith.addf %569, %570 : vector<16x1xf32>
    %572 = math.rsqrt %571 : vector<16x1xf32>
    %573 = vector.broadcast %572 : vector<16x1xf32> to vector<16x32xf32>
    %574 = arith.mulf %564, %573 : vector<16x32xf32>
    %575 = vector.broadcast %17 : vector<1x32xf32> to vector<16x32xf32>
    %576 = arith.mulf %574, %575 : vector<16x32xf32>
    %577 = vector.broadcast %18 : vector<1x32xf32> to vector<16x32xf32>
    %578 = arith.addf %576, %577 : vector<16x32xf32>
    %c0_123 = arith.constant 0 : index
    %c0_124 = arith.constant 0 : index
    %579 = vector.load %arg2[%c0_123, %c0_124] : memref<16x32xf32, #tpu.memory_space<vmem>>, vector<16x32xf32>
    tpu.vector_store %arg2[%c0_123, %c0_124], %578 {strides = array<i32>} : memref<16x32xf32, #tpu.memory_space<vmem>>, vector<16x32xf32>,
    return
  }
}

</mosaic_0001>

<bundles_post_ra>
// kernel: tpu_custom_call.1
= control target key start
LH: loop header
LB: loop body
LE: loop exit
PB: predicated region body
PF: predicated region fallthrough
CT: control target
= control target key end

     0   :  { %7 = vsyncpa [#allocation3], 0  ;;  %s4564_s0 = inlined_call_operand.hbm [shape: f32[24,32], index: 0, kind: input, shape index: {}]   ;;  %s4565_s1 = inlined_call_operand.hbm [shape: bf16[112,128], index: 1, kind: input, shape index: {}]   ;;  %s4566_s2 = inlined_call_operand.hbm [shape: f32[16,32], index: 2, kind: output, shape index: {}]  }
   0x1   :  { %8 = vsyncpa [#allocation6], 0 }
   0x2   :  { %9 = vsyncpa [#allocation4], 0  ;;  %s14_s11 = sshll.u32 %s4564_s0, 4  ;;  %s3283_s12 = smov [#allocation2]   ;;  %s15_s11 = int_to_ptr.hbm [resolvable:$true] %s14_s11 }
   0x3   :  { %s16_s13 = sshll.u32 %s3283_s12, 4  ;;  %s27_s16 = sshll.u32 %s4565_s1, 4  ;;  %s17_s13 = int_to_ptr.vmem [resolvable:$true] %s16_s13  ;;  %s28_s16 = int_to_ptr.hbm [resolvable:$true] %s27_s16 }
   0x4   :  { %s3284_s17 = smov 128   ;;  %s3285_s18 = smov 8  }
   0x5   :  { %22 = dma.hbm_to_vmem [thread:$0]  %s15_s11, 384, %s17_s13, [#allocation3], %s3284_s17, %s3284_s17, %s3285_s18  }
   0x6   :  { %s3286_s19 = smov [#allocation5]   ;;  %s3287_s21 = smov 64  }
   0x7   :  { %s29_s20 = sshll.u32 %s3286_s19, 4  ;;  %s3288_s0 = smov 4   ;;  %s30_s20 = int_to_ptr.vmem [resolvable:$true] %s29_s20 }
   0x8   :  { %35 = dma.hbm_to_vmem [thread:$0]  %s28_s16, 896, %s30_s20, [#allocation6], %s3287_s21, %s3287_s21, %s3288_s0  }
   0x9   :  { %3277 = dma.done.wait [#allocation3], 384  }
   0xa   :  { %3278 = vsyncadd [#allocation3], 4294966912 }
   0xb   :  { %3279 = dma.done.wait [#allocation6], 896  }
   0xc   :  { %3280 = vsyncadd [#allocation6], 4294966400  ;;  %vm135_vm0 = vcmask 261120   ;;  %v3323_v0 = vld [vmem:[#allocation2] sm:$0xff]  ;;  %v3327_v2 = vld [vmem:[#allocation2 + $0x8] sm:$0xff]  ;;  %v3289_v4 = vmov 32.0   ;;  %v62_v60 = vlaneseq }
   0xd   :  { %v148_v1 = vsel %vm135_vm0, %v3323_v0, 0.0  ;;  %v151_v3 = vsel %vm135_vm0, %v3327_v2, 0.0  ;;  %3095 = vrcp.f32 %v3289_v4  ;;  %v60_v7 = vld [vmem:[#allocation5 + $0x30] sm:$0xf]  ;;  %s3290_s1 = smov 96   ;;  %v3346_v24 = vld [vmem:[#allocation5 + $0x8] sm:$0xff] }
   0xe   :  { %149 = vadd.xlane.f32.xlu0 %v148_v1  ;;  %v3331_v8 = vunpack.c.l.bf16 %v60_v7  ;;  %231 = vmatpush.bf16.msra.mxu0 %v3346_v24  ;;  %v3349_v26 = vld [vmem:[#allocation5] sm:$0xff]  ;;  %v3374_v61 = vshrl.u32 %v62_v60, 7  ;;  %v3376_v62 = vand.u32 127, %v62_v60  ;;  %s3292_s22 = smov 32   ;;  %s3293_s23 = smov 16  }
   0xf   :  { %s3294_s24 = smov 48   ;;  %s3296_s25 = smov [#allocation7]  }
  0x10   :  { %4585 = vst [vmem:[#allocation11_spill] sm:$0xff] %v3331_v8  ;;  %v3334_v10 = vperm.slane %v3331_v8, 2  ;;  %v3362_v54 = vperm.slane %v3331_v8, 0  ;;  %v88_v63 = vadd.s32 48, %v3374_v61  ;;  %v89_v1 = vadd.s32 56, %v3374_v61  ;;  %s2827_s26 = sshll.u32 %s3296_s25, 4  ;;  %s2828_s26 = int_to_ptr.vmem [resolvable:$true] %s2827_s26 }
  0x11   :  { %s2829_s29 = sshll.u32 %s4566_s2, 4  ;;  %s2830_s29 = int_to_ptr.hbm [resolvable:$true] %s2829_s29 }
  0x12   :  { %203 = vrot.lane.b32.xlu2 %v3334_v10, %s3290_s1  ;;  %232 = vmatpush.bf16.msra.mxu0 %v3349_v26  ;;  %v96_v4 = vshra.s32 %v88_v63, 4 }
  0x13   :  { %v3096_v5 = vpop.eup %3095 }
  0x14   :  { %v155_v6 = vmul.f32 32.0, %v3096_v5  ;;  %vm159_vm1 = vweird.f32 %v3096_v5 }
  0x16   :  { %152 = vadd.xlane.f32.xlu0 %v151_v3  ;;  %v156_v9 = vsub.f32 1.0, %v155_v6  ;;  %v3381_v3 = vshra.s32 %v3376_v62, 3  ;;  %v3291_v6 = vmov 0.0  }
  0x18   :  { %v157_v11 = vmul.f32 %v3096_v5, %v156_v9  ;;  %vm105_vm8 = vcmp.eq.s32.totalorder %v96_v4, %v3381_v3 }
  0x19   :  { %v2853_v7 = vsel %vm105_vm8, 1.0, %v3291_v6 }
  0x1a   :  { %v158_v12 = vadd.f32 %v3096_v5, %v157_v11 }
  0x1c   :  { %v3338_v13 = vsel %vm159_vm1, %v3096_v5, %v158_v12  ;;  %v97_v5 = vshra.s32 %v89_v1, 4 }
  0x1e   :  { %vm106_vm9 = vcmp.eq.s32.totalorder %v97_v5, %v3381_v3 }
  0x1f   :  { %v2854_v9 = vsel %vm106_vm9, 1.0, %v3291_v6 }
  0x20   :  { %v2960_v11 = vpack.i.bf16 %v2854_v9, %v2853_v7 }
  0x6c   :  { %v3355_v49 = vpop.permute.xlu2 %203 }
  0x81   :  { %v150_v14 = vpop.xlane.xlu0 %149 }
  0x82   :  { %v161_v15 = vmul.f32 %v3338_v13, %v150_v14 }
  0x84   :  { %v163_v16 = vsub.f32 %v3323_v0, %v161_v15 }
  0x86   :  { %v165_v17 = vmul.f32 %v163_v16, %v163_v16 }
  0x88   :  { %v167_v18 = vsel %vm135_vm0, %v165_v17, 0.0 }
  0x89   :  { %168 = vadd.xlane.f32.xlu1 %v167_v18  ;;  %v153_v19 = vpop.xlane.xlu0 %152  ;;  %v3413_v18 = vadd.s32 8, %v3374_v61 }
  0x8a   :  { %v162_v20 = vmul.f32 %v3338_v13, %v153_v19  ;;  %v90_v19 = vshra.s32 %v3374_v61, 4 }
  0x8c   :  { %v164_v21 = vsub.f32 %v3327_v2, %v162_v20  ;;  %v91_v20 = vshra.s32 %v3413_v18, 4  ;;  %vm99_vm10 = vcmp.eq.s32.totalorder %v90_v19, %v3381_v3  ;;  %v68_v19 = vshra.s32 %v3413_v18, 3 }
  0x8e   :  { %v166_v22 = vmul.f32 %v164_v21, %v164_v21  ;;  %vm100_vm11 = vcmp.eq.s32.totalorder %v91_v20, %v3381_v3 }
  0x90   :  { %v170_v23 = vsel %vm135_vm0, %v166_v22, 0.0  ;;  %v2848_v22 = vsel %vm100_vm11, 1.0, %v3291_v6 }
  0x91   :  { %171 = vadd.xlane.f32.xlu1 %v170_v23 }
  0xfc   :  { %v169_v25 = vpop.xlane.xlu1 %168 }
  0xfd   :  { %v173_v27 = vmul.f32 %v169_v25, %v3338_v13  ;;  %v86_v25 = vadd.s32 32, %v3374_v61 }
  0xff   :  { %v175_v28 = vadd.f32 1e-05, %v173_v27  ;;  %v87_v27 = vadd.s32 40, %v3374_v61 }
 0x101   :  { %3097 = vrsqrt.f32 %v175_v28  ;;  %vm183_vm3 = vweird.f32 %v175_v28 }
 0x104   :  { %v172_v29 = vpop.xlane.xlu1 %171 }
 0x105   :  { %v174_v30 = vmul.f32 %v172_v29, %v3338_v13  ;;  %v95_v29 = vshra.s32 %v87_v27, 4 }
 0x107   :  { %v3098_v31 = vpop.eup %3097  ;;  %v176_v32 = vadd.f32 1e-05, %v174_v30  ;;  %v3433_v30 = vld [vmem:[#allocation2 + $0x10] sm:$0x1]  ;;  %vm104_vm13 = vcmp.eq.s32.totalorder %v95_v29, %v3381_v3 }
 0x108   :  { %v178_v33 = vmul.f32 %v3098_v31, %v175_v28  ;;  %vm184_vm2 = vweird.f32 %v3098_v31  ;;  %v94_v28 = vshra.s32 %v86_v25, 4 }
 0x109   :  { %3099 = vrsqrt.f32 %v176_v32  ;;  %vm185_vm4 = vmor %vm183_vm3, %vm184_vm2  ;;  %vm193_vm6 = vweird.f32 %v176_v32  ;;  %vm133_vm3 = vcmask 130048  }
 0x10a   :  { %v179_v34 = vmul.f32 %v3098_v31, %v178_v33  ;;  %vm103_vm12 = vcmp.eq.s32.totalorder %v94_v28, %v3381_v3 }
 0x10c   :  { %v180_v35 = vmul.f32 0.5, %v179_v34  ;;  %v65_v34 = vadd.s32 16, %v3374_v61 }
 0x10e   :  { %v181_v36 = vsub.f32 1.5, %v180_v35  ;;  %v66_v35 = vadd.s32 24, %v3374_v61  ;;  %v69_v63 = vshra.s32 %v65_v34, 3 }
 0x10f   :  { %v3100_v37 = vpop.eup %3099 }
 0x110   :  { %v182_v38 = vmul.f32 %v3098_v31, %v181_v36  ;;  %v188_v39 = vmul.f32 %v3100_v37, %v176_v32  ;;  %vm194_vm5 = vweird.f32 %v3100_v37  ;;  %v2852_v32 = vsel %vm104_vm13, 1.0, %v3291_v6 }
 0x111   :  { %vm195_vm7 = vmor %vm193_vm6, %vm194_vm5  ;;  %v92_v36 = vshra.s32 %v65_v34, 4  ;;  %v70_v60 = vshra.s32 %v66_v35, 3 }
 0x112   :  { %v189_v40 = vmul.f32 %v3100_v37, %v188_v39  ;;  %v186_v41 = vsel %vm185_vm4, %v3098_v31, %v182_v38  ;;  %v2851_v31 = vsel %vm103_vm12, 1.0, %v3291_v6  ;;  %vm137_vm4 = vcmask 392192  }
 0x113   :  { %v197_v44 = vmul.f32 %v186_v41, %v163_v16  ;;  %v2940_v33 = vpack.i.bf16 %v2852_v32, %v2851_v31  ;;  %vm101_vm14 = vcmp.eq.s32.totalorder %v92_v36, %v3381_v3 }
 0x114   :  { %v190_v42 = vmul.f32 0.5, %v189_v40  ;;  %v2849_v38 = vsel %vm101_vm14, 1.0, %v3291_v6 }
 0x115   :  { %v200_v48 = vmul.f32 %v3334_v10, %v197_v44 }
 0x116   :  { %v191_v43 = vsub.f32 1.5, %v190_v42 }
 0x117   :  { %v206_v51 = vadd.f32 %v3355_v49, %v200_v48 }
 0x118   :  { %v192_v45 = vmul.f32 %v3100_v37, %v191_v43 }
 0x11a   :  { %v196_v46 = vsel %vm195_vm7, %v3100_v37, %v192_v45  ;;  %v93_v37 = vshra.s32 %v66_v35, 4 }
 0x11b   :  { %v198_v47 = vmul.f32 %v196_v46, %v164_v21  ;;  %v2847_v21 = vsel %vm99_vm10, 1.0, %v3291_v6  ;;  %vm355_vm10 = vcmask 523264  }
 0x11c   :  { %v3425_v23 = vpack.i.bf16 %v2848_v22, %v2847_v21  ;;  %vm102_vm15 = vcmp.eq.s32.totalorder %v93_v37, %v3381_v3  ;;  %v67_v21 = vshra.s32 %v3374_v61, 3 }
 0x11d   :  { %v201_v50 = vmul.f32 %v3334_v10, %v198_v47  ;;  %v2850_v39 = vsel %vm102_vm15, 1.0, %v3291_v6 }
 0x11e   :  { %v2945_v41 = vpack.i.bf16 %v2850_v39, %v2849_v38 }
 0x11f   :  { %v207_v52 = vadd.f32 %v3355_v49, %v201_v50 }
 0x121   :  { %v208_v53 = vpack.c.bf16 %v207_v52, %v206_v51 }
 0x123   :  { %2863 = vmatmul.msk.bf16.vlgmr.msra.gmra.mxu0 %vm135_vm0, %v208_v53 }
 0x1a0   :  { %v234_v55 = vpop.f32.mrf.mxu0 }
 0x1a1   :  { %v3365_v56 = vadd.f32 %v234_v55, %v3362_v54 }
 0x1a3   :  { %241 = vrot.lane.b32.xlu2 %v3365_v56, %s3290_s1 }
 0x1a8   :  { %v236_v57 = vpop.f32.mrf.mxu0 }
 0x1a9   :  { %v3370_v58 = vadd.f32 %v236_v57, %v3362_v54 }
 0x1ab   :  { %243 = vrot.lane.b32.xlu0 %v3370_v58, %s3290_s1 }
 0x1fd   :  { %v242_v59 = vpop.permute.xlu2 %241 }
 0x1fe   :  { %247 = vxpose.xlu1.b32.start [1/2] (short) (narrow) %v242_v59, 32  ;;  %v73_v59 = vshra.s32 %v3376_v62, 4 }
 0x200   :  { %vm77_vm1 = vcmp.eq.s32.totalorder %v70_v60, %v73_v59  ;;  %vm76_vm2 = vcmp.eq.s32.totalorder %v69_v63, %v73_v59  ;;  %vm75_vm5 = vcmp.eq.s32.totalorder %v68_v19, %v73_v59  ;;  %vm74_vm6 = vcmp.eq.s32.totalorder %v67_v21, %v73_v59 }
 0x201   :  { %v3477_v62 = vsel %vm76_vm2, 1.0, %v3291_v6  ;;  %v3496_v32 = vsel %vm74_vm6, 1.0, %v3291_v6  ;;  %v3500_v34 = vsel %vm75_vm5, 1.0, %v3291_v6 }
 0x21d   :  { %v244_v12 = vpop.permute.xlu0 %243 }
 0x21e   :  { %248 = vxpose.xlu1.b32.end [2/2] (short) (narrow) %v244_v12, 32  ;;  %v3480_v12 = vsel %vm77_vm1, 1.0, %v3291_v6  ;;  %v337_v6 = vpack.c.bf16 %v3370_v58, %v3365_v56 }
 0x288   :  { %2936 = vrot.lane.b32.xlu1 %v2960_v11, %s3287_s21 }
 0x290   :  { %535 = vrot.lane.b32.xlu1 %v3346_v24, %s3292_s22 }
 0x2ba   :  { %v3390_v14 = vpop.trf.xlu1 }
 0x2bb   :  { %283 = vrot.lane.b32.xlu2 %v3390_v14, %s3293_s23 }
 0x2c2   :  { %v3394_v15 = vpop.trf.xlu1 }
 0x2c3   :  { %295 = vrot.lane.b32.xlu2 %v3390_v14, %s3292_s22  ;;  %285 = vrot.lane.b32.xlu0 %v3394_v15, %s3293_s23 }
 0x2ca   :  { %v3400_v16 = vpop.trf.xlu1 }
 0x2cb   :  { %297 = vrot.lane.b32.xlu0 %v3394_v15, %s3292_s22  ;;  %287 = vrot.lane.b32.xlu2 %v3400_v16, %s3293_s23 }
 0x2d2   :  { %v3406_v17 = vpop.trf.xlu1 }
 0x2d3   :  { %299 = vrot.lane.b32.xlu2 %v3400_v16, %s3292_s22  ;;  %301 = vrot.lane.b32.xlu0 %v3406_v17, %s3292_s22 }
 0x2db   :  { %311 = vrot.lane.b32.xlu2 %v3400_v16, %s3294_s24  ;;  %313 = vrot.lane.b32.xlu0 %v3406_v17, %s3294_s24 }
 0x2e3   :  { %309 = vrot.lane.b32.xlu0 %v3394_v15, %s3294_s24  ;;  %289 = vrot.lane.b32.xlu2 %v3406_v17, %s3293_s23 }
 0x2eb   :  { %127 = vrot.lane.b32.xlu0 %v3433_v30, %s3292_s22  ;;  %307 = vrot.lane.b32.xlu2 %v3390_v14, %s3294_s24 }
 0x2f3   :  { %2941 = vrot.lane.b32.xlu0 %v2940_v33, %s3287_s21  ;;  %124 = vrot.lane.b32.xlu2 %v3433_v30, %s3293_s23 }
 0x2fa   :  { %v2937_v40 = vpop.permute.xlu1 %2936 }
 0x2fb   :  { %2951 = vrot.lane.b32.xlu0 %v3425_v23, %s3287_s21  ;;  %130 = vrot.lane.b32.xlu2 %v3433_v30, %s3294_s24  ;;  %v3456_v42 = vunpack.i.h.bf16 %v2937_v40  ;;  %v3458_v43 = vunpack.i.l.bf16 %v2937_v40  ;;  %v139_v40 = vand.u32 1, %v3381_v3 }
 0x2fd   :  { %4586 = vst [vmem:[#allocation12_spill] sm:$0xff] %v3456_v42  ;;  %v406_v44 = vmul.f32 %v3458_v43, %v3365_v56  ;;  %v407_v45 = vmul.f32 %v3456_v42, %v3370_v58  ;;  %vm3514_vm7 = vcmp.eq.s32.totalorder %v67_v21, %v139_v40  ;;  %vm141_vm11 = vcmp.eq.s32.totalorder %v68_v19, %v139_v40 }
 0x2fe   :  { %4587 = vst [vmem:[#allocation13_spill] sm:$0xff] %v3458_v43 }
 0x2ff   :  { %v2955_v46 = vpack.i.bf16 %v407_v45, %v406_v44 }
 0x303   :  { %2961 = vrot.lane.b32.xlu0 %v2960_v11, %s3292_s22  ;;  %2946 = vrot.lane.b32.xlu2 %v2945_v41, %s3287_s21 }
 0x30b   :  { %2956 = vrot.lane.b32.xlu2 %v2955_v46, %s3287_s21  ;;  %2971 = vrot.lane.b32.xlu0 %v2940_v33, %s3292_s22 }
 0x313   :  { %2981 = vrot.lane.b32.xlu0 %v2945_v41, %s3292_s22 }
 0x315   :  { %v284_v47 = vpop.permute.xlu2 %283 }
 0x316   :  { %v319_v28 = vsel %vm133_vm3, %v3390_v14, %v284_v47 }
 0x31d   :  { %v296_v48 = vpop.permute.xlu2 %295 }
 0x31e   :  { %v323_v29 = vsel %vm135_vm0, %v319_v28, %v296_v48 }
 0x325   :  { %v288_v50 = vpop.permute.xlu2 %287 }
 0x326   :  { %v321_v5 = vsel %vm133_vm3, %v3400_v16, %v288_v50 }
 0x32d   :  { %v300_v51 = vpop.permute.xlu2 %299 }
 0x32e   :  { %v325_v7 = vsel %vm135_vm0, %v321_v5, %v300_v51 }
 0x335   :  { %v286_v52 = vpop.permute.xlu0 %285  ;;  %v312_v53 = vpop.permute.xlu2 %311 }
 0x336   :  { %v329_v9 = vsel %vm137_vm4, %v325_v7, %v312_v53  ;;  %v320_v61 = vsel %vm133_vm3, %v3394_v15, %v286_v52 }
 0x337   :  { %v333_v25 = vmul.f32 %v3477_v62, %v329_v9 }
 0x33d   :  { %v298_v55 = vpop.permute.xlu0 %297  ;;  %v290_v57 = vpop.permute.xlu2 %289 }
 0x33e   :  { %v322_v11 = vsel %vm133_vm3, %v3406_v17, %v290_v57  ;;  %v324_v35 = vsel %vm135_vm0, %v320_v61, %v298_v55 }
 0x345   :  { %v302_v1 = vpop.permute.xlu0 %301  ;;  %v308_v4 = vpop.permute.xlu2 %307 }
 0x346   :  { %v326_v20 = vsel %vm135_vm0, %v322_v11, %v302_v1  ;;  %v327_v33 = vsel %vm137_vm4, %v323_v29, %v308_v4 }
 0x347   :  { %v331_v37 = vmul.f32 %v3496_v32, %v327_v33 }
 0x34d   :  { %v314_v16 = vpop.permute.xlu0 %313  ;;  %v125_v31 = vpop.permute.xlu2 %124 }
 0x34e   :  { %v330_v22 = vsel %vm137_vm4, %v326_v20, %v314_v16  ;;  %v134_v15 = vsel %vm133_vm3, %v3433_v30, %v125_v31 }
 0x34f   :  { %v334_v27 = vmul.f32 %v3480_v12, %v330_v22 }
 0x351   :  { %v336_v17 = vpack.c.bf16 %v334_v27, %v333_v25 }
 0x353   :  { %347 = vmatpush.bf16.msra.mxu1 %v336_v17 }
 0x355   :  { %v310_v36 = vpop.permute.xlu0 %309  ;;  %v131_v41 = vpop.permute.xlu2 %130 }
 0x356   :  { %v328_v14 = vsel %vm137_vm4, %v324_v35, %v310_v36 }
 0x357   :  { %v332_v38 = vmul.f32 %v3500_v34, %v328_v14 }
 0x359   :  { %v335_v39 = vpack.c.bf16 %v332_v38, %v331_v37 }
 0x35b   :  { %348 = vmatpush.bf16.msra.mxu1 %v335_v39 }
 0x35d   :  { %v128_v44 = vpop.permute.xlu0 %127  ;;  %v2947_v52 = vpop.permute.xlu2 %2946 }
 0x35e   :  { %v136_v45 = vsel %vm135_vm0, %v134_v15, %v128_v44  ;;  %2864 = vmatmul.msk.bf16.vlgmr.msra.gmra.mxu1 %vm135_vm0, %v337_v6  ;;  %v3534_v57 = vunpack.i.h.bf16 %v2947_v52  ;;  %v3536_v59 = vunpack.i.l.bf16 %v2947_v52 }
 0x35f   :  { %v138_v46 = vsel %vm137_vm4, %v136_v45, %v131_v41 }
 0x360   :  { %v142_v48 = vperm.slane %v138_v46, 0  ;;  %4594 = vst [vmem:[#allocation16_spill] sm:$0xff] %v3534_v57  ;;  %v402_v1 = vmul.f32 %v3536_v59, %v3365_v56  ;;  %v403_v4 = vmul.f32 %v3534_v57, %v3370_v58 }
 0x361   :  { %4595 = vst [vmem:[#allocation17_spill] sm:$0xff] %v3536_v59 }
 0x362   :  { %vm3518_vm8 = vcmp.gt.f32.partialorder %v142_v48, 0.0  ;;  %v2975_v5 = vpack.i.bf16 %v403_v4, %v402_v1  ;;  %v3295_v48 = vmov -1e+09  }
 0x363   :  { %vm144_vm9 = vmand %vm3514_vm7, %vm3518_vm8 }
 0x364   :  { %vm145_vm12 = vmand %vm141_vm11, %vm3518_vm8 }
 0x365   :  { %v2942_v3 = vpop.permute.xlu0 %2941  ;;  %v2957_v7 = vpop.permute.xlu2 %2956 }
 0x366   :  { %v3526_v50 = vunpack.i.h.bf16 %v2942_v3  ;;  %v3528_v51 = vunpack.i.l.bf16 %v2942_v3  ;;  %v2959_v11 = vunpack.i.h.bf16 %v2957_v7  ;;  %v2958_v20 = vunpack.i.l.bf16 %v2957_v7 }
 0x367   :  { %v3573_v3 = vsel %vm144_vm9, 0.0, %v3295_v48 }
 0x368   :  { %4592 = vst [vmem:[#allocation14_spill] sm:$0xff] %v3526_v50  ;;  %v404_v53 = vmul.f32 %v3528_v51, %v3365_v56  ;;  %v405_v55 = vmul.f32 %v3526_v50, %v3370_v58 }
 0x369   :  { %4593 = vst [vmem:[#allocation15_spill] sm:$0xff] %v3528_v51 }
 0x36a   :  { %v2965_v60 = vpack.i.bf16 %v405_v55, %v404_v53 }
 0x36c   :  { %2966 = vrot.lane.b32.xlu2 %v2965_v60, %s3287_s21  ;;  %v3581_v60 = vsel %vm145_vm12, 0.0, %v3295_v48 }
 0x36d   :  { %v2952_v63 = vpop.permute.xlu0 %2951 }
 0x36e   :  { %v3587_v7 = vunpack.i.l.bf16 %v2952_v63 }
 0x370   :  { %4597 = vst [vmem:[#allocation19_spill] sm:$0xff] %v3587_v7  ;;  %v400_v18 = vmul.f32 %v3587_v7, %v3365_v56 }
 0x374   :  { %2976 = vrot.lane.b32.xlu2 %v2975_v5, %s3287_s21  ;;  %v3585_v5 = vunpack.i.h.bf16 %v2952_v63 }
 0x375   :  { %v2962_v9 = vpop.permute.xlu0 %2961 }
 0x376   :  { %v3544_v21 = vunpack.i.h.bf16 %v2962_v9  ;;  %v3546_v16 = vunpack.i.l.bf16 %v2962_v9  ;;  %4596 = vst [vmem:[#allocation18_spill] sm:$0xff] %v3585_v5  ;;  %v401_v19 = vmul.f32 %v3585_v5, %v3370_v58 }
 0x378   :  { %v470_v22 = vsel %vm135_vm0, %v2958_v20, %v3546_v16  ;;  %v471_v25 = vsel %vm135_vm0, %v2959_v11, %v3544_v21  ;;  %v2985_v40 = vpack.i.bf16 %v401_v19, %v400_v18 }
 0x379   :  { %v475_v27 = vpack.c.bf16 %v471_v25, %v470_v22 }
 0x37b   :  { %484 = vmatpush.bf16.msra.mxu2 %v475_v27 }
 0x37d   :  { %v2972_v17 = vpop.permute.xlu0 %2971 }
 0x37e   :  { %v3552_v28 = vunpack.i.h.bf16 %v2972_v17  ;;  %v3554_v29 = vunpack.i.l.bf16 %v2972_v17 }
 0x385   :  { %v2982_v37 = vpop.permute.xlu0 %2981 }
 0x386   :  { %v3560_v38 = vunpack.i.h.bf16 %v2982_v37  ;;  %v3562_v39 = vunpack.i.l.bf16 %v2982_v37 }
 0x3c6   :  { %v2967_v31 = vpop.permute.xlu2 %2966 }
 0x3c7   :  { %v2969_v61 = vunpack.i.h.bf16 %v2967_v31  ;;  %v2968_v33 = vunpack.i.l.bf16 %v2967_v31 }
 0x3c9   :  { %v468_v35 = vsel %vm135_vm0, %v2968_v33, %v3554_v29  ;;  %v469_v36 = vsel %vm135_vm0, %v2969_v61, %v3552_v28 }
 0x3ca   :  { %v474_v14 = vpack.c.bf16 %v469_v36, %v468_v35 }
 0x3cc   :  { %485 = vmatpush.bf16.msra.mxu2 %v474_v14 }
 0x3ce   :  { %v2977_v15 = vpop.permute.xlu2 %2976 }
 0x3cf   :  { %v2979_v6 = vunpack.i.h.bf16 %v2977_v15  ;;  %v2978_v41 = vunpack.i.l.bf16 %v2977_v15 }
 0x3d1   :  { %v466_v44 = vsel %vm135_vm0, %v2978_v41, %v3562_v39  ;;  %v467_v45 = vsel %vm135_vm0, %v2979_v6, %v3560_v38  ;;  %v3609_v41 = vpop.permute.xlu1 %535 }
 0x3d2   :  { %v473_v46 = vpack.c.bf16 %v467_v45, %v466_v44  ;;  %548 = vmatpush.bf16.msra.mxu3 %v3609_v41 }
 0x3d4   :  { %486 = vmatpush.bf16.msra.mxu2 %v473_v46 }
 0x3db   :  { %v350_v52 = vpop.f32.mrf.mxu1 }
 0x3dc   :  { %v351_v53 = vadd.f32 %v350_v52, %v3573_v3 }
 0x3de   :  { %v356_v55 = vsel %vm355_vm10, %v351_v53, -inf }
 0x3df   :  { %357 = vmax.xlane.f32.xlu2 %v356_v55 }
 0x3e3   :  { %v352_v47 = vpop.f32.mrf.mxu1 }
 0x3e4   :  { %v353_v1 = vadd.f32 %v352_v47, %v3581_v60 }
 0x3e6   :  { %v359_v4 = vsel %vm355_vm10, %v353_v1, -inf }
 0x3e7   :  { %360 = vmax.xlane.f32.xlu0 %v359_v4 }
 0x3f7   :  { %2986 = vrot.lane.b32.xlu2 %v2985_v40, %s3287_s21 }
 0x3fb   :  { %2991 = vrot.lane.b32.xlu0 %v3425_v23, %s3292_s22 }
 0x452   :  { %v358_v9 = vpop.xlane.xlu2 %357 }
 0x453   :  { %v362_v20 = vsub.f32 %v351_v53, %v358_v9 }
 0x455   :  { %v364_v25 = vmul.f32 1.442695, %v362_v20 }
 0x45a   :  { %v361_v30 = vpop.xlane.xlu0 %360  ;;  %v2987_v63 = vpop.permute.xlu2 %2986 }
 0x45b   :  { %v363_v11 = vsub.f32 %v353_v1, %v361_v30  ;;  %v2989_v56 = vunpack.i.h.bf16 %v2987_v63  ;;  %v2988_v17 = vunpack.i.l.bf16 %v2987_v63 }
 0x45d   :  { %v366_v22 = vmul.f32 1.442695, %v363_v11 }
 0x45f   :  { %3101 = vpow2.f32 %v366_v22 }
 0x460   :  { %3103 = vpow2.f32 %v364_v25 }
 0x465   :  { %v3102_v33 = vpop.eup %3101 }
 0x466   :  { %v3104_v36 = vpop.eup %3103 }
 0x467   :  { %v476_v14 = vpack.c.bf16 %v3102_v33, %v3104_v36 }
 0x46d   :  { %v2992_v27 = vpop.permute.xlu0 %2991 }
 0x46e   :  { %v3596_v31 = vunpack.i.h.bf16 %v2992_v27  ;;  %v3598_v58 = vunpack.i.l.bf16 %v2992_v27 }
 0x470   :  { %v464_v61 = vsel %vm135_vm0, %v2988_v17, %v3598_v58  ;;  %v465_v23 = vsel %vm135_vm0, %v2989_v56, %v3596_v31 }
 0x471   :  { %v472_v35 = vpack.c.bf16 %v465_v23, %v464_v61  ;;  %v3619_v61 = vperm.slane %v3331_v8, 1 }
 0x473   :  { %487 = vmatpush.bf16.msra.mxu2 %v472_v35 }
 0x476   :  { %2865 = vmatmul.msk.bf16.vlgmr.msra.gmra.mxu2 %vm355_vm10, %v476_v14 }
 0x4f9   :  { %v489_v37 = vpop.f32.mrf.mxu2 }
 0x4fa   :  { %496 = vrot.lane.b32.xlu2 %v489_v37, %s3290_s1 }
 0x501   :  { %v491_v15 = vpop.f32.mrf.mxu2 }
 0x502   :  { %498 = vrot.lane.b32.xlu0 %v491_v15, %s3290_s1  ;;  %533 = vrot.lane.b32.xlu2 %v3349_v26, %s3292_s22 }
 0x554   :  { %v497_v6 = vpop.permute.xlu2 %496 }
 0x555   :  { %3105 = vrcp.f32 %v497_v6  ;;  %v513_v4 = vand.u32 2147483648, %v497_v6  ;;  %vm507_vm14 = vweird.f32 %v497_v6  ;;  %v511_v18 = vand.u32 2147483647, %v497_v6 }
 0x557   :  { %v514_v9 = vor.u32 1.1754944e-38, %v513_v4  ;;  %vm512_vm2 = vcmp.eq.f32.partialorder %v511_v18, 8.507059e+37  ;;  %v3645_v4 = vld [vmem:[#allocation5 + $0x10] sm:$0xff] }
 0x55b   :  { %v3106_v45 = vpop.eup %3105 }
 0x55c   :  { %v3612_v44 = vpop.permute.xlu2 %533  ;;  %v503_v46 = vmul.f32 %v3106_v45, %v497_v6  ;;  %vm508_vm13 = vweird.f32 %v3106_v45 }
 0x55d   :  { %549 = vmatpush.bf16.msra.mxu3 %v3612_v44  ;;  %vm509_vm15 = vmor %vm507_vm14, %vm508_vm13 }
 0x55e   :  { %v504_v48 = vsub.f32 1.0, %v503_v46 }
 0x560   :  { %v505_v53 = vmul.f32 %v3106_v45, %v504_v48  ;;  %v2919_v48 = vld [vmem:[#allocation5 + $0x20] sm:$0xff] }
 0x561   :  { %756 = vmatpush.bf16.msrb.mxu3 %v3346_v24 }
 0x562   :  { %v506_v47 = vadd.f32 %v3106_v45, %v505_v53 }
 0x564   :  { %v510_v30 = vsel %vm509_vm15, %v3106_v45, %v506_v47 }
 0x565   :  { %757 = vmatpush.bf16.msrb.mxu3 %v3349_v26  ;;  %v515_v20 = vsel %vm512_vm2, %v514_v9, %v510_v30 }
 0x566   :  { %v516_v27 = vmul.f32 %v515_v20, %v489_v37 }
 0x574   :  { %v499_v52 = vpop.permute.xlu0 %498 }
 0x575   :  { %3107 = vrcp.f32 %v499_v52  ;;  %v528_v40 = vand.u32 2147483648, %v499_v52  ;;  %v526_v26 = vand.u32 2147483647, %v499_v52  ;;  %vm522_vm5 = vweird.f32 %v499_v52 }
 0x577   :  { %v529_v22 = vor.u32 1.1754944e-38, %v528_v40  ;;  %vm527_vm7 = vcmp.eq.f32.partialorder %v526_v26, 8.507059e+37  ;;  %v2920_v40 = vld [vmem:[#allocation5 + $0x28] sm:$0xff] }
 0x57b   :  { %v3108_v55 = vpop.eup %3107 }
 0x57c   :  { %v518_v1 = vmul.f32 %v3108_v55, %v499_v52  ;;  %vm523_vm1 = vweird.f32 %v3108_v55  ;;  %v3637_v52 = vld [vmem:[#allocation5 + $0x18] sm:$0xff] }
 0x57d   :  { %vm524_vm6 = vmor %vm522_vm5, %vm523_vm1  ;;  %641 = vmatpush.bf16.msrb.mxu0 %v3637_v52 }
 0x57e   :  { %v519_v19 = vsub.f32 1.0, %v518_v1 }
 0x580   :  { %v520_v24 = vmul.f32 %v3108_v55, %v519_v19 }
 0x581   :  { %642 = vmatpush.bf16.msrb.mxu0 %v3645_v4 }
 0x582   :  { %v521_v11 = vadd.f32 %v3108_v55, %v520_v24 }
 0x584   :  { %v525_v25 = vsel %vm524_vm6, %v3108_v55, %v521_v11 }
 0x585   :  { %v530_v63 = vsel %vm527_vm7, %v529_v22, %v525_v25 }
 0x586   :  { %v531_v56 = vmul.f32 %v530_v63, %v491_v15 }
 0x588   :  { %v532_v17 = vpack.c.bf16 %v531_v56, %v516_v27 }
 0x58a   :  { %2866 = vmatmul.msk.bf16.vlgmr.msra.gmra.mxu3 %vm135_vm0, %v532_v17 }
 0x58b   :  { %1080 = vmatpush.bf16.msra.mxu3 %v3637_v52 }
 0x58f   :  { %1081 = vmatpush.bf16.msra.mxu3 %v3645_v4 }
 0x60d   :  { %v551_v23 = vpop.f32.mrf.mxu3 }
 0x60e   :  { %v556_v33 = vadd.f32 %v551_v23, %v3323_v0 }
 0x610   :  { %v3623_v35 = vadd.f32 %v3619_v61, %v556_v33 }
 0x612   :  { %v561_v36 = vsel %vm135_vm0, %v3623_v35, 0.0 }
 0x613   :  { %562 = vadd.xlane.f32.xlu0 %v561_v36 }
 0x615   :  { %v553_v14 = vpop.f32.mrf.mxu3 }
 0x616   :  { %v557_v37 = vadd.f32 %v553_v14, %v3327_v2 }
 0x618   :  { %v3629_v15 = vadd.f32 %v3619_v61, %v557_v37 }
 0x61a   :  { %v564_v6 = vsel %vm135_vm0, %v3629_v15, 0.0 }
 0x61b   :  { %565 = vadd.xlane.f32.xlu1 %v564_v6 }
 0x634   :  { %605 = vrot.lane.b32.xlu1 %v3334_v10, %s3287_s21 }
 0x63c   :  { %666 = vrot.lane.b32.xlu1 %v2919_v48, %s3287_s21 }
 0x644   :  { %662 = vrot.lane.b32.xlu1 %v3645_v4, %s3287_s21 }
 0x686   :  { %v563_v0 = vpop.xlane.xlu0 %562 }
 0x687   :  { %v567_v45 = vmul.f32 %v563_v0, %v3338_v13 }
 0x689   :  { %v569_v46 = vsub.f32 %v3623_v35, %v567_v45 }
 0x68b   :  { %v571_v53 = vmul.f32 %v569_v46, %v569_v46 }
 0x68d   :  { %v573_v2 = vsel %vm135_vm0, %v571_v53, 0.0 }
 0x68e   :  { %574 = vadd.xlane.f32.xlu2 %v573_v2  ;;  %v566_v55 = vpop.xlane.xlu1 %565 }
 0x68f   :  { %v568_v47 = vmul.f32 %v566_v55, %v3338_v13 }
 0x691   :  { %v570_v1 = vsub.f32 %v3629_v15, %v568_v47 }
 0x693   :  { %v572_v18 = vmul.f32 %v570_v1, %v570_v1 }
 0x695   :  { %v576_v19 = vsel %vm135_vm0, %v572_v18, 0.0 }
 0x696   :  { %577 = vadd.xlane.f32.xlu0 %v576_v19 }
 0x6a6   :  { %610 = vrot.lane.b32.xlu2 %v3334_v10, %s3292_s22  ;;  %v3663_v56 = vpop.permute.xlu1 %605 }
 0x6aa   :  { %668 = vrot.lane.b32.xlu0 %v2920_v40, %s3287_s21 }
 0x6ae   :  { %629 = vrot.lane.b32.xlu2 %v3619_v61, %s3287_s21  ;;  %v3667_v53 = vpop.permute.xlu1 %666 }
 0x6b2   :  { %664 = vrot.lane.b32.xlu0 %v3637_v52, %s3287_s21 }
 0x6ba   :  { %693 = vrot.lane.b32.xlu0 %v3619_v61, %s3290_s1 }
 0x701   :  { %v575_v24 = vpop.xlane.xlu2 %574 }
 0x702   :  { %v579_v30 = vmul.f32 %v575_v24, %v3338_v13 }
 0x704   :  { %v581_v26 = vadd.f32 1e-05, %v579_v30 }
 0x706   :  { %3109 = vrsqrt.f32 %v581_v26  ;;  %vm589_vm9 = vweird.f32 %v581_v26 }
 0x709   :  { %v578_v9 = vpop.xlane.xlu0 %577  ;;  %v3671_v19 = vpop.permute.xlu2 %610 }
 0x70a   :  { %v580_v11 = vmul.f32 %v578_v9, %v3338_v13  ;;  %v3680_v9 = vpop.permute.xlu1 %662 }
 0x70c   :  { %v3110_v20 = vpop.eup %3109  ;;  %v582_v22 = vadd.f32 1e-05, %v580_v11 }
 0x70d   :  { %v584_v25 = vmul.f32 %v3110_v20, %v581_v26  ;;  %vm590_vm8 = vweird.f32 %v3110_v20 }
 0x70e   :  { %3111 = vrsqrt.f32 %v582_v22  ;;  %vm591_vm11 = vmor %vm589_vm9, %vm590_vm8  ;;  %vm599_vm13 = vweird.f32 %v582_v22 }
 0x70f   :  { %v585_v63 = vmul.f32 %v3110_v20, %v584_v25 }
 0x711   :  { %v586_v27 = vmul.f32 0.5, %v585_v63  ;;  %v3686_v11 = vpop.permute.xlu2 %629 }
 0x713   :  { %v587_v17 = vsub.f32 1.5, %v586_v27 }
 0x714   :  { %v3112_v23 = vpop.eup %3111 }
 0x715   :  { %v588_v33 = vmul.f32 %v3110_v20, %v587_v17  ;;  %v594_v36 = vmul.f32 %v3112_v23, %v582_v22  ;;  %vm600_vm12 = vweird.f32 %v3112_v23 }
 0x716   :  { %vm601_vm14 = vmor %vm599_vm13, %vm600_vm12 }
 0x717   :  { %v595_v14 = vmul.f32 %v3112_v23, %v594_v36  ;;  %v592_v37 = vsel %vm591_vm11, %v3110_v20, %v588_v33 }
 0x718   :  { %v603_v45 = vmul.f32 %v592_v37, %v569_v46 }
 0x719   :  { %v596_v6 = vmul.f32 0.5, %v595_v14 }
 0x71a   :  { %v608_v18 = vmul.f32 %v3663_v56, %v603_v45 }
 0x71b   :  { %v597_v0 = vsub.f32 1.5, %v596_v6 }
 0x71c   :  { %v3665_v48 = vpop.permute.xlu0 %668  ;;  %v613_v24 = vadd.f32 %v3671_v19, %v608_v18 }
 0x71d   :  { %v598_v2 = vmul.f32 %v3112_v23, %v597_v0  ;;  %681 = vmatpush.bf16.msrb.mxu1 %v3665_v48 }
 0x71f   :  { %v602_v55 = vsel %vm601_vm14, %v3112_v23, %v598_v2 }
 0x720   :  { %v604_v47 = vmul.f32 %v602_v55, %v570_v1 }
 0x721   :  { %682 = vmatpush.bf16.msrb.mxu1 %v3667_v53 }
 0x722   :  { %v609_v40 = vmul.f32 %v3663_v56, %v604_v47 }
 0x724   :  { %v3675_v46 = vpop.permute.xlu0 %664  ;;  %v614_v30 = vadd.f32 %v3671_v19, %v609_v40 }
 0x725   :  { %683 = vmatpush.bf16.msrb.mxu1 %v3675_v46 }
 0x726   :  { %v615_v26 = vpack.c.bf16 %v614_v30, %v613_v24 }
 0x728   :  { %2875 = vmatmul.msk.bf16.vlgmr.msrb.gmra.mxu0 %vm135_vm0, %v615_v26 }
 0x729   :  { %684 = vmatpush.bf16.msrb.mxu1 %v3680_v9 }
 0x72c   :  { %v3691_v33 = vpop.permute.xlu0 %693 }
 0x72d   :  { %1010 = vmatpush.bf16.msra.mxu1 %v3609_v41 }
 0x731   :  { %1011 = vmatpush.bf16.msra.mxu1 %v3612_v44 }
 0x7a5   :  { %v644_v1 = vpop.f32.mrf.mxu0 }
 0x7a6   :  { %v645_v20 = vadd.f32 %v644_v1, %v3686_v11 }
 0x7a8   :  { %v649_v63 = vmax.f32 %v645_v20, 0.0 }
 0x7ad   :  { %v646_v22 = vpop.f32.mrf.mxu0 }
 0x7ae   :  { %v647_v25 = vadd.f32 %v646_v22, %v3686_v11 }
 0x7b0   :  { %v650_v27 = vmax.f32 %v647_v25, 0.0 }
 0x7b2   :  { %v651_v17 = vpack.c.bf16 %v650_v27, %v649_v63 }
 0x7b4   :  { %2884 = vmatmul.msk.bf16.vlgmr.msrb.gmra.mxu1 %vm355_vm10, %v651_v17 }
 0x831   :  { %v686_v23 = vpop.f32.mrf.mxu1 }
 0x832   :  { %v691_v36 = vadd.f32 %v686_v23, %v3623_v35 }
 0x834   :  { %v3695_v14 = vadd.f32 %v3691_v33, %v691_v36 }
 0x836   :  { %v698_v37 = vsel %vm135_vm0, %v3695_v14, 0.0 }
 0x837   :  { %699 = vadd.xlane.f32.xlu2 %v698_v37 }
 0x839   :  { %v688_v6 = vpop.f32.mrf.mxu1 }
 0x83a   :  { %v692_v0 = vadd.f32 %v688_v6, %v3629_v15 }
 0x83c   :  { %v3701_v45 = vadd.f32 %v3691_v33, %v692_v0 }
 0x83e   :  { %v701_v2 = vsel %vm135_vm0, %v3701_v45, 0.0 }
 0x83f   :  { %702 = vadd.xlane.f32.xlu1 %v701_v2 }
 0x8aa   :  { %v700_v55 = vpop.xlane.xlu2 %699 }
 0x8ab   :  { %v704_v35 = vmul.f32 %v700_v55, %v3338_v13 }
 0x8ad   :  { %v706_v47 = vsub.f32 %v3695_v14, %v704_v35 }
 0x8af   :  { %v708_v18 = vmul.f32 %v706_v47, %v706_v47 }
 0x8b1   :  { %v710_v40 = vsel %vm135_vm0, %v708_v18, 0.0 }
 0x8b2   :  { %711 = vadd.xlane.f32.xlu0 %v710_v40  ;;  %v703_v24 = vpop.xlane.xlu1 %702 }
 0x8b3   :  { %v705_v30 = vmul.f32 %v703_v24, %v3338_v13 }
 0x8b5   :  { %v707_v15 = vsub.f32 %v3701_v45, %v705_v30 }
 0x8b7   :  { %v709_v26 = vmul.f32 %v707_v15, %v707_v15 }
 0x8b9   :  { %v713_v1 = vsel %vm135_vm0, %v709_v26, 0.0 }
 0x8ba   :  { %714 = vadd.xlane.f32.xlu2 %v713_v1 }
 0x925   :  { %v712_v20 = vpop.xlane.xlu0 %711 }
 0x926   :  { %v716_v22 = vmul.f32 %v712_v20, %v3338_v13 }
 0x928   :  { %v718_v25 = vadd.f32 1e-05, %v716_v22 }
 0x92a   :  { %3113 = vrsqrt.f32 %v718_v25  ;;  %vm726_vm1 = vweird.f32 %v718_v25 }
 0x92d   :  { %v715_v63 = vpop.xlane.xlu2 %714 }
 0x92e   :  { %v717_v27 = vmul.f32 %v715_v63, %v3338_v13 }
 0x930   :  { %v3114_v17 = vpop.eup %3113  ;;  %v719_v23 = vadd.f32 1e-05, %v717_v27 }
 0x931   :  { %v721_v36 = vmul.f32 %v3114_v17, %v718_v25  ;;  %vm727_vm15 = vweird.f32 %v3114_v17 }
 0x932   :  { %3115 = vrsqrt.f32 %v719_v23  ;;  %vm728_vm2 = vmor %vm726_vm1, %vm727_vm15  ;;  %vm736_vm6 = vweird.f32 %v719_v23 }
 0x933   :  { %v722_v37 = vmul.f32 %v3114_v17, %v721_v36 }
 0x935   :  { %v723_v6 = vmul.f32 0.5, %v722_v37 }
 0x937   :  { %v724_v0 = vsub.f32 1.5, %v723_v6 }
 0x938   :  { %v3116_v2 = vpop.eup %3115 }
 0x939   :  { %v725_v55 = vmul.f32 %v3114_v17, %v724_v0  ;;  %v731_v35 = vmul.f32 %v3116_v2, %v719_v23  ;;  %vm737_vm5 = vweird.f32 %v3116_v2 }
 0x93a   :  { %vm738_vm7 = vmor %vm736_vm6, %vm737_vm5 }
 0x93b   :  { %v732_v18 = vmul.f32 %v3116_v2, %v731_v35  ;;  %v729_v40 = vsel %vm728_vm2, %v3114_v17, %v725_v55 }
 0x93c   :  { %v740_v26 = vmul.f32 %v729_v40, %v706_v47 }
 0x93d   :  { %v733_v24 = vmul.f32 0.5, %v732_v18 }
 0x93e   :  { %v742_v63 = vmul.f32 %v740_v26, %v3334_v10 }
 0x93f   :  { %v734_v30 = vsub.f32 1.5, %v733_v24 }
 0x940   :  { %v744_v36 = vadd.f32 %v742_v63, %v3355_v49 }
 0x941   :  { %v735_v1 = vmul.f32 %v3116_v2, %v734_v30 }
 0x943   :  { %v739_v20 = vsel %vm738_vm7, %v3116_v2, %v735_v1 }
 0x944   :  { %v741_v22 = vmul.f32 %v739_v20, %v707_v15 }
 0x946   :  { %v743_v27 = vmul.f32 %v741_v22, %v3334_v10 }
 0x948   :  { %v745_v25 = vadd.f32 %v743_v27, %v3355_v49 }
 0x94a   :  { %v746_v37 = vpack.c.bf16 %v745_v25, %v744_v36 }
 0x94c   :  { %2885 = vmatmul.msk.bf16.vlgmr.msrb.gmra.mxu3 %vm135_vm0, %v746_v37 }
 0x9cf   :  { %v759_v17 = vpop.f32.mrf.mxu3 }
 0x9d0   :  { %v3719_v6 = vadd.f32 %v759_v17, %v3362_v54 }
 0x9d2   :  { %766 = vrot.lane.b32.xlu1 %v3719_v6, %s3290_s1  ;;  %v896_v23 = vmul.f32 %v3528_v51, %v3719_v6  ;;  %v898_v0 = vmul.f32 %v3458_v43, %v3719_v6  ;;  %v3732_v2 = vmul.f32 %v3587_v7, %v3719_v6  ;;  %v3748_v24 = vmul.f32 %v3536_v59, %v3719_v6 }
 0x9d7   :  { %v761_v47 = vpop.f32.mrf.mxu3 }
 0x9d8   :  { %v3724_v15 = vadd.f32 %v761_v47, %v3362_v54 }
 0x9da   :  { %768 = vrot.lane.b32.xlu0 %v3724_v15, %s3290_s1  ;;  %v897_v55 = vmul.f32 %v3526_v50, %v3724_v15  ;;  %v899_v35 = vmul.f32 %v3456_v42, %v3724_v15  ;;  %v3744_v40 = vmul.f32 %v3585_v5, %v3724_v15  ;;  %v3752_v30 = vmul.f32 %v3534_v57, %v3724_v15 }
 0x9dc   :  { %v3000_v26 = vpack.i.bf16 %v897_v55, %v896_v23  ;;  %v2995_v1 = vpack.i.bf16 %v899_v35, %v898_v0 }
 0xa44   :  { %v767_v63 = vpop.permute.xlu1 %766 }
 0xa45   :  { %772 = vxpose.xlu2.b32.start [1/2] (short) (narrow) %v767_v63, 32 }
 0xa4c   :  { %v769_v27 = vpop.permute.xlu0 %768 }
 0xa4d   :  { %773 = vxpose.xlu2.b32.end [2/2] (short) (narrow) %v769_v27, 32 }
 0xade   :  { %v788_v36 = vpop.trf.xlu2 }
 0xadf   :  { %820 = vrot.lane.b32.xlu2 %v788_v36, %s3292_s22  ;;  %808 = vrot.lane.b32.xlu0 %v788_v36, %s3293_s23 }
 0xae6   :  { %v789_v25 = vpop.trf.xlu2 }
 0xae7   :  { %822 = vrot.lane.b32.xlu0 %v789_v25, %s3292_s22  ;;  %810 = vrot.lane.b32.xlu1 %v789_v25, %s3293_s23 }
 0xaee   :  { %v790_v37 = vpop.trf.xlu2 }
 0xaef   :  { %812 = vrot.lane.b32.xlu0 %v790_v37, %s3293_s23 }
 0xaf6   :  { %v791_v17 = vpop.trf.xlu2 }
 0xaf7   :  { %824 = vrot.lane.b32.xlu0 %v790_v37, %s3292_s22  ;;  %814 = vrot.lane.b32.xlu1 %v791_v17, %s3293_s23 }
 0xaff   :  { %836 = vrot.lane.b32.xlu0 %v790_v37, %s3294_s24  ;;  %826 = vrot.lane.b32.xlu1 %v791_v17, %s3292_s22 }
 0xb07   :  { %834 = vrot.lane.b32.xlu0 %v789_v25, %s3294_s24  ;;  %838 = vrot.lane.b32.xlu1 %v791_v17, %s3294_s24 }
 0xb0f   :  { %832 = vrot.lane.b32.xlu1 %v788_v36, %s3294_s24  ;;  %3001 = vrot.lane.b32.xlu0 %v3000_v26, %s3287_s21 }
 0xb17   :  { %2996 = vrot.lane.b32.xlu1 %v2995_v1, %s3287_s21 }
 0xb51   :  { %v809_v47 = vpop.permute.xlu0 %808 }
 0xb59   :  { %v823_v23 = vpop.permute.xlu0 %822  ;;  %v811_v0 = vpop.permute.xlu1 %810 }
 0xb5a   :  { %v845_v42 = vsel %vm133_vm3, %v789_v25, %v811_v0 }
 0xb61   :  { %v813_v55 = vpop.permute.xlu0 %812 }
 0xb62   :  { %v846_v20 = vsel %vm133_vm3, %v790_v37, %v813_v55  ;;  %v844_v37 = vsel %vm133_vm3, %v788_v36, %v809_v47 }
 0xb69   :  { %v825_v35 = vpop.permute.xlu0 %824  ;;  %v815_v63 = vpop.permute.xlu1 %814 }
 0xb6a   :  { %v850_v18 = vsel %vm135_vm0, %v846_v20, %v825_v35  ;;  %v847_v8 = vsel %vm133_vm3, %v791_v17, %v815_v63  ;;  %v849_v20 = vsel %vm135_vm0, %v845_v42, %v823_v23  ;;  %v821_v17 = vpop.permute.xlu2 %820 }
 0xb71   :  { %v827_v27 = vpop.permute.xlu1 %826  ;;  %v837_v22 = vpop.permute.xlu0 %836 }
 0xb72   :  { %v854_v5 = vsel %vm137_vm4, %v850_v18, %v837_v22  ;;  %v851_v26 = vsel %vm135_vm0, %v847_v8, %v827_v27  ;;  %v848_v22 = vsel %vm135_vm0, %v844_v37, %v821_v17 }
 0xb73   :  { %v858_v50 = vmul.f32 %v3477_v62, %v854_v5 }
 0xb79   :  { %v839_v7 = vpop.permute.xlu1 %838  ;;  %v835_v51 = vpop.permute.xlu0 %834 }
 0xb7a   :  { %v855_v1 = vsel %vm137_vm4, %v851_v26, %v839_v7  ;;  %v853_v18 = vsel %vm137_vm4, %v849_v20, %v835_v51  ;;  %v4598_v51 = vpack.c.bf16 %v3724_v15, %v3719_v6 }
 0xb7b   :  { %v859_v57 = vmul.f32 %v3480_v12, %v855_v1  ;;  %v857_v5 = vmul.f32 %v3500_v34, %v853_v18  ;;  %v4599_v18 = vpack.i.bf16 %v3744_v40, %v3732_v2 }
 0xb7d   :  { %v861_v59 = vpack.c.bf16 %v859_v57, %v858_v50 }
 0xb7f   :  { %872 = vmatpush.bf16.msrb.mxu2 %v861_v59 }
 0xb81   :  { %v833_v8 = vpop.permute.xlu1 %832  ;;  %v3002_v0 = vpop.permute.xlu0 %3001 }
 0xb82   :  { %v852_v7 = vsel %vm137_vm4, %v848_v22, %v833_v8  ;;  %v3004_v42 = vunpack.i.h.bf16 %v3002_v0  ;;  %v3003_v57 = vunpack.i.l.bf16 %v3002_v0  ;;  %v4600_v8 = vpack.i.bf16 %v3752_v30, %v3748_v24 }
 0xb83   :  { %v856_v55 = vmul.f32 %v3496_v32, %v852_v7 }
 0xb84   :  { %v936_v63 = vsel %vm135_vm0, %v3003_v57, %v3554_v29  ;;  %v937_v27 = vsel %vm135_vm0, %v3004_v42, %v3552_v28 }
 0xb85   :  { %v860_v25 = vpack.c.bf16 %v857_v5, %v856_v55  ;;  %v942_v6 = vpack.c.bf16 %v937_v27, %v936_v63 }
 0xb87   :  { %873 = vmatpush.bf16.msrb.mxu2 %v860_v25 }
 0xb89   :  { %v2997_v50 = vpop.permute.xlu1 %2996 }
 0xb8a   :  { %v2999_v59 = vunpack.i.h.bf16 %v2997_v50  ;;  %v2998_v36 = vunpack.i.l.bf16 %v2997_v50  ;;  %2886 = vmatmul.msk.bf16.vlgmr.msrb.gmra.mxu2 %vm135_vm0, %v4598_v51 }
 0xb8b   :  { %1098 = vmatpush.bf16.msra.mxu2 %v3665_v48 }
 0xb8c   :  { %v939_v47 = vsel %vm135_vm0, %v2999_v59, %v3544_v21  ;;  %v938_v23 = vsel %vm135_vm0, %v2998_v36, %v3546_v16 }
 0xb8d   :  { %v943_v35 = vpack.c.bf16 %v939_v47, %v938_v23 }
 0xb8f   :  { %1099 = vmatpush.bf16.msra.mxu2 %v3667_v53  ;;  %952 = vmatpush.bf16.msra.mxu0 %v943_v35 }
 0xb93   :  { %1100 = vmatpush.bf16.msra.mxu2 %v3675_v46  ;;  %953 = vmatpush.bf16.msra.mxu0 %v942_v6  ;;  %v3826_v6 = vld [vmem:[#allocation5 + $0x8] sm:$0xff] }
 0xb97   :  { %1101 = vmatpush.bf16.msra.mxu2 %v3680_v9 }
 0xb9b   :  { %1424 = vmatpush.bf16.msrb.mxu2 %v3609_v41 }
 0xb9f   :  { %1425 = vmatpush.bf16.msrb.mxu2 %v3612_v44 }
 0xc0d   :  { %v875_v15 = vpop.f32.mrf.mxu2 }
 0xc0e   :  { %v876_v26 = vadd.f32 %v875_v15, %v3573_v3  ;;  %v3830_v15 = vld [vmem:[#allocation5] sm:$0xff] }
 0xc10   :  { %v880_v1 = vsel %vm355_vm10, %v876_v26, -inf }
 0xc11   :  { %881 = vmax.xlane.f32.xlu0 %v880_v1 }
 0xc15   :  { %v877_v37 = vpop.f32.mrf.mxu2 }
 0xc16   :  { %v878_v20 = vadd.f32 %v877_v37, %v3581_v60 }
 0xc18   :  { %v883_v17 = vsel %vm355_vm10, %v878_v20, -inf }
 0xc19   :  { %884 = vmax.xlane.f32.xlu1 %v883_v17 }
 0xc25   :  { %3011 = vrot.lane.b32.xlu0 %v4599_v18, %s3287_s21 }
 0xc32   :  { %3006 = vrot.lane.b32.xlu1 %v4600_v8, %s3287_s21 }
 0xc84   :  { %v882_v22 = vpop.xlane.xlu0 %881 }
 0xc85   :  { %v886_v55 = vsub.f32 %v876_v26, %v882_v22 }
 0xc87   :  { %v888_v50 = vmul.f32 1.442695, %v886_v55 }
 0xc8c   :  { %v885_v7 = vpop.xlane.xlu1 %884 }
 0xc8d   :  { %v887_v5 = vsub.f32 %v878_v20, %v885_v7 }
 0xc8f   :  { %v890_v25 = vmul.f32 1.442695, %v887_v5 }
 0xc91   :  { %3117 = vpow2.f32 %v890_v25 }
 0xc92   :  { %3119 = vpow2.f32 %v888_v50 }
 0xc97   :  { %v3012_v0 = vpop.permute.xlu0 %3011  ;;  %v3118_v23 = vpop.eup %3117 }
 0xc98   :  { %v3014_v57 = vunpack.i.h.bf16 %v3012_v0  ;;  %v3013_v59 = vunpack.i.l.bf16 %v3012_v0  ;;  %v3120_v63 = vpop.eup %3119 }
 0xc99   :  { %v944_v27 = vpack.c.bf16 %v3118_v23, %v3120_v63 }
 0xc9a   :  { %v932_v30 = vsel %vm135_vm0, %v3013_v59, %v3598_v58  ;;  %v933_v47 = vsel %vm135_vm0, %v3014_v57, %v3596_v31 }
 0xc9b   :  { %v940_v35 = vpack.c.bf16 %v933_v47, %v932_v30 }
 0xca4   :  { %v3007_v42 = vpop.permute.xlu1 %3006 }
 0xca5   :  { %v3009_v36 = vunpack.i.h.bf16 %v3007_v42  ;;  %v3008_v51 = vunpack.i.l.bf16 %v3007_v42 }
 0xca7   :  { %v934_v2 = vsel %vm135_vm0, %v3008_v51, %v3562_v39  ;;  %v935_v40 = vsel %vm135_vm0, %v3009_v36, %v3560_v38 }
 0xca8   :  { %v941_v24 = vpack.c.bf16 %v935_v40, %v934_v2 }
 0xcaa   :  { %954 = vmatpush.bf16.msra.mxu0 %v941_v24 }
 0xcae   :  { %955 = vmatpush.bf16.msra.mxu0 %v940_v35 }
 0xcb1   :  { %2887 = vmatmul.msk.bf16.vlgmr.msra.gmra.mxu0 %vm355_vm10, %v944_v27 }
 0xcb2   :  { %1170 = vmatpush.bf16.msrb.mxu0 %v3826_v6 }
 0xcb6   :  { %1171 = vmatpush.bf16.msrb.mxu0 %v3830_v15 }
 0xcba   :  { %1494 = vmatpush.bf16.msra.mxu0 %v3637_v52 }
 0xcbe   :  { %1495 = vmatpush.bf16.msra.mxu0 %v3645_v4 }
 0xd2e   :  { %v957_v26 = vpop.f32.mrf.mxu0 }
 0xd2f   :  { %964 = vrot.lane.b32.xlu0 %v957_v26, %s3290_s1 }
 0xd36   :  { %v959_v1 = vpop.f32.mrf.mxu0 }
 0xd37   :  { %966 = vrot.lane.b32.xlu1 %v959_v1, %s3290_s1 }
 0xda1   :  { %v965_v37 = vpop.permute.xlu0 %964 }
 0xda2   :  { %3121 = vrcp.f32 %v965_v37  ;;  %v981_v55 = vand.u32 2147483648, %v965_v37  ;;  %vm975_vm9 = vweird.f32 %v965_v37  ;;  %v979_v4 = vand.u32 2147483647, %v965_v37 }
 0xda4   :  { %v982_v59 = vor.u32 1.1754944e-38, %v981_v55  ;;  %vm980_vm13 = vcmp.eq.f32.partialorder %v979_v4, 8.507059e+37 }
 0xda8   :  { %v3122_v20 = vpop.eup %3121 }
 0xda9   :  { %v971_v17 = vmul.f32 %v3122_v20, %v965_v37  ;;  %v967_v18 = vpop.permute.xlu1 %966  ;;  %vm976_vm8 = vweird.f32 %v3122_v20 }
 0xdaa   :  { %3123 = vrcp.f32 %v967_v18  ;;  %vm977_vm11 = vmor %vm975_vm9, %vm976_vm8  ;;  %v996_v0 = vand.u32 2147483648, %v967_v18  ;;  %v994_v57 = vand.u32 2147483647, %v967_v18  ;;  %vm990_vm14 = vweird.f32 %v967_v18 }
 0xdab   :  { %v972_v8 = vsub.f32 1.0, %v971_v17 }
 0xdac   :  { %v997_v2 = vor.u32 1.1754944e-38, %v996_v0  ;;  %vm995_vm1 = vcmp.eq.f32.partialorder %v994_v57, 8.507059e+37 }
 0xdad   :  { %v973_v22 = vmul.f32 %v3122_v20, %v972_v8 }
 0xdaf   :  { %v974_v5 = vadd.f32 %v3122_v20, %v973_v22 }
 0xdb0   :  { %v3124_v7 = vpop.eup %3123 }
 0xdb1   :  { %v986_v52 = vmul.f32 %v3124_v7, %v967_v18  ;;  %v978_v50 = vsel %vm977_vm11, %v3122_v20, %v974_v5  ;;  %vm991_vm12 = vweird.f32 %v3124_v7 }
 0xdb2   :  { %v983_v51 = vsel %vm980_vm13, %v982_v59, %v978_v50  ;;  %vm992_vm15 = vmor %vm990_vm14, %vm991_vm12 }
 0xdb3   :  { %v987_v25 = vsub.f32 1.0, %v986_v52  ;;  %v984_v30 = vmul.f32 %v983_v51, %v957_v26 }
 0xdb5   :  { %v988_v42 = vmul.f32 %v3124_v7, %v987_v25 }
 0xdb7   :  { %v989_v36 = vadd.f32 %v3124_v7, %v988_v42 }
 0xdb9   :  { %v993_v40 = vsel %vm992_vm15, %v3124_v7, %v989_v36 }
 0xdba   :  { %v998_v24 = vsel %vm995_vm1, %v997_v2, %v993_v40 }
 0xdbb   :  { %v999_v47 = vmul.f32 %v998_v24, %v959_v1 }
 0xdbd   :  { %v1000_v23 = vpack.c.bf16 %v999_v47, %v984_v30 }
 0xdbf   :  { %2888 = vmatmul.msk.bf16.vlgmr.msra.gmra.mxu1 %vm135_vm0, %v1000_v23 }
 0xe3c   :  { %v1013_v35 = vpop.f32.mrf.mxu1 }
 0xe3d   :  { %v1018_v63 = vadd.f32 %v1013_v35, %v3695_v14 }
 0xe3f   :  { %v3840_v27 = vadd.f32 %v1018_v63, %v3619_v61 }
 0xe41   :  { %v1022_v37 = vsel %vm135_vm0, %v3840_v27, 0.0 }
 0xe42   :  { %1023 = vadd.xlane.f32.xlu0 %v1022_v37 }
 0xe44   :  { %v1015_v20 = vpop.f32.mrf.mxu1 }
 0xe45   :  { %v1019_v17 = vadd.f32 %v1015_v20, %v3701_v45 }
 0xe47   :  { %v3846_v18 = vadd.f32 %v1019_v17, %v3619_v61 }
 0xe49   :  { %v1025_v26 = vsel %vm135_vm0, %v3846_v18, 0.0 }
 0xe4a   :  { %1026 = vadd.xlane.f32.xlu1 %v1025_v26 }
 0xeb5   :  { %v1024_v1 = vpop.xlane.xlu0 %1023 }
 0xeb6   :  { %v1028_v14 = vmul.f32 %v1024_v1, %v3338_v13 }
 0xeb8   :  { %v1030_v8 = vsub.f32 %v3840_v27, %v1028_v14 }
 0xeba   :  { %v1032_v22 = vmul.f32 %v1030_v8, %v1030_v8 }
 0xebc   :  { %v1034_v7 = vsel %vm135_vm0, %v1032_v22, 0.0 }
 0xebd   :  { %1035 = vadd.xlane.f32.xlu2 %v1034_v7  ;;  %v1027_v5 = vpop.xlane.xlu1 %1026 }
 0xebe   :  { %v1029_v52 = vmul.f32 %v1027_v5, %v3338_v13 }
 0xec0   :  { %v1031_v45 = vsub.f32 %v3846_v18, %v1029_v52 }
 0xec2   :  { %v1033_v55 = vmul.f32 %v1031_v45, %v1031_v45 }
 0xec4   :  { %v1037_v4 = vsel %vm135_vm0, %v1033_v55, 0.0 }
 0xec5   :  { %1038 = vadd.xlane.f32.xlu0 %v1037_v4 }
 0xf30   :  { %v1036_v25 = vpop.xlane.xlu2 %1035 }
 0xf31   :  { %v1040_v0 = vmul.f32 %v1036_v25, %v3338_v13 }
 0xf33   :  { %v1042_v50 = vadd.f32 1e-05, %v1040_v0 }
 0xf35   :  { %3125 = vrsqrt.f32 %v1042_v50  ;;  %vm1050_vm5 = vweird.f32 %v1042_v50 }
 0xf38   :  { %v1039_v42 = vpop.xlane.xlu0 %1038 }
 0xf39   :  { %v1041_v57 = vmul.f32 %v1039_v42, %v3338_v13 }
 0xf3b   :  { %v3126_v59 = vpop.eup %3125  ;;  %v1043_v36 = vadd.f32 1e-05, %v1041_v57 }
 0xf3c   :  { %v1045_v51 = vmul.f32 %v3126_v59, %v1042_v50  ;;  %vm1051_vm2 = vweird.f32 %v3126_v59 }
 0xf3d   :  { %3127 = vrsqrt.f32 %v1043_v36  ;;  %vm1052_vm6 = vmor %vm1050_vm5, %vm1051_vm2  ;;  %vm1060_vm8 = vweird.f32 %v1043_v36 }
 0xf3e   :  { %v1046_v2 = vmul.f32 %v3126_v59, %v1045_v51 }
 0xf40   :  { %v1047_v40 = vmul.f32 0.5, %v1046_v2 }
 0xf42   :  { %v1048_v24 = vsub.f32 1.5, %v1047_v40 }
 0xf43   :  { %v3128_v30 = vpop.eup %3127 }
 0xf44   :  { %v1049_v47 = vmul.f32 %v3126_v59, %v1048_v24  ;;  %v1055_v23 = vmul.f32 %v3128_v30, %v1043_v36  ;;  %vm1061_vm7 = vweird.f32 %v3128_v30 }
 0xf45   :  { %vm1062_vm9 = vmor %vm1060_vm8, %vm1061_vm7 }
 0xf46   :  { %v1056_v35 = vmul.f32 %v3128_v30, %v1055_v23  ;;  %v1053_v63 = vsel %vm1052_vm6, %v3126_v59, %v1049_v47 }
 0xf47   :  { %v1064_v17 = vmul.f32 %v1053_v63, %v1030_v8 }
 0xf48   :  { %v1057_v37 = vmul.f32 0.5, %v1056_v35 }
 0xf49   :  { %v1066_v14 = vmul.f32 %v1064_v17, %v3663_v56 }
 0xf4a   :  { %v1058_v20 = vsub.f32 1.5, %v1057_v37 }
 0xf4b   :  { %v1068_v5 = vadd.f32 %v1066_v14, %v3671_v19 }
 0xf4c   :  { %v1059_v26 = vmul.f32 %v3128_v30, %v1058_v20 }
 0xf4e   :  { %v1063_v1 = vsel %vm1062_vm9, %v3128_v30, %v1059_v26 }
 0xf4f   :  { %v1065_v22 = vmul.f32 %v1063_v1, %v1031_v45 }
 0xf51   :  { %v1067_v7 = vmul.f32 %v1065_v22, %v3663_v56 }
 0xf53   :  { %v1069_v52 = vadd.f32 %v1067_v7, %v3671_v19 }
 0xf55   :  { %v1070_v55 = vpack.c.bf16 %v1069_v52, %v1068_v5 }
 0xf57   :  { %2889 = vmatmul.msk.bf16.vlgmr.msra.gmra.mxu3 %vm135_vm0, %v1070_v55 }
 0xfda   :  { %v1083_v4 = vpop.f32.mrf.mxu3 }
 0xfdb   :  { %v1084_v25 = vadd.f32 %v1083_v4, %v3686_v11 }
 0xfdd   :  { %v1088_v50 = vmax.f32 %v1084_v25, 0.0 }
 0xfe2   :  { %v1085_v8 = vpop.f32.mrf.mxu3 }
 0xfe3   :  { %v1086_v0 = vadd.f32 %v1085_v8, %v3686_v11 }
 0xfe5   :  { %v1089_v42 = vmax.f32 %v1086_v0, 0.0 }
 0xfe7   :  { %v1090_v57 = vpack.c.bf16 %v1089_v42, %v1088_v50 }
 0xfe9   :  { %2890 = vmatmul.msk.bf16.vlgmr.msra.gmra.mxu2 %vm355_vm10, %v1090_v57 }
0x106c   :  { %v1103_v45 = vpop.f32.mrf.mxu2 }
0x106d   :  { %v1108_v59 = vadd.f32 %v1103_v45, %v3840_v27 }
0x106f   :  { %v3868_v36 = vadd.f32 %v1108_v59, %v3691_v33 }
0x1071   :  { %v1112_v51 = vsel %vm135_vm0, %v3868_v36, 0.0 }
0x1072   :  { %1113 = vadd.xlane.f32.xlu1 %v1112_v51 }
0x1074   :  { %v1105_v2 = vpop.f32.mrf.mxu2 }
0x1075   :  { %v1109_v40 = vadd.f32 %v1105_v2, %v3846_v18 }
0x1077   :  { %v3874_v24 = vadd.f32 %v1109_v40, %v3691_v33 }
0x1079   :  { %v1115_v30 = vsel %vm135_vm0, %v3874_v24, 0.0 }
0x107a   :  { %1116 = vadd.xlane.f32.xlu0 %v1115_v30 }
0x10e5   :  { %v1114_v47 = vpop.xlane.xlu1 %1113 }
0x10e6   :  { %v1118_v27 = vmul.f32 %v1114_v47, %v3338_v13 }
0x10e8   :  { %v1120_v23 = vsub.f32 %v3868_v36, %v1118_v27 }
0x10ea   :  { %v1122_v35 = vmul.f32 %v1120_v23, %v1120_v23 }
0x10ec   :  { %v1124_v63 = vsel %vm135_vm0, %v1122_v35, 0.0 }
0x10ed   :  { %1125 = vadd.xlane.f32.xlu1 %v1124_v63  ;;  %v1117_v37 = vpop.xlane.xlu0 %1116 }
0x10ee   :  { %v1119_v20 = vmul.f32 %v1117_v37, %v3338_v13 }
0x10f0   :  { %v1121_v18 = vsub.f32 %v3874_v24, %v1119_v20 }
0x10f2   :  { %v1123_v17 = vmul.f32 %v1121_v18, %v1121_v18 }
0x10f4   :  { %v1127_v26 = vsel %vm135_vm0, %v1123_v17, 0.0 }
0x10f5   :  { %1128 = vadd.xlane.f32.xlu0 %v1127_v26 }
0x1160   :  { %v1126_v1 = vpop.xlane.xlu1 %1125 }
0x1161   :  { %v1130_v14 = vmul.f32 %v1126_v1, %v3338_v13 }
0x1163   :  { %v1132_v22 = vadd.f32 1e-05, %v1130_v14 }
0x1165   :  { %3129 = vrsqrt.f32 %v1132_v22  ;;  %vm1140_vm12 = vweird.f32 %v1132_v22 }
0x1168   :  { %v1129_v7 = vpop.xlane.xlu0 %1128 }
0x1169   :  { %v1131_v5 = vmul.f32 %v1129_v7, %v3338_v13 }
0x116b   :  { %v3130_v52 = vpop.eup %3129  ;;  %v1133_v55 = vadd.f32 1e-05, %v1131_v5  ;;  %v4602_v5 = vld [vmem:[#allocation15_spill] sm:$0xff] }
0x116c   :  { %v1135_v4 = vmul.f32 %v3130_v52, %v1132_v22  ;;  %vm1141_vm11 = vweird.f32 %v3130_v52  ;;  %v4601_v22 = vld [vmem:[#allocation17_spill] sm:$0xff] }
0x116d   :  { %3131 = vrsqrt.f32 %v1133_v55  ;;  %vm1142_vm13 = vmor %vm1140_vm12, %vm1141_vm11  ;;  %vm1150_vm15 = vweird.f32 %v1133_v55 }
0x116e   :  { %v1136_v25 = vmul.f32 %v3130_v52, %v1135_v4 }
0x1170   :  { %v1137_v8 = vmul.f32 0.5, %v1136_v25  ;;  %v4604_v25 = vld [vmem:[#allocation16_spill] sm:$0xff] }
0x1172   :  { %v1138_v0 = vsub.f32 1.5, %v1137_v8 }
0x1173   :  { %v3132_v50 = vpop.eup %3131 }
0x1174   :  { %v1139_v42 = vmul.f32 %v3130_v52, %v1138_v0  ;;  %v1145_v57 = vmul.f32 %v3132_v50, %v1133_v55  ;;  %vm1151_vm14 = vweird.f32 %v3132_v50  ;;  %v4603_v55 = vld [vmem:[#allocation12_spill] sm:$0xff] }
0x1175   :  { %vm1152_vm1 = vmor %vm1150_vm15, %vm1151_vm14 }
0x1176   :  { %v1146_v45 = vmul.f32 %v3132_v50, %v1145_v57  ;;  %v1143_v59 = vsel %vm1142_vm13, %v3130_v52, %v1139_v42  ;;  %v4606_v57 = vld [vmem:[#allocation19_spill] sm:$0xff] }
0x1177   :  { %v1154_v40 = vmul.f32 %v1143_v59, %v1120_v23  ;;  %v4607_v59 = vld [vmem:[#allocation18_spill] sm:$0xff] }
0x1178   :  { %v1147_v51 = vmul.f32 0.5, %v1146_v45 }
0x1179   :  { %v1156_v27 = vmul.f32 %v1154_v40, %v3334_v10 }
0x117a   :  { %v1148_v2 = vsub.f32 1.5, %v1147_v51 }
0x117b   :  { %v1158_v37 = vadd.f32 %v1156_v27, %v3355_v49 }
0x117c   :  { %v1149_v30 = vmul.f32 %v3132_v50, %v1148_v2 }
0x117e   :  { %v1153_v47 = vsel %vm1152_vm1, %v3132_v50, %v1149_v30  ;;  %v4605_v50 = vld [vmem:[#allocation14_spill] sm:$0xff] }
0x117f   :  { %v1155_v35 = vmul.f32 %v1153_v47, %v1121_v18 }
0x1181   :  { %v1157_v63 = vmul.f32 %v1155_v35, %v3334_v10 }
0x1183   :  { %v1159_v20 = vadd.f32 %v1157_v63, %v3355_v49 }
0x1185   :  { %v1160_v17 = vpack.c.bf16 %v1159_v20, %v1158_v37 }
0x1187   :  { %2891 = vmatmul.msk.bf16.vlgmr.msrb.gmra.mxu0 %vm135_vm0, %v1160_v17 }
0x1204   :  { %v1173_v26 = vpop.f32.mrf.mxu0 }
0x1205   :  { %v3892_v1 = vadd.f32 %v1173_v26, %v3362_v54 }
0x1207   :  { %1180 = vrot.lane.b32.xlu1 %v3892_v1, %s3290_s1  ;;  %v1312_v18 = vmul.f32 %v3458_v43, %v3892_v1  ;;  %v1308_v7 = vmul.f32 %v4601_v22, %v3892_v1  ;;  %v3905_v52 = vmul.f32 %v4602_v5, %v3892_v1  ;;  %v3921_v45 = vmul.f32 %v4606_v57, %v3892_v1 }
0x120c   :  { %v1175_v23 = vpop.f32.mrf.mxu0 }
0x120d   :  { %v3897_v14 = vadd.f32 %v1175_v23, %v3362_v54 }
0x120f   :  { %1182 = vrot.lane.b32.xlu0 %v3897_v14, %s3290_s1  ;;  %v1313_v4 = vmul.f32 %v4603_v55, %v3897_v14  ;;  %v1309_v8 = vmul.f32 %v4604_v25, %v3897_v14  ;;  %v3917_v42 = vmul.f32 %v4605_v50, %v3897_v14  ;;  %v3925_v51 = vmul.f32 %v4607_v59, %v3897_v14 }
0x1211   :  { %v3015_v2 = vpack.i.bf16 %v1313_v4, %v1312_v18  ;;  %v3025_v40 = vpack.i.bf16 %v1309_v8, %v1308_v7 }
0x1279   :  { %v1181_v27 = vpop.permute.xlu1 %1180 }
0x127a   :  { %1186 = vxpose.xlu2.b32.start [1/2] (short) (narrow) %v1181_v27, 32 }
0x1281   :  { %v1183_v35 = vpop.permute.xlu0 %1182 }
0x1282   :  { %1187 = vxpose.xlu2.b32.end [2/2] (short) (narrow) %v1183_v35, 32 }
0x1313   :  { %v1202_v63 = vpop.trf.xlu2 }
0x1314   :  { %1234 = vrot.lane.b32.xlu2 %v1202_v63, %s3292_s22  ;;  %1222 = vrot.lane.b32.xlu1 %v1202_v63, %s3293_s23 }
0x131b   :  { %v1203_v37 = vpop.trf.xlu2 }
0x131c   :  { %1236 = vrot.lane.b32.xlu1 %v1203_v37, %s3292_s22  ;;  %1224 = vrot.lane.b32.xlu0 %v1203_v37, %s3293_s23 }
0x1323   :  { %v1204_v20 = vpop.trf.xlu2 }
0x1324   :  { %1226 = vrot.lane.b32.xlu1 %v1204_v20, %s3293_s23 }
0x132b   :  { %v1205_v17 = vpop.trf.xlu2 }
0x132c   :  { %1238 = vrot.lane.b32.xlu1 %v1204_v20, %s3292_s22  ;;  %1228 = vrot.lane.b32.xlu0 %v1205_v17, %s3293_s23 }
0x1334   :  { %1250 = vrot.lane.b32.xlu1 %v1204_v20, %s3294_s24  ;;  %1240 = vrot.lane.b32.xlu0 %v1205_v17, %s3292_s22 }
0x133c   :  { %1248 = vrot.lane.b32.xlu1 %v1203_v37, %s3294_s24  ;;  %1252 = vrot.lane.b32.xlu0 %v1205_v17, %s3294_s24 }
0x1344   :  { %1246 = vrot.lane.b32.xlu0 %v1202_v63, %s3294_s24 }
0x134c   :  { %3016 = vrot.lane.b32.xlu0 %v3015_v2, %s3287_s21 }
0x1354   :  { %3026 = vrot.lane.b32.xlu0 %v3025_v40, %s3287_s21 }
0x1386   :  { %v1223_v26 = vpop.permute.xlu1 %1222 }
0x138e   :  { %v1237_v23 = vpop.permute.xlu1 %1236  ;;  %v1225_v18 = vpop.permute.xlu0 %1224 }
0x138f   :  { %v1259_v50 = vsel %vm133_vm3, %v1203_v37, %v1225_v18 }
0x1396   :  { %v1227_v7 = vpop.permute.xlu1 %1226 }
0x1397   :  { %v1260_v47 = vsel %vm133_vm3, %v1204_v20, %v1227_v7  ;;  %v1258_v20 = vsel %vm133_vm3, %v1202_v63, %v1223_v26 }
0x139e   :  { %v1239_v4 = vpop.permute.xlu1 %1238  ;;  %v1229_v8 = vpop.permute.xlu0 %1228 }
0x139f   :  { %v1264_v30 = vsel %vm135_vm0, %v1260_v47, %v1239_v4  ;;  %v1261_v0 = vsel %vm133_vm3, %v1205_v17, %v1229_v8  ;;  %v1263_v47 = vsel %vm135_vm0, %v1259_v50, %v1237_v23  ;;  %v1235_v17 = vpop.permute.xlu2 %1234 }
0x13a0   :  { %v1262_v7 = vsel %vm135_vm0, %v1258_v20, %v1235_v17 }
0x13a6   :  { %v1241_v27 = vpop.permute.xlu0 %1240  ;;  %v1251_v35 = vpop.permute.xlu1 %1250 }
0x13a7   :  { %v1268_v25 = vsel %vm137_vm4, %v1264_v30, %v1251_v35  ;;  %v1265_v2 = vsel %vm135_vm0, %v1261_v0, %v1241_v27  ;;  %v4609_v35 = vpack.i.bf16 %v3917_v42, %v3905_v52 }
0x13a8   :  { %v1272_v59 = vmul.f32 %v3477_v62, %v1268_v25 }
0x13ae   :  { %v1253_v22 = vpop.permute.xlu0 %1252  ;;  %v1249_v57 = vpop.permute.xlu1 %1248 }
0x13af   :  { %v1269_v40 = vsel %vm137_vm4, %v1265_v2, %v1253_v22  ;;  %v1267_v30 = vsel %vm137_vm4, %v1263_v47, %v1249_v57  ;;  %v4610_v2 = vpack.i.bf16 %v3925_v51, %v3921_v45 }
0x13b0   :  { %v1273_v55 = vmul.f32 %v3480_v12, %v1269_v40  ;;  %v1271_v25 = vmul.f32 %v3500_v34, %v1267_v30 }
0x13b2   :  { %v1275_v43 = vpack.c.bf16 %v1273_v55, %v1272_v59 }
0x13b4   :  { %1286 = vmatpush.bf16.msrb.mxu1 %v1275_v43  ;;  %v4608_v43 = vpack.c.bf16 %v3897_v14, %v3892_v1 }
0x13b6   :  { %v1247_v0 = vpop.permute.xlu0 %1246 }
0x13b7   :  { %v1266_v22 = vsel %vm137_vm4, %v1262_v7, %v1247_v0 }
0x13b8   :  { %v1270_v4 = vmul.f32 %v3496_v32, %v1266_v22 }
0x13ba   :  { %v1274_v37 = vpack.c.bf16 %v1271_v25, %v1270_v4 }
0x13bc   :  { %1287 = vmatpush.bf16.msrb.mxu1 %v1274_v37 }
0x13be   :  { %v3017_v55 = vpop.permute.xlu0 %3016 }
0x13bf   :  { %v3019_v59 = vunpack.i.h.bf16 %v3017_v55  ;;  %v3018_v50 = vunpack.i.l.bf16 %v3017_v55  ;;  %2892 = vmatmul.msk.bf16.vlgmr.msrb.gmra.mxu1 %vm135_vm0, %v4608_v43 }
0x13c0   :  { %1512 = vmatpush.bf16.msra.mxu1 %v3665_v48 }
0x13c1   :  { %v1353_v57 = vsel %vm135_vm0, %v3019_v59, %v3544_v21  ;;  %v1352_v63 = vsel %vm135_vm0, %v3018_v50, %v3546_v16 }
0x13c2   :  { %v1357_v26 = vpack.c.bf16 %v1353_v57, %v1352_v63 }
0x13c4   :  { %1513 = vmatpush.bf16.msra.mxu1 %v3667_v53  ;;  %1366 = vmatpush.bf16.msrb.mxu3 %v1357_v26 }
0x13c6   :  { %v3027_v40 = vpop.permute.xlu0 %3026 }
0x13c7   :  { %v3029_v7 = vunpack.i.h.bf16 %v3027_v40  ;;  %v3028_v22 = vunpack.i.l.bf16 %v3027_v40 }
0x13c8   :  { %1514 = vmatpush.bf16.msra.mxu1 %v3675_v46 }
0x13c9   :  { %v1348_v43 = vsel %vm135_vm0, %v3028_v22, %v3562_v39  ;;  %v1349_v57 = vsel %vm135_vm0, %v3029_v7, %v3560_v38 }
0x13ca   :  { %v1355_v63 = vpack.c.bf16 %v1349_v57, %v1348_v43 }
0x13cc   :  { %1515 = vmatpush.bf16.msra.mxu1 %v3680_v9 }
0x13d0   :  { %1838 = vmatpush.bf16.msrb.mxu1 %v3609_v41 }
0x13d4   :  { %1839 = vmatpush.bf16.msrb.mxu1 %v3612_v44 }
0x143c   :  { %v1289_v1 = vpop.f32.mrf.mxu1 }
0x143d   :  { %v1290_v14 = vadd.f32 %v1289_v1, %v3573_v3 }
0x143f   :  { %v1294_v23 = vsel %vm355_vm10, %v1290_v14, -inf }
0x1440   :  { %1295 = vmax.xlane.f32.xlu1 %v1294_v23 }
0x1444   :  { %v1291_v18 = vpop.f32.mrf.mxu1 }
0x1445   :  { %v1292_v8 = vadd.f32 %v1291_v18, %v3581_v60 }
0x1447   :  { %v1297_v27 = vsel %vm355_vm10, %v1292_v8, -inf }
0x1448   :  { %1298 = vmax.xlane.f32.xlu0 %v1297_v27  ;;  %v4002_v27 = vld [vmem:[#allocation5 + $0x18] sm:$0xff] }
0x1459   :  { %3021 = vrot.lane.b32.xlu1 %v4609_v35, %s3287_s21  ;;  %v4005_v35 = vld [vmem:[#allocation5 + $0x10] sm:$0xff] }
0x145c   :  { %3031 = vrot.lane.b32.xlu0 %v4610_v2, %s3287_s21 }
0x14b3   :  { %v1296_v20 = vpop.xlane.xlu1 %1295 }
0x14b4   :  { %v1300_v30 = vsub.f32 %v1290_v14, %v1296_v20 }
0x14b6   :  { %v1302_v45 = vmul.f32 1.442695, %v1300_v30 }
0x14bb   :  { %v1299_v47 = vpop.xlane.xlu0 %1298 }
0x14bc   :  { %v1301_v17 = vsub.f32 %v1292_v8, %v1299_v47 }
0x14be   :  { %v1304_v37 = vmul.f32 1.442695, %v1301_v17 }
0x14c0   :  { %3133 = vpow2.f32 %v1304_v37 }
0x14c1   :  { %3135 = vpow2.f32 %v1302_v45 }
0x14c6   :  { %v3134_v14 = vpop.eup %3133 }
0x14c7   :  { %v3136_v18 = vpop.eup %3135 }
0x14c8   :  { %v1358_v8 = vpack.c.bf16 %v3134_v14, %v3136_v18 }
0x14cb   :  { %v3022_v0 = vpop.permute.xlu1 %3021 }
0x14cc   :  { %v3024_v25 = vunpack.i.h.bf16 %v3022_v0  ;;  %v3023_v4 = vunpack.i.l.bf16 %v3022_v0 }
0x14ce   :  { %v3032_v55 = vpop.permute.xlu0 %3031  ;;  %v1350_v52 = vsel %vm135_vm0, %v3023_v4, %v3554_v29  ;;  %v1351_v42 = vsel %vm135_vm0, %v3024_v25, %v3552_v28 }
0x14cf   :  { %v1356_v51 = vpack.c.bf16 %v1351_v42, %v1350_v52  ;;  %v3034_v59 = vunpack.i.h.bf16 %v3032_v55  ;;  %v3033_v50 = vunpack.i.l.bf16 %v3032_v55 }
0x14d1   :  { %1367 = vmatpush.bf16.msrb.mxu3 %v1356_v51  ;;  %v1346_v26 = vsel %vm135_vm0, %v3033_v50, %v3598_v58  ;;  %v1347_v1 = vsel %vm135_vm0, %v3034_v59, %v3596_v31 }
0x14d2   :  { %v1354_v23 = vpack.c.bf16 %v1347_v1, %v1346_v26 }
0x14d5   :  { %1368 = vmatpush.bf16.msrb.mxu3 %v1355_v63 }
0x14d9   :  { %1369 = vmatpush.bf16.msrb.mxu3 %v1354_v23 }
0x14dc   :  { %2893 = vmatmul.msk.bf16.vlgmr.msrb.gmra.mxu3 %vm355_vm10, %v1358_v8 }
0x14dd   :  { %1584 = vmatpush.bf16.msra.mxu3 %v3826_v6 }
0x14e1   :  { %1585 = vmatpush.bf16.msra.mxu3 %v3830_v15 }
0x14e5   :  { %1908 = vmatpush.bf16.msrb.mxu3 %v4002_v27 }
0x14e9   :  { %1909 = vmatpush.bf16.msrb.mxu3 %v4005_v35 }
0x155f   :  { %v1371_v2 = vpop.f32.mrf.mxu3 }
0x1560   :  { %1378 = vrot.lane.b32.xlu1 %v1371_v2, %s3290_s1 }
0x1567   :  { %v1373_v40 = vpop.f32.mrf.mxu3 }
0x1568   :  { %1380 = vrot.lane.b32.xlu0 %v1373_v40, %s3290_s1 }
0x15d2   :  { %v1379_v20 = vpop.permute.xlu1 %1378 }
0x15d3   :  { %3137 = vrcp.f32 %v1379_v20  ;;  %v1395_v25 = vand.u32 2147483648, %v1379_v20  ;;  %vm1389_vm5 = vweird.f32 %v1379_v20  ;;  %v1393_v4 = vand.u32 2147483647, %v1379_v20 }
0x15d5   :  { %v1396_v51 = vor.u32 1.1754944e-38, %v1395_v25  ;;  %vm1394_vm8 = vcmp.eq.f32.partialorder %v1393_v4, 8.507059e+37 }
0x15d9   :  { %v3138_v6 = vpop.eup %3137 }
0x15da   :  { %v1385_v47 = vmul.f32 %v3138_v6, %v1379_v20  ;;  %v1381_v17 = vpop.permute.xlu0 %1380  ;;  %vm1390_vm2 = vweird.f32 %v3138_v6 }
0x15db   :  { %3139 = vrcp.f32 %v1381_v17  ;;  %vm1391_vm6 = vmor %vm1389_vm5, %vm1390_vm2  ;;  %v1410_v55 = vand.u32 2147483648, %v1381_v17  ;;  %v1408_v45 = vand.u32 2147483647, %v1381_v17  ;;  %vm1404_vm9 = vweird.f32 %v1381_v17 }
0x15dc   :  { %v1386_v15 = vsub.f32 1.0, %v1385_v47 }
0x15dd   :  { %v1411_v43 = vor.u32 1.1754944e-38, %v1410_v55  ;;  %vm1409_vm12 = vcmp.eq.f32.partialorder %v1408_v45, 8.507059e+37 }
0x15de   :  { %v1387_v30 = vmul.f32 %v3138_v6, %v1386_v15 }
0x15e0   :  { %v1388_v7 = vadd.f32 %v3138_v6, %v1387_v30 }
0x15e1   :  { %v3140_v0 = vpop.eup %3139 }
0x15e2   :  { %v1400_v22 = vmul.f32 %v3140_v0, %v1381_v17  ;;  %v1392_v52 = vsel %vm1391_vm6, %v3138_v6, %v1388_v7  ;;  %vm1405_vm7 = vweird.f32 %v3140_v0 }
0x15e3   :  { %v1397_v50 = vsel %vm1394_vm8, %v1396_v51, %v1392_v52  ;;  %vm1406_vm11 = vmor %vm1404_vm9, %vm1405_vm7 }
0x15e4   :  { %v1401_v37 = vsub.f32 1.0, %v1400_v22  ;;  %v1398_v26 = vmul.f32 %v1397_v50, %v1371_v2 }
0x15e6   :  { %v1402_v42 = vmul.f32 %v3140_v0, %v1401_v37 }
0x15e8   :  { %v1403_v59 = vadd.f32 %v3140_v0, %v1402_v42 }
0x15ea   :  { %v1407_v57 = vsel %vm1406_vm11, %v3140_v0, %v1403_v59 }
0x15eb   :  { %v1412_v63 = vsel %vm1409_vm12, %v1411_v43, %v1407_v57 }
0x15ec   :  { %v1413_v1 = vmul.f32 %v1412_v63, %v1373_v40 }
0x15ee   :  { %v1414_v14 = vpack.c.bf16 %v1413_v1, %v1398_v26 }
0x15f0   :  { %2894 = vmatmul.msk.bf16.vlgmr.msrb.gmra.mxu2 %vm135_vm0, %v1414_v14 }
0x1673   :  { %v1427_v23 = vpop.f32.mrf.mxu2 }
0x1674   :  { %v1432_v18 = vadd.f32 %v1427_v23, %v3868_v36 }
0x1676   :  { %v4013_v8 = vadd.f32 %v1432_v18, %v3619_v61 }
0x1678   :  { %v1436_v20 = vsel %vm135_vm0, %v4013_v8, 0.0 }
0x1679   :  { %1437 = vadd.xlane.f32.xlu1 %v1436_v20 }
0x167b   :  { %v1429_v6 = vpop.f32.mrf.mxu2 }
0x167c   :  { %v1433_v47 = vadd.f32 %v1429_v6, %v3874_v24 }
0x167e   :  { %v4019_v17 = vadd.f32 %v1433_v47, %v3619_v61 }
0x1680   :  { %v1439_v2 = vsel %vm135_vm0, %v4019_v17, 0.0 }
0x1681   :  { %1440 = vadd.xlane.f32.xlu0 %v1439_v2 }
0x16ec   :  { %v1438_v40 = vpop.xlane.xlu1 %1437 }
0x16ed   :  { %v1442_v36 = vmul.f32 %v1438_v40, %v3338_v13 }
0x16ef   :  { %v1444_v15 = vsub.f32 %v4013_v8, %v1442_v36 }
0x16f1   :  { %v1446_v30 = vmul.f32 %v1444_v15, %v1444_v15 }
0x16f3   :  { %v1448_v0 = vsel %vm135_vm0, %v1446_v30, 0.0 }
0x16f4   :  { %1449 = vadd.xlane.f32.xlu2 %v1448_v0  ;;  %v1441_v7 = vpop.xlane.xlu0 %1440 }
0x16f5   :  { %v1443_v22 = vmul.f32 %v1441_v7, %v3338_v13 }
0x16f7   :  { %v1445_v24 = vsub.f32 %v4019_v17, %v1443_v22 }
0x16f9   :  { %v1447_v25 = vmul.f32 %v1445_v24, %v1445_v24 }
0x16fb   :  { %v1451_v4 = vsel %vm135_vm0, %v1447_v25, 0.0 }
0x16fc   :  { %1452 = vadd.xlane.f32.xlu1 %v1451_v4 }
0x1767   :  { %v1450_v37 = vpop.xlane.xlu2 %1449 }
0x1768   :  { %v1454_v55 = vmul.f32 %v1450_v37, %v3338_v13 }
0x176a   :  { %v1456_v52 = vadd.f32 1e-05, %v1454_v55 }
0x176c   :  { %3141 = vrsqrt.f32 %v1456_v52  ;;  %vm1464_vm14 = vweird.f32 %v1456_v52 }
0x176f   :  { %v1453_v42 = vpop.xlane.xlu1 %1452 }
0x1770   :  { %v1455_v45 = vmul.f32 %v1453_v42, %v3338_v13 }
0x1772   :  { %v3142_v51 = vpop.eup %3141  ;;  %v1457_v59 = vadd.f32 1e-05, %v1455_v45 }
0x1773   :  { %v1459_v50 = vmul.f32 %v3142_v51, %v1456_v52  ;;  %vm1465_vm13 = vweird.f32 %v3142_v51 }
0x1774   :  { %3143 = vrsqrt.f32 %v1457_v59  ;;  %vm1466_vm15 = vmor %vm1464_vm14, %vm1465_vm13  ;;  %vm1474_vm2 = vweird.f32 %v1457_v59 }
0x1775   :  { %v1460_v43 = vmul.f32 %v3142_v51, %v1459_v50 }
0x1777   :  { %v1461_v57 = vmul.f32 0.5, %v1460_v43 }
0x1779   :  { %v1462_v63 = vsub.f32 1.5, %v1461_v57 }
0x177a   :  { %v3144_v26 = vpop.eup %3143 }
0x177b   :  { %v1463_v1 = vmul.f32 %v3142_v51, %v1462_v63  ;;  %v1469_v14 = vmul.f32 %v3144_v26, %v1457_v59  ;;  %vm1475_vm1 = vweird.f32 %v3144_v26 }
0x177c   :  { %vm1476_vm5 = vmor %vm1474_vm2, %vm1475_vm1 }
0x177d   :  { %v1470_v23 = vmul.f32 %v3144_v26, %v1469_v14  ;;  %v1467_v18 = vsel %vm1466_vm15, %v3142_v51, %v1463_v1 }
0x177e   :  { %v1478_v47 = vmul.f32 %v1467_v18, %v1444_v15 }
0x177f   :  { %v1471_v20 = vmul.f32 0.5, %v1470_v23 }
0x1780   :  { %v1480_v36 = vmul.f32 %v1478_v47, %v3663_v56 }
0x1781   :  { %v1472_v6 = vsub.f32 1.5, %v1471_v20 }
0x1782   :  { %v1482_v7 = vadd.f32 %v1480_v36, %v3671_v19 }
0x1783   :  { %v1473_v2 = vmul.f32 %v3144_v26, %v1472_v6 }
0x1785   :  { %v1477_v40 = vsel %vm1476_vm5, %v3144_v26, %v1473_v2 }
0x1786   :  { %v1479_v30 = vmul.f32 %v1477_v40, %v1445_v24 }
0x1788   :  { %v1481_v0 = vmul.f32 %v1479_v30, %v3663_v56 }
0x178a   :  { %v1483_v22 = vadd.f32 %v1481_v0, %v3671_v19 }
0x178c   :  { %v1484_v25 = vpack.c.bf16 %v1483_v22, %v1482_v7 }
0x178e   :  { %2895 = vmatmul.msk.bf16.vlgmr.msra.gmra.mxu0 %vm135_vm0, %v1484_v25 }
0x180b   :  { %v1497_v4 = vpop.f32.mrf.mxu0 }
0x180c   :  { %v1498_v37 = vadd.f32 %v1497_v4, %v3686_v11 }
0x180e   :  { %v1502_v52 = vmax.f32 %v1498_v37, 0.0 }
0x1813   :  { %v1499_v15 = vpop.f32.mrf.mxu0 }
0x1814   :  { %v1500_v55 = vadd.f32 %v1499_v15, %v3686_v11 }
0x1816   :  { %v1503_v42 = vmax.f32 %v1500_v55, 0.0 }
0x1818   :  { %v1504_v45 = vpack.c.bf16 %v1503_v42, %v1502_v52 }
0x181a   :  { %2896 = vmatmul.msk.bf16.vlgmr.msra.gmra.mxu1 %vm355_vm10, %v1504_v45 }
0x1897   :  { %v1517_v24 = vpop.f32.mrf.mxu1 }
0x1898   :  { %v1522_v51 = vadd.f32 %v1517_v24, %v4013_v8 }
0x189a   :  { %v4041_v59 = vadd.f32 %v1522_v51, %v3691_v33 }
0x189c   :  { %v1526_v50 = vsel %vm135_vm0, %v4041_v59, 0.0 }
0x189d   :  { %1527 = vadd.xlane.f32.xlu0 %v1526_v50 }
0x189f   :  { %v1519_v43 = vpop.f32.mrf.mxu1 }
0x18a0   :  { %v1523_v57 = vadd.f32 %v1519_v43, %v4019_v17 }
0x18a2   :  { %v4047_v63 = vadd.f32 %v1523_v57, %v3691_v33 }
0x18a4   :  { %v1529_v26 = vsel %vm135_vm0, %v4047_v63, 0.0 }
0x18a5   :  { %1530 = vadd.xlane.f32.xlu1 %v1529_v26 }
0x1910   :  { %v1528_v1 = vpop.xlane.xlu0 %1527 }
0x1911   :  { %v1532_v8 = vmul.f32 %v1528_v1, %v3338_v13 }
0x1913   :  { %v1534_v14 = vsub.f32 %v4041_v59, %v1532_v8 }
0x1915   :  { %v1536_v23 = vmul.f32 %v1534_v14, %v1534_v14 }
0x1917   :  { %v1538_v18 = vsel %vm135_vm0, %v1536_v23, 0.0 }
0x1918   :  { %1539 = vadd.xlane.f32.xlu0 %v1538_v18  ;;  %v1531_v20 = vpop.xlane.xlu1 %1530 }
0x1919   :  { %v1533_v6 = vmul.f32 %v1531_v20, %v3338_v13 }
0x191b   :  { %v1535_v17 = vsub.f32 %v4047_v63, %v1533_v6 }
0x191d   :  { %v1537_v47 = vmul.f32 %v1535_v17, %v1535_v17 }
0x191f   :  { %v1541_v2 = vsel %vm135_vm0, %v1537_v47, 0.0 }
0x1920   :  { %1542 = vadd.xlane.f32.xlu1 %v1541_v2 }
0x198b   :  { %v1540_v40 = vpop.xlane.xlu0 %1539 }
0x198c   :  { %v1544_v36 = vmul.f32 %v1540_v40, %v3338_v13 }
0x198e   :  { %v1546_v30 = vadd.f32 1e-05, %v1544_v36 }
0x1990   :  { %3145 = vrsqrt.f32 %v1546_v30  ;;  %vm1554_vm7 = vweird.f32 %v1546_v30 }
0x1993   :  { %v1543_v0 = vpop.xlane.xlu1 %1542 }
0x1994   :  { %v1545_v7 = vmul.f32 %v1543_v0, %v3338_v13 }
0x1996   :  { %v3146_v22 = vpop.eup %3145  ;;  %v1547_v25 = vadd.f32 1e-05, %v1545_v7  ;;  %v4612_v7 = vld [vmem:[#allocation19_spill] sm:$0xff] }
0x1997   :  { %v1549_v4 = vmul.f32 %v3146_v22, %v1546_v30  ;;  %vm1555_vm6 = vweird.f32 %v3146_v22  ;;  %v4611_v30 = vld [vmem:[#allocation13_spill] sm:$0xff] }
0x1998   :  { %3147 = vrsqrt.f32 %v1547_v25  ;;  %vm1556_vm8 = vmor %vm1554_vm7, %vm1555_vm6  ;;  %vm1564_vm11 = vweird.f32 %v1547_v25 }
0x1999   :  { %v1550_v37 = vmul.f32 %v3146_v22, %v1549_v4 }
0x199b   :  { %v1551_v15 = vmul.f32 0.5, %v1550_v37  ;;  %v4614_v37 = vld [vmem:[#allocation12_spill] sm:$0xff] }
0x199d   :  { %v1552_v55 = vsub.f32 1.5, %v1551_v15 }
0x199e   :  { %v3148_v52 = vpop.eup %3147 }
0x199f   :  { %v1553_v42 = vmul.f32 %v3146_v22, %v1552_v55  ;;  %v1559_v45 = vmul.f32 %v3148_v52, %v1547_v25  ;;  %vm1565_vm9 = vweird.f32 %v3148_v52  ;;  %v4613_v25 = vld [vmem:[#allocation14_spill] sm:$0xff] }
0x19a0   :  { %vm1566_vm12 = vmor %vm1564_vm11, %vm1565_vm9 }
0x19a1   :  { %v1560_v24 = vmul.f32 %v3148_v52, %v1559_v45  ;;  %v1557_v51 = vsel %vm1556_vm8, %v3146_v22, %v1553_v42  ;;  %v4616_v45 = vld [vmem:[#allocation17_spill] sm:$0xff] }
0x19a2   :  { %v1568_v57 = vmul.f32 %v1557_v51, %v1534_v14  ;;  %v4617_v51 = vld [vmem:[#allocation16_spill] sm:$0xff] }
0x19a3   :  { %v1561_v50 = vmul.f32 0.5, %v1560_v24 }
0x19a4   :  { %v1570_v8 = vmul.f32 %v1568_v57, %v3334_v10 }
0x19a5   :  { %v1562_v43 = vsub.f32 1.5, %v1561_v50 }
0x19a6   :  { %v1572_v20 = vadd.f32 %v1570_v8, %v3355_v49 }
0x19a7   :  { %v1563_v26 = vmul.f32 %v3148_v52, %v1562_v43 }
0x19a9   :  { %v1567_v1 = vsel %vm1566_vm12, %v3148_v52, %v1563_v26  ;;  %v4615_v52 = vld [vmem:[#allocation18_spill] sm:$0xff] }
0x19aa   :  { %v1569_v23 = vmul.f32 %v1567_v1, %v1535_v17 }
0x19ac   :  { %v1571_v18 = vmul.f32 %v1569_v23, %v3334_v10 }
0x19ae   :  { %v1573_v6 = vadd.f32 %v1571_v18, %v3355_v49 }
0x19b0   :  { %v1574_v47 = vpack.c.bf16 %v1573_v6, %v1572_v20 }
0x19b2   :  { %2897 = vmatmul.msk.bf16.vlgmr.msra.gmra.mxu3 %vm135_vm0, %v1574_v47 }
0x1a35   :  { %v1587_v2 = vpop.f32.mrf.mxu3 }
0x1a36   :  { %v4065_v40 = vadd.f32 %v1587_v2, %v3362_v54 }
0x1a38   :  { %1594 = vrot.lane.b32.xlu0 %v4065_v40, %s3290_s1  ;;  %v1724_v17 = vmul.f32 %v4602_v5, %v4065_v40  ;;  %v1726_v0 = vmul.f32 %v4611_v30, %v4065_v40  ;;  %v4078_v22 = vmul.f32 %v4612_v7, %v4065_v40  ;;  %v4094_v24 = vmul.f32 %v4616_v45, %v4065_v40 }
0x1a3d   :  { %v1589_v14 = vpop.f32.mrf.mxu3 }
0x1a3e   :  { %v4070_v36 = vadd.f32 %v1589_v14, %v3362_v54 }
0x1a40   :  { %1596 = vrot.lane.b32.xlu1 %v4070_v36, %s3290_s1  ;;  %v1725_v4 = vmul.f32 %v4613_v25, %v4070_v36  ;;  %v1727_v15 = vmul.f32 %v4614_v37, %v4070_v36  ;;  %v4090_v42 = vmul.f32 %v4615_v52, %v4070_v36  ;;  %v4098_v50 = vmul.f32 %v4617_v51, %v4070_v36 }
0x1a42   :  { %v3040_v43 = vpack.i.bf16 %v1725_v4, %v1724_v17  ;;  %v3035_v57 = vpack.i.bf16 %v1727_v15, %v1726_v0 }
0x1aaa   :  { %v1595_v8 = vpop.permute.xlu0 %1594 }
0x1aab   :  { %1600 = vxpose.xlu2.b32.start [1/2] (short) (narrow) %v1595_v8, 32 }
0x1ab2   :  { %v1597_v23 = vpop.permute.xlu1 %1596 }
0x1ab3   :  { %1601 = vxpose.xlu2.b32.end [2/2] (short) (narrow) %v1597_v23, 32 }
0x1b44   :  { %v1616_v18 = vpop.trf.xlu2 }
0x1b45   :  { %1636 = vrot.lane.b32.xlu1 %v1616_v18, %s3293_s23 }
0x1b4c   :  { %v1617_v20 = vpop.trf.xlu2 }
0x1b4d   :  { %1648 = vrot.lane.b32.xlu1 %v1616_v18, %s3292_s22  ;;  %1650 = vrot.lane.b32.xlu2 %v1617_v20, %s3292_s22 }
0x1b4e   :  { %1638 = vrot.lane.b32.xlu0 %v1617_v20, %s3293_s23 }
0x1b54   :  { %v1618_v6 = vpop.trf.xlu2 }
0x1b55   :  { %1652 = vrot.lane.b32.xlu1 %v1618_v6, %s3292_s22 }
0x1b56   :  { %1640 = vrot.lane.b32.xlu0 %v1618_v6, %s3293_s23 }
0x1b5c   :  { %v1619_v47 = vpop.trf.xlu2 }
0x1b5d   :  { %1664 = vrot.lane.b32.xlu1 %v1618_v6, %s3294_s24 }
0x1b5e   :  { %1642 = vrot.lane.b32.xlu0 %v1619_v47, %s3293_s23 }
0x1b65   :  { %1662 = vrot.lane.b32.xlu1 %v1617_v20, %s3294_s24 }
0x1b66   :  { %1654 = vrot.lane.b32.xlu0 %v1619_v47, %s3292_s22 }
0x1b6d   :  { %3041 = vrot.lane.b32.xlu1 %v3040_v43, %s3287_s21 }
0x1b6e   :  { %1666 = vrot.lane.b32.xlu0 %v1619_v47, %s3294_s24 }
0x1b76   :  { %1660 = vrot.lane.b32.xlu0 %v1616_v18, %s3294_s24 }
0x1b7e   :  { %3036 = vrot.lane.b32.xlu0 %v3035_v57, %s3287_s21 }
0x1bb7   :  { %v1637_v2 = vpop.permute.xlu1 %1636 }
0x1bbf   :  { %v1649_v17 = vpop.permute.xlu1 %1648 }
0x1bc0   :  { %v1639_v14 = vpop.permute.xlu0 %1638 }
0x1bc1   :  { %v1673_v25 = vsel %vm133_vm3, %v1617_v20, %v1639_v14 }
0x1bc7   :  { %v1653_v4 = vpop.permute.xlu1 %1652 }
0x1bc8   :  { %v1641_v0 = vpop.permute.xlu0 %1640 }
0x1bc9   :  { %v1674_v1 = vsel %vm133_vm3, %v1618_v6, %v1641_v0  ;;  %v1651_v6 = vpop.permute.xlu2 %1650 }
0x1bca   :  { %v1678_v26 = vsel %vm135_vm0, %v1674_v1, %v1653_v4  ;;  %v1677_v1 = vsel %vm135_vm0, %v1673_v25, %v1651_v6 }
0x1bcf   :  { %v1665_v23 = vpop.permute.xlu1 %1664 }
0x1bd0   :  { %v1643_v15 = vpop.permute.xlu0 %1642  ;;  %v1682_v43 = vsel %vm137_vm4, %v1678_v26, %v1665_v23  ;;  %v1672_v26 = vsel %vm133_vm3, %v1616_v18, %v1637_v2 }
0x1bd1   :  { %v1675_v55 = vsel %vm133_vm3, %v1619_v47, %v1643_v15  ;;  %v1686_v52 = vmul.f32 %v3477_v62, %v1682_v43 }
0x1bd7   :  { %v1663_v7 = vpop.permute.xlu1 %1662 }
0x1bd8   :  { %v1655_v8 = vpop.permute.xlu0 %1654  ;;  %v1681_v47 = vsel %vm137_vm4, %v1677_v1, %v1663_v7  ;;  %v4618_v7 = vpack.c.bf16 %v4070_v36, %v4065_v40 }
0x1bd9   :  { %v1679_v51 = vsel %vm135_vm0, %v1675_v55, %v1655_v8  ;;  %v1676_v55 = vsel %vm135_vm0, %v1672_v26, %v1649_v17 }
0x1bdf   :  { %v3042_v14 = vpop.permute.xlu1 %3041 }
0x1be0   :  { %v1667_v45 = vpop.permute.xlu0 %1666 }
0x1be1   :  { %v1683_v57 = vsel %vm137_vm4, %v1679_v51, %v1667_v45  ;;  %v1685_v51 = vmul.f32 %v3500_v34, %v1681_v47  ;;  %v4619_v47 = vpack.i.bf16 %v4090_v42, %v4078_v22 }
0x1be2   :  { %v1687_v37 = vmul.f32 %v3480_v12, %v1683_v57 }
0x1be4   :  { %v1689_v30 = vpack.c.bf16 %v1687_v37, %v1686_v52  ;;  %v3043_v37 = vunpack.i.l.bf16 %v3042_v14 }
0x1be6   :  { %1700 = vmatpush.bf16.msra.mxu2 %v1689_v30  ;;  %v3044_v30 = vunpack.i.h.bf16 %v3042_v14  ;;  %v1764_v8 = vsel %vm135_vm0, %v3043_v37, %v3554_v29 }
0x1be8   :  { %v1661_v0 = vpop.permute.xlu0 %1660  ;;  %v1765_v23 = vsel %vm135_vm0, %v3044_v30, %v3552_v28 }
0x1be9   :  { %v1680_v45 = vsel %vm137_vm4, %v1676_v55, %v1661_v0  ;;  %v1770_v40 = vpack.c.bf16 %v1765_v23, %v1764_v8  ;;  %v4620_v55 = vpack.i.bf16 %v4098_v50, %v4094_v24 }
0x1bea   :  { %v1684_v4 = vmul.f32 %v3496_v32, %v1680_v45 }
0x1bec   :  { %v1688_v20 = vpack.c.bf16 %v1685_v51, %v1684_v4 }
0x1bee   :  { %1701 = vmatpush.bf16.msra.mxu2 %v1688_v20 }
0x1bf0   :  { %v3037_v25 = vpop.permute.xlu0 %3036 }
0x1bf1   :  { %v3039_v52 = vunpack.i.h.bf16 %v3037_v25  ;;  %v3038_v18 = vunpack.i.l.bf16 %v3037_v25  ;;  %2898 = vmatmul.msk.bf16.vlgmr.msra.gmra.mxu2 %vm135_vm0, %v4618_v7 }
0x1bf2   :  { %1926 = vmatpush.bf16.msrb.mxu2 %v3665_v48 }
0x1bf3   :  { %v1767_v2 = vsel %vm135_vm0, %v3039_v52, %v3544_v21  ;;  %v1766_v17 = vsel %vm135_vm0, %v3038_v18, %v3546_v16 }
0x1bf4   :  { %v1771_v15 = vpack.c.bf16 %v1767_v2, %v1766_v17 }
0x1bf6   :  { %1927 = vmatpush.bf16.msrb.mxu2 %v3667_v53  ;;  %1780 = vmatpush.bf16.msrb.mxu0 %v1771_v15 }
0x1bfa   :  { %1928 = vmatpush.bf16.msrb.mxu2 %v3675_v46  ;;  %1781 = vmatpush.bf16.msrb.mxu0 %v1770_v40  ;;  %v4172_v40 = vld [vmem:[#allocation5 + $0x8] sm:$0xff] }
0x1bfe   :  { %1929 = vmatpush.bf16.msrb.mxu2 %v3680_v9 }
0x1c02   :  { %2252 = vmatpush.bf16.msra.mxu2 %v3609_v41 }
0x1c06   :  { %2253 = vmatpush.bf16.msra.mxu2 %v3612_v44 }
0x1c74   :  { %v1703_v36 = vpop.f32.mrf.mxu2 }
0x1c75   :  { %v1704_v43 = vadd.f32 %v1703_v36, %v3573_v3  ;;  %v4176_v36 = vld [vmem:[#allocation5] sm:$0xff] }
0x1c77   :  { %v1708_v57 = vsel %vm355_vm10, %v1704_v43, -inf }
0x1c78   :  { %1709 = vmax.xlane.f32.xlu1 %v1708_v57 }
0x1c7c   :  { %v1705_v6 = vpop.f32.mrf.mxu2 }
0x1c7d   :  { %v1706_v1 = vadd.f32 %v1705_v6, %v3581_v60 }
0x1c7f   :  { %v1711_v26 = vsel %vm355_vm10, %v1706_v1, -inf }
0x1c80   :  { %1712 = vmax.xlane.f32.xlu0 %v1711_v26 }
0x1c91   :  { %3051 = vrot.lane.b32.xlu1 %v4619_v47, %s3287_s21 }
0x1c94   :  { %3046 = vrot.lane.b32.xlu0 %v4620_v55, %s3287_s21 }
0x1ceb   :  { %v1710_v0 = vpop.xlane.xlu1 %1709 }
0x1cec   :  { %v1714_v4 = vsub.f32 %v1704_v43, %v1710_v0 }
0x1cee   :  { %v1716_v25 = vmul.f32 1.442695, %v1714_v4 }
0x1cf3   :  { %v1713_v45 = vpop.xlane.xlu0 %1712 }
0x1cf4   :  { %v1715_v51 = vsub.f32 %v1706_v1, %v1713_v45 }
0x1cf6   :  { %v1718_v20 = vmul.f32 1.442695, %v1715_v51 }
0x1cf8   :  { %3149 = vpow2.f32 %v1718_v20 }
0x1cf9   :  { %3151 = vpow2.f32 %v1716_v25 }
0x1cfe   :  { %v3150_v17 = vpop.eup %3149 }
0x1cff   :  { %v3152_v8 = vpop.eup %3151 }
0x1d00   :  { %v1772_v23 = vpack.c.bf16 %v3150_v17, %v3152_v8 }
0x1d03   :  { %v3052_v14 = vpop.permute.xlu1 %3051 }
0x1d04   :  { %v3054_v37 = vunpack.i.h.bf16 %v3052_v14  ;;  %v3053_v52 = vunpack.i.l.bf16 %v3052_v14 }
0x1d06   :  { %v3047_v30 = vpop.permute.xlu0 %3046  ;;  %v1760_v50 = vsel %vm135_vm0, %v3053_v52, %v3598_v58  ;;  %v1761_v2 = vsel %vm135_vm0, %v3054_v37, %v3596_v31 }
0x1d07   :  { %v3049_v18 = vunpack.i.h.bf16 %v3047_v30  ;;  %v3048_v7 = vunpack.i.l.bf16 %v3047_v30  ;;  %v1768_v15 = vpack.c.bf16 %v1761_v2, %v1760_v50 }
0x1d09   :  { %v1762_v22 = vsel %vm135_vm0, %v3048_v7, %v3562_v39  ;;  %v1763_v42 = vsel %vm135_vm0, %v3049_v18, %v3560_v38 }
0x1d0a   :  { %v1769_v24 = vpack.c.bf16 %v1763_v42, %v1762_v22 }
0x1d0c   :  { %1782 = vmatpush.bf16.msrb.mxu0 %v1769_v24 }
0x1d10   :  { %1783 = vmatpush.bf16.msrb.mxu0 %v1768_v15 }
0x1d13   :  { %2899 = vmatmul.msk.bf16.vlgmr.msrb.gmra.mxu0 %vm355_vm10, %v1772_v23 }
0x1d14   :  { %1998 = vmatpush.bf16.msra.mxu0 %v4172_v40 }
0x1d18   :  { %1999 = vmatpush.bf16.msra.mxu0 %v4176_v36 }
0x1d1c   :  { %2322 = vmatpush.bf16.msrb.mxu0 %v4002_v27 }
0x1d20   :  { %2323 = vmatpush.bf16.msrb.mxu0 %v4005_v35 }
0x1d90   :  { %v1785_v43 = vpop.f32.mrf.mxu0 }
0x1d91   :  { %1792 = vrot.lane.b32.xlu0 %v1785_v43, %s3290_s1 }
0x1d98   :  { %v1787_v57 = vpop.f32.mrf.mxu0 }
0x1d99   :  { %1794 = vrot.lane.b32.xlu1 %v1787_v57, %s3290_s1 }
0x1e03   :  { %v1793_v6 = vpop.permute.xlu0 %1792 }
0x1e04   :  { %3153 = vrcp.f32 %v1793_v6  ;;  %v1809_v4 = vand.u32 2147483648, %v1793_v6  ;;  %vm1803_vm14 = vweird.f32 %v1793_v6  ;;  %v1807_v35 = vand.u32 2147483647, %v1793_v6 }
0x1e06   :  { %v1810_v52 = vor.u32 1.1754944e-38, %v1809_v4  ;;  %vm1808_vm2 = vcmp.eq.f32.partialorder %v1807_v35, 8.507059e+37 }
0x1e0a   :  { %v3154_v1 = vpop.eup %3153 }
0x1e0b   :  { %v1799_v26 = vmul.f32 %v3154_v1, %v1793_v6  ;;  %v1795_v47 = vpop.permute.xlu1 %1794  ;;  %vm1804_vm13 = vweird.f32 %v3154_v1 }
0x1e0c   :  { %3155 = vrcp.f32 %v1795_v47  ;;  %vm1805_vm15 = vmor %vm1803_vm14, %vm1804_vm13  ;;  %v1824_v14 = vand.u32 2147483648, %v1795_v47  ;;  %v1822_v37 = vand.u32 2147483647, %v1795_v47  ;;  %vm1818_vm5 = vweird.f32 %v1795_v47 }
0x1e0d   :  { %v1800_v55 = vsub.f32 1.0, %v1799_v26 }
0x1e0e   :  { %v1825_v22 = vor.u32 1.1754944e-38, %v1824_v14  ;;  %vm1823_vm7 = vcmp.eq.f32.partialorder %v1822_v37, 8.507059e+37 }
0x1e0f   :  { %v1801_v0 = vmul.f32 %v3154_v1, %v1800_v55 }
0x1e11   :  { %v1802_v51 = vadd.f32 %v3154_v1, %v1801_v0 }
0x1e12   :  { %v3156_v45 = vpop.eup %3155 }
0x1e13   :  { %v1814_v27 = vmul.f32 %v3156_v45, %v1795_v47  ;;  %v1806_v25 = vsel %vm1805_vm15, %v3154_v1, %v1802_v51  ;;  %vm1819_vm1 = vweird.f32 %v3156_v45 }
0x1e14   :  { %v1811_v7 = vsel %vm1808_vm2, %v1810_v52, %v1806_v25  ;;  %vm1820_vm6 = vmor %vm1818_vm5, %vm1819_vm1 }
0x1e15   :  { %v1815_v20 = vsub.f32 1.0, %v1814_v27  ;;  %v1812_v50 = vmul.f32 %v1811_v7, %v1785_v43 }
0x1e17   :  { %v1816_v30 = vmul.f32 %v3156_v45, %v1815_v20 }
0x1e19   :  { %v1817_v18 = vadd.f32 %v3156_v45, %v1816_v30 }
0x1e1b   :  { %v1821_v42 = vsel %vm1820_vm6, %v3156_v45, %v1817_v18 }
0x1e1c   :  { %v1826_v24 = vsel %vm1823_vm7, %v1825_v22, %v1821_v42 }
0x1e1d   :  { %v1827_v2 = vmul.f32 %v1826_v24, %v1787_v57 }
0x1e1f   :  { %v1828_v17 = vpack.c.bf16 %v1827_v2, %v1812_v50 }
0x1e21   :  { %2900 = vmatmul.msk.bf16.vlgmr.msrb.gmra.mxu1 %vm135_vm0, %v1828_v17 }
0x1e9e   :  { %v1841_v15 = vpop.f32.mrf.mxu1 }
0x1e9f   :  { %v1846_v8 = vadd.f32 %v1841_v15, %v4041_v59 }
0x1ea1   :  { %v4186_v23 = vadd.f32 %v1846_v8, %v3619_v61 }
0x1ea3   :  { %v1850_v6 = vsel %vm135_vm0, %v4186_v23, 0.0 }
0x1ea4   :  { %1851 = vadd.xlane.f32.xlu0 %v1850_v6 }
0x1ea6   :  { %v1843_v1 = vpop.f32.mrf.mxu1 }
0x1ea7   :  { %v1847_v26 = vadd.f32 %v1843_v1, %v4047_v63 }
0x1ea9   :  { %v4192_v47 = vadd.f32 %v1847_v26, %v3619_v61 }
0x1eab   :  { %v1853_v43 = vsel %vm135_vm0, %v4192_v47, 0.0 }
0x1eac   :  { %1854 = vadd.xlane.f32.xlu1 %v1853_v43 }
0x1f17   :  { %v1852_v57 = vpop.xlane.xlu0 %1851 }
0x1f18   :  { %v1856_v59 = vmul.f32 %v1852_v57, %v3338_v13 }
0x1f1a   :  { %v1858_v55 = vsub.f32 %v4186_v23, %v1856_v59 }
0x1f1c   :  { %v1860_v0 = vmul.f32 %v1858_v55, %v1858_v55 }
0x1f1e   :  { %v1862_v45 = vsel %vm135_vm0, %v1860_v0, 0.0 }
0x1f1f   :  { %1863 = vadd.xlane.f32.xlu2 %v1862_v45  ;;  %v1855_v51 = vpop.xlane.xlu1 %1854 }
0x1f20   :  { %v1857_v27 = vmul.f32 %v1855_v51, %v3338_v13 }
0x1f22   :  { %v1859_v63 = vsub.f32 %v4192_v47, %v1857_v27 }
0x1f24   :  { %v1861_v4 = vmul.f32 %v1859_v63, %v1859_v63 }
0x1f26   :  { %v1865_v35 = vsel %vm135_vm0, %v1861_v4, 0.0 }
0x1f27   :  { %1866 = vadd.xlane.f32.xlu0 %v1865_v35 }
0x1f92   :  { %v1864_v20 = vpop.xlane.xlu2 %1863 }
0x1f93   :  { %v1868_v14 = vmul.f32 %v1864_v20, %v3338_v13 }
0x1f95   :  { %v1870_v25 = vadd.f32 1e-05, %v1868_v14 }
0x1f97   :  { %3157 = vrsqrt.f32 %v1870_v25  ;;  %vm1878_vm9 = vweird.f32 %v1870_v25 }
0x1f9a   :  { %v1867_v30 = vpop.xlane.xlu0 %1866 }
0x1f9b   :  { %v1869_v37 = vmul.f32 %v1867_v30, %v3338_v13 }
0x1f9d   :  { %v3158_v52 = vpop.eup %3157  ;;  %v1871_v18 = vadd.f32 1e-05, %v1869_v37 }
0x1f9e   :  { %v1873_v7 = vmul.f32 %v3158_v52, %v1870_v25  ;;  %vm1879_vm8 = vweird.f32 %v3158_v52 }
0x1f9f   :  { %3159 = vrsqrt.f32 %v1871_v18  ;;  %vm1880_vm11 = vmor %vm1878_vm9, %vm1879_vm8  ;;  %vm1888_vm13 = vweird.f32 %v1871_v18 }
0x1fa0   :  { %v1874_v22 = vmul.f32 %v3158_v52, %v1873_v7 }
0x1fa2   :  { %v1875_v42 = vmul.f32 0.5, %v1874_v22 }
0x1fa4   :  { %v1876_v24 = vsub.f32 1.5, %v1875_v42 }
0x1fa5   :  { %v3160_v50 = vpop.eup %3159 }
0x1fa6   :  { %v1877_v2 = vmul.f32 %v3158_v52, %v1876_v24  ;;  %v1883_v17 = vmul.f32 %v3160_v50, %v1871_v18  ;;  %vm1889_vm12 = vweird.f32 %v3160_v50 }
0x1fa7   :  { %vm1890_vm14 = vmor %vm1888_vm13, %vm1889_vm12 }
0x1fa8   :  { %v1884_v15 = vmul.f32 %v3160_v50, %v1883_v17  ;;  %v1881_v8 = vsel %vm1880_vm11, %v3158_v52, %v1877_v2 }
0x1fa9   :  { %v1892_v26 = vmul.f32 %v1881_v8, %v1858_v55 }
0x1faa   :  { %v1885_v6 = vmul.f32 0.5, %v1884_v15 }
0x1fab   :  { %v1894_v59 = vmul.f32 %v1892_v26, %v3663_v56 }
0x1fac   :  { %v1886_v1 = vsub.f32 1.5, %v1885_v6 }
0x1fad   :  { %v1896_v51 = vadd.f32 %v1894_v59, %v3671_v19 }
0x1fae   :  { %v1887_v43 = vmul.f32 %v3160_v50, %v1886_v1 }
0x1fb0   :  { %v1891_v57 = vsel %vm1890_vm14, %v3160_v50, %v1887_v43 }
0x1fb1   :  { %v1893_v0 = vmul.f32 %v1891_v57, %v1859_v63 }
0x1fb3   :  { %v1895_v45 = vmul.f32 %v1893_v0, %v3663_v56 }
0x1fb5   :  { %v1897_v27 = vadd.f32 %v1895_v45, %v3671_v19 }
0x1fb7   :  { %v1898_v4 = vpack.c.bf16 %v1897_v27, %v1896_v51 }
0x1fb9   :  { %2901 = vmatmul.msk.bf16.vlgmr.msrb.gmra.mxu3 %vm135_vm0, %v1898_v4 }
0x203c   :  { %v1911_v35 = vpop.f32.mrf.mxu3 }
0x203d   :  { %v1912_v20 = vadd.f32 %v1911_v35, %v3686_v11 }
0x203f   :  { %v1916_v25 = vmax.f32 %v1912_v20, 0.0 }
0x2044   :  { %v1913_v55 = vpop.f32.mrf.mxu3 }
0x2045   :  { %v1914_v14 = vadd.f32 %v1913_v55, %v3686_v11 }
0x2047   :  { %v1917_v30 = vmax.f32 %v1914_v14, 0.0 }
0x2049   :  { %v1918_v37 = vpack.c.bf16 %v1917_v30, %v1916_v25 }
0x204b   :  { %2902 = vmatmul.msk.bf16.vlgmr.msrb.gmra.mxu2 %vm355_vm10, %v1918_v37 }
0x20ce   :  { %v1931_v63 = vpop.f32.mrf.mxu2 }
0x20cf   :  { %v1936_v52 = vadd.f32 %v1931_v63, %v4186_v23 }
0x20d1   :  { %v4214_v18 = vadd.f32 %v1936_v52, %v3691_v33 }
0x20d3   :  { %v1940_v7 = vsel %vm135_vm0, %v4214_v18, 0.0 }
0x20d4   :  { %1941 = vadd.xlane.f32.xlu1 %v1940_v7 }
0x20d6   :  { %v1933_v22 = vpop.f32.mrf.mxu2 }
0x20d7   :  { %v1937_v42 = vadd.f32 %v1933_v22, %v4192_v47 }
0x20d9   :  { %v4220_v24 = vadd.f32 %v1937_v42, %v3691_v33 }
0x20db   :  { %v1943_v50 = vsel %vm135_vm0, %v4220_v24, 0.0 }
0x20dc   :  { %1944 = vadd.xlane.f32.xlu0 %v1943_v50 }
0x2147   :  { %v1942_v2 = vpop.xlane.xlu1 %1941 }
0x2148   :  { %v1946_v23 = vmul.f32 %v1942_v2, %v3338_v13 }
0x214a   :  { %v1948_v17 = vsub.f32 %v4214_v18, %v1946_v23 }
0x214c   :  { %v1950_v15 = vmul.f32 %v1948_v17, %v1948_v17 }
0x214e   :  { %v1952_v8 = vsel %vm135_vm0, %v1950_v15, 0.0 }
0x214f   :  { %1953 = vadd.xlane.f32.xlu1 %v1952_v8  ;;  %v1945_v6 = vpop.xlane.xlu0 %1944 }
0x2150   :  { %v1947_v1 = vmul.f32 %v1945_v6, %v3338_v13 }
0x2152   :  { %v1949_v47 = vsub.f32 %v4220_v24, %v1947_v1 }
0x2154   :  { %v1951_v26 = vmul.f32 %v1949_v47, %v1949_v47 }
0x2156   :  { %v1955_v43 = vsel %vm135_vm0, %v1951_v26, 0.0 }
0x2157   :  { %1956 = vadd.xlane.f32.xlu0 %v1955_v43 }
0x21c2   :  { %v1954_v57 = vpop.xlane.xlu1 %1953 }
0x21c3   :  { %v1958_v59 = vmul.f32 %v1954_v57, %v3338_v13 }
0x21c5   :  { %v1960_v0 = vadd.f32 1e-05, %v1958_v59 }
0x21c7   :  { %3161 = vrsqrt.f32 %v1960_v0  ;;  %vm1968_vm1 = vweird.f32 %v1960_v0 }
0x21ca   :  { %v1957_v45 = vpop.xlane.xlu0 %1956 }
0x21cb   :  { %v1959_v51 = vmul.f32 %v1957_v45, %v3338_v13 }
0x21cd   :  { %v3162_v27 = vpop.eup %3161  ;;  %v1961_v4 = vadd.f32 1e-05, %v1959_v51  ;;  %v4622_v51 = vld [vmem:[#allocation19_spill] sm:$0xff] }
0x21ce   :  { %v1963_v35 = vmul.f32 %v3162_v27, %v1960_v0  ;;  %vm1969_vm15 = vweird.f32 %v3162_v27  ;;  %v4621_v0 = vld [vmem:[#allocation13_spill] sm:$0xff] }
0x21cf   :  { %3163 = vrsqrt.f32 %v1961_v4  ;;  %vm1970_vm2 = vmor %vm1968_vm1, %vm1969_vm15  ;;  %vm1978_vm6 = vweird.f32 %v1961_v4 }
0x21d0   :  { %v1964_v20 = vmul.f32 %v3162_v27, %v1963_v35 }
0x21d2   :  { %v1965_v55 = vmul.f32 0.5, %v1964_v20  ;;  %v4624_v20 = vld [vmem:[#allocation12_spill] sm:$0xff] }
0x21d4   :  { %v1966_v14 = vsub.f32 1.5, %v1965_v55 }
0x21d5   :  { %v3164_v25 = vpop.eup %3163 }
0x21d6   :  { %v1967_v30 = vmul.f32 %v3162_v27, %v1966_v14  ;;  %v1973_v37 = vmul.f32 %v3164_v25, %v1961_v4  ;;  %vm1979_vm5 = vweird.f32 %v3164_v25  ;;  %v4623_v4 = vld [vmem:[#allocation14_spill] sm:$0xff] }
0x21d7   :  { %vm1980_vm7 = vmor %vm1978_vm6, %vm1979_vm5 }
0x21d8   :  { %v1974_v63 = vmul.f32 %v3164_v25, %v1973_v37  ;;  %v1971_v52 = vsel %vm1970_vm2, %v3162_v27, %v1967_v30  ;;  %v4626_v37 = vld [vmem:[#allocation17_spill] sm:$0xff] }
0x21d9   :  { %v1982_v42 = vmul.f32 %v1971_v52, %v1948_v17  ;;  %v4627_v52 = vld [vmem:[#allocation16_spill] sm:$0xff] }
0x21da   :  { %v1975_v7 = vmul.f32 0.5, %v1974_v63 }
0x21db   :  { %v1984_v23 = vmul.f32 %v1982_v42, %v3334_v10 }
0x21dc   :  { %v1976_v22 = vsub.f32 1.5, %v1975_v7 }
0x21dd   :  { %v1986_v6 = vadd.f32 %v1984_v23, %v3355_v49 }
0x21de   :  { %v1977_v50 = vmul.f32 %v3164_v25, %v1976_v22 }
0x21e0   :  { %v1981_v2 = vsel %vm1980_vm7, %v3164_v25, %v1977_v50  ;;  %v4625_v25 = vld [vmem:[#allocation18_spill] sm:$0xff] }
0x21e1   :  { %v1983_v15 = vmul.f32 %v1981_v2, %v1949_v47 }
0x21e3   :  { %v1985_v8 = vmul.f32 %v1983_v15, %v3334_v10 }
0x21e5   :  { %v1987_v1 = vadd.f32 %v1985_v8, %v3355_v49 }
0x21e7   :  { %v1988_v26 = vpack.c.bf16 %v1987_v1, %v1986_v6 }
0x21e9   :  { %2903 = vmatmul.msk.bf16.vlgmr.msra.gmra.mxu0 %vm135_vm0, %v1988_v26 }
0x2266   :  { %v2001_v43 = vpop.f32.mrf.mxu0 }
0x2267   :  { %v4238_v57 = vadd.f32 %v2001_v43, %v3362_v54 }
0x2269   :  { %2008 = vrot.lane.b32.xlu1 %v4238_v57, %s3290_s1  ;;  %v2138_v47 = vmul.f32 %v4602_v5, %v4238_v57  ;;  %v2140_v45 = vmul.f32 %v4621_v0, %v4238_v57  ;;  %v4251_v27 = vmul.f32 %v4622_v51, %v4238_v57  ;;  %v4267_v63 = vmul.f32 %v4626_v37, %v4238_v57 }
0x226e   :  { %v2003_v17 = vpop.f32.mrf.mxu0 }
0x226f   :  { %v4243_v59 = vadd.f32 %v2003_v17, %v3362_v54 }
0x2271   :  { %2010 = vrot.lane.b32.xlu0 %v4243_v59, %s3290_s1  ;;  %v2139_v35 = vmul.f32 %v4623_v4, %v4243_v59  ;;  %v2141_v55 = vmul.f32 %v4624_v20, %v4243_v59  ;;  %v4263_v30 = vmul.f32 %v4625_v25, %v4243_v59  ;;  %v4271_v7 = vmul.f32 %v4627_v52, %v4243_v59 }
0x2273   :  { %v3060_v22 = vpack.i.bf16 %v2139_v35, %v2138_v47  ;;  %v3055_v42 = vpack.i.bf16 %v2141_v55, %v2140_v45 }
0x22db   :  { %v2009_v23 = vpop.permute.xlu1 %2008 }
0x22dc   :  { %2014 = vxpose.xlu2.b32.start [1/2] (short) (narrow) %v2009_v23, 32 }
0x22e3   :  { %v2011_v15 = vpop.permute.xlu0 %2010 }
0x22e4   :  { %2015 = vxpose.xlu2.b32.end [2/2] (short) (narrow) %v2011_v15, 32 }
0x2375   :  { %v2030_v8 = vpop.trf.xlu2 }
0x2376   :  { %2074 = vrot.lane.b32.xlu2 %v2030_v8, %s3294_s24  ;;  %2050 = vrot.lane.b32.xlu0 %v2030_v8, %s3293_s23 }
0x237d   :  { %v2031_v6 = vpop.trf.xlu2 }
0x237e   :  { %2062 = vrot.lane.b32.xlu0 %v2030_v8, %s3292_s22  ;;  %2052 = vrot.lane.b32.xlu1 %v2031_v6, %s3293_s23 }
0x2385   :  { %v2032_v1 = vpop.trf.xlu2 }
0x2386   :  { %2054 = vrot.lane.b32.xlu0 %v2032_v1, %s3293_s23 }
0x238d   :  { %v2033_v26 = vpop.trf.xlu2 }
0x238e   :  { %2066 = vrot.lane.b32.xlu0 %v2032_v1, %s3292_s22  ;;  %2056 = vrot.lane.b32.xlu1 %v2033_v26, %s3293_s23 }
0x2396   :  { %2078 = vrot.lane.b32.xlu0 %v2032_v1, %s3294_s24  ;;  %2068 = vrot.lane.b32.xlu1 %v2033_v26, %s3292_s22 }
0x239e   :  { %2076 = vrot.lane.b32.xlu0 %v2031_v6, %s3294_s24  ;;  %2080 = vrot.lane.b32.xlu1 %v2033_v26, %s3294_s24 }
0x23a6   :  { %2064 = vrot.lane.b32.xlu1 %v2031_v6, %s3292_s22  ;;  %3061 = vrot.lane.b32.xlu0 %v3060_v22, %s3287_s21 }
0x23ae   :  { %3056 = vrot.lane.b32.xlu1 %v3055_v42, %s3287_s21 }
0x23e8   :  { %v2051_v43 = vpop.permute.xlu0 %2050 }
0x23e9   :  { %v2086_v20 = vsel %vm133_vm3, %v2030_v8, %v2051_v43 }
0x23f0   :  { %v2063_v17 = vpop.permute.xlu0 %2062  ;;  %v2053_v47 = vpop.permute.xlu1 %2052 }
0x23f8   :  { %v2055_v45 = vpop.permute.xlu0 %2054 }
0x23f9   :  { %v2088_v2 = vsel %vm133_vm3, %v2032_v1, %v2055_v45  ;;  %v2090_v1 = vsel %vm135_vm0, %v2086_v20, %v2063_v17 }
0x2400   :  { %v2067_v35 = vpop.permute.xlu0 %2066  ;;  %v2057_v55 = vpop.permute.xlu1 %2056 }
0x2401   :  { %v2092_v50 = vsel %vm135_vm0, %v2088_v2, %v2067_v35  ;;  %v2089_v14 = vsel %vm133_vm3, %v2033_v26, %v2057_v55  ;;  %v2075_v2 = vpop.permute.xlu2 %2074 }
0x2402   :  { %v2094_v26 = vsel %vm137_vm4, %v2090_v1, %v2075_v2 }
0x2408   :  { %v2069_v23 = vpop.permute.xlu1 %2068  ;;  %v2079_v15 = vpop.permute.xlu0 %2078 }
0x2409   :  { %v2096_v25 = vsel %vm137_vm4, %v2092_v50, %v2079_v15  ;;  %v2093_v22 = vsel %vm135_vm0, %v2089_v14, %v2069_v23  ;;  %v2087_v50 = vsel %vm133_vm3, %v2031_v6, %v2053_v47  ;;  %v4628_v6 = vpack.c.bf16 %v4243_v59, %v4238_v57 }
0x240a   :  { %v2100_v4 = vmul.f32 %v3477_v62, %v2096_v25  ;;  %v2098_v25 = vmul.f32 %v3496_v32, %v2094_v26 }
0x2410   :  { %v2081_v51 = vpop.permute.xlu1 %2080  ;;  %v2077_v5 = vpop.permute.xlu0 %2076 }
0x2411   :  { %v2097_v42 = vsel %vm137_vm4, %v2093_v22, %v2081_v51 }
0x2412   :  { %v2101_v52 = vmul.f32 %v3480_v12, %v2097_v42 }
0x2414   :  { %v2103_v37 = vpack.c.bf16 %v2101_v52, %v2100_v4 }
0x2416   :  { %2114 = vmatpush.bf16.msra.mxu1 %v2103_v37 }
0x2418   :  { %v2065_v14 = vpop.permute.xlu1 %2064  ;;  %v3062_v43 = vpop.permute.xlu0 %3061 }
0x2419   :  { %v2091_v45 = vsel %vm135_vm0, %v2087_v50, %v2065_v14  ;;  %v3064_v20 = vunpack.i.h.bf16 %v3062_v43  ;;  %v3063_v37 = vunpack.i.l.bf16 %v3062_v43  ;;  %v4629_v50 = vpack.i.bf16 %v4263_v30, %v4251_v27 }
0x241a   :  { %v2095_v51 = vsel %vm137_vm4, %v2091_v45, %v2077_v5 }
0x241b   :  { %v2099_v35 = vmul.f32 %v3500_v34, %v2095_v51  ;;  %v2178_v23 = vsel %vm135_vm0, %v3063_v37, %v3554_v29  ;;  %v2179_v15 = vsel %vm135_vm0, %v3064_v20, %v3552_v28 }
0x241c   :  { %v2184_v57 = vpack.c.bf16 %v2179_v15, %v2178_v23  ;;  %v3203_v23 = vld [vmem:[#allocation5 + $0x18] sm:$0xff]  ;;  %v3204_v15 = vld [vmem:[#allocation5 + $0x10] sm:$0xff] }
0x241d   :  { %v2102_v8 = vpack.c.bf16 %v2099_v35, %v2098_v25 }
0x241f   :  { %2115 = vmatpush.bf16.msra.mxu1 %v2102_v8 }
0x2420   :  { %v3057_v4 = vpop.permute.xlu1 %3056 }
0x2421   :  { %v3059_v52 = vunpack.i.h.bf16 %v3057_v4  ;;  %v3058_v17 = vunpack.i.l.bf16 %v3057_v4 }
0x2422   :  { %2904 = vmatmul.msk.bf16.vlgmr.msra.gmra.mxu1 %vm135_vm0, %v4628_v6 }
0x2423   :  { %2340 = vmatpush.bf16.msrb.mxu1 %v3665_v48  ;;  %v2181_v5 = vsel %vm135_vm0, %v3059_v52, %v3544_v21  ;;  %v2180_v47 = vsel %vm135_vm0, %v3058_v17, %v3546_v16 }
0x2424   :  { %v2185_v55 = vpack.c.bf16 %v2181_v5, %v2180_v47 }
0x2426   :  { %2194 = vmatpush.bf16.msra.mxu3 %v2185_v55 }
0x2427   :  { %2341 = vmatpush.bf16.msrb.mxu1 %v3667_v53 }
0x242a   :  { %2195 = vmatpush.bf16.msra.mxu3 %v2184_v57 }
0x242b   :  { %2342 = vmatpush.bf16.msrb.mxu1 %v3675_v46 }
0x242f   :  { %2343 = vmatpush.bf16.msrb.mxu1 %v3680_v9 }
0x2433   :  { %2666 = vmatpush.bf16.msra.mxu1 %v3609_v41  ;;  %v4630_v41 = vpack.i.bf16 %v4271_v7, %v4267_v63 }
0x2437   :  { %2667 = vmatpush.bf16.msra.mxu1 %v3612_v44 }
0x249f   :  { %v2117_v59 = vpop.f32.mrf.mxu1 }
0x24a0   :  { %v2118_v22 = vadd.f32 %v2117_v59, %v3573_v3 }
0x24a2   :  { %v2122_v42 = vsel %vm355_vm10, %v2118_v22, -inf }
0x24a3   :  { %2123 = vmax.xlane.f32.xlu0 %v2122_v42 }
0x24a7   :  { %v2119_v1 = vpop.f32.mrf.mxu1 }
0x24a8   :  { %v2120_v2 = vadd.f32 %v2119_v1, %v3581_v60 }
0x24aa   :  { %v2125_v26 = vsel %vm355_vm10, %v2120_v2, -inf }
0x24ab   :  { %2126 = vmax.xlane.f32.xlu1 %v2125_v26 }
0x24b7   :  { %3071 = vrot.lane.b32.xlu0 %v4629_v50, %s3287_s21 }
0x24c4   :  { %3066 = vrot.lane.b32.xlu1 %v4630_v41, %s3287_s21 }
0x2516   :  { %v2124_v44 = vpop.xlane.xlu0 %2123 }
0x2517   :  { %v2128_v51 = vsub.f32 %v2118_v22, %v2124_v44 }
0x2519   :  { %v2130_v8 = vmul.f32 1.442695, %v2128_v51 }
0x251e   :  { %v2127_v14 = vpop.xlane.xlu1 %2126 }
0x251f   :  { %v2129_v45 = vsub.f32 %v2120_v2, %v2127_v14 }
0x2521   :  { %v2132_v25 = vmul.f32 1.442695, %v2129_v45 }
0x2523   :  { %3165 = vpow2.f32 %v2132_v25 }
0x2524   :  { %3167 = vpow2.f32 %v2130_v8 }
0x2529   :  { %v3072_v35 = vpop.permute.xlu0 %3071  ;;  %v3166_v6 = vpop.eup %3165 }
0x252a   :  { %v3074_v4 = vunpack.i.h.bf16 %v3072_v35  ;;  %v3073_v20 = vunpack.i.l.bf16 %v3072_v35  ;;  %v3168_v47 = vpop.eup %3167 }
0x252b   :  { %v2186_v55 = vpack.c.bf16 %v3166_v6, %v3168_v47 }
0x252c   :  { %v2174_v7 = vsel %vm135_vm0, %v3073_v20, %v3598_v58  ;;  %v2175_v17 = vsel %vm135_vm0, %v3074_v4, %v3596_v31 }
0x252d   :  { %v2182_v5 = vpack.c.bf16 %v2175_v17, %v2174_v7 }
0x2536   :  { %v3067_v43 = vpop.permute.xlu1 %3066 }
0x2537   :  { %v3069_v37 = vunpack.i.h.bf16 %v3067_v43  ;;  %v3068_v52 = vunpack.i.l.bf16 %v3067_v43 }
0x2539   :  { %v2176_v27 = vsel %vm135_vm0, %v3068_v52, %v3562_v39  ;;  %v2177_v30 = vsel %vm135_vm0, %v3069_v37, %v3560_v38 }
0x253a   :  { %v2183_v63 = vpack.c.bf16 %v2177_v30, %v2176_v27 }
0x253c   :  { %2196 = vmatpush.bf16.msra.mxu3 %v2183_v63 }
0x2540   :  { %2197 = vmatpush.bf16.msra.mxu3 %v2182_v5 }
0x2543   :  { %2905 = vmatmul.msk.bf16.vlgmr.msra.gmra.mxu3 %vm355_vm10, %v2186_v55 }
0x2544   :  { %2412 = vmatpush.bf16.msrb.mxu3 %v4172_v40 }
0x2548   :  { %2413 = vmatpush.bf16.msrb.mxu3 %v4176_v36 }
0x254c   :  { %2736 = vmatpush.bf16.msra.mxu3 %v3203_v23 }
0x2550   :  { %2737 = vmatpush.bf16.msra.mxu3 %v3204_v15 }
0x25c6   :  { %v2199_v57 = vpop.f32.mrf.mxu3 }
0x25c7   :  { %2206 = vrot.lane.b32.xlu1 %v2199_v57, %s3290_s1 }
0x25ce   :  { %v2201_v59 = vpop.f32.mrf.mxu3 }
0x25cf   :  { %2208 = vrot.lane.b32.xlu0 %v2201_v59, %s3290_s1 }
0x2639   :  { %v2207_v22 = vpop.permute.xlu1 %2206 }
0x263a   :  { %3169 = vrcp.f32 %v2207_v22  ;;  %v2223_v44 = vand.u32 2147483648, %v2207_v22  ;;  %vm2217_vm9 = vweird.f32 %v2207_v22  ;;  %v2221_v14 = vand.u32 2147483647, %v2207_v22 }
0x263c   :  { %v2224_v43 = vor.u32 1.1754944e-38, %v2223_v44  ;;  %vm2222_vm13 = vcmp.eq.f32.partialorder %v2221_v14, 8.507059e+37 }
0x2640   :  { %v3170_v42 = vpop.eup %3169 }
0x2641   :  { %v2213_v1 = vmul.f32 %v3170_v42, %v2207_v22  ;;  %v2209_v2 = vpop.permute.xlu0 %2208  ;;  %vm2218_vm8 = vweird.f32 %v3170_v42 }
0x2642   :  { %3171 = vrcp.f32 %v2209_v2  ;;  %vm2219_vm11 = vmor %vm2217_vm9, %vm2218_vm8  ;;  %v2238_v51 = vand.u32 2147483648, %v2209_v2  ;;  %v2236_v8 = vand.u32 2147483647, %v2209_v2  ;;  %vm2232_vm14 = vweird.f32 %v2209_v2 }
0x2643   :  { %v2214_v40 = vsub.f32 1.0, %v2213_v1 }
0x2644   :  { %v2239_v37 = vor.u32 1.1754944e-38, %v2238_v51  ;;  %vm2237_vm1 = vcmp.eq.f32.partialorder %v2236_v8, 8.507059e+37 }
0x2645   :  { %v2215_v26 = vmul.f32 %v3170_v42, %v2214_v40 }
0x2647   :  { %v2216_v36 = vadd.f32 %v3170_v42, %v2215_v26 }
0x2648   :  { %v3172_v50 = vpop.eup %3171 }
0x2649   :  { %v2228_v41 = vmul.f32 %v3172_v50, %v2209_v2  ;;  %v2220_v25 = vsel %vm2219_vm11, %v3170_v42, %v2216_v36  ;;  %vm2233_vm12 = vweird.f32 %v3172_v50 }
0x264a   :  { %v2225_v20 = vsel %vm2222_vm13, %v2224_v43, %v2220_v25  ;;  %vm2234_vm15 = vmor %vm2232_vm14, %vm2233_vm12 }
0x264b   :  { %v2229_v45 = vsub.f32 1.0, %v2228_v41  ;;  %v2226_v30 = vmul.f32 %v2225_v20, %v2199_v57 }
0x264d   :  { %v2230_v35 = vmul.f32 %v3172_v50, %v2229_v45 }
0x264f   :  { %v2231_v4 = vadd.f32 %v3172_v50, %v2230_v35 }
0x2651   :  { %v2235_v52 = vsel %vm2234_vm15, %v3172_v50, %v2231_v4 }
0x2652   :  { %v2240_v27 = vsel %vm2237_vm1, %v2239_v37, %v2235_v52 }
0x2653   :  { %v2241_v63 = vmul.f32 %v2240_v27, %v2201_v59 }
0x2655   :  { %v2242_v7 = vpack.c.bf16 %v2241_v63, %v2226_v30 }
0x2657   :  { %2906 = vmatmul.msk.bf16.vlgmr.msra.gmra.mxu2 %vm135_vm0, %v2242_v7 }
0x26da   :  { %v2255_v17 = vpop.f32.mrf.mxu2 }
0x26db   :  { %v2260_v6 = vadd.f32 %v2255_v17, %v4214_v18 }
0x26dd   :  { %v4353_v5 = vadd.f32 %v2260_v6, %v3619_v61 }
0x26df   :  { %v2264_v47 = vsel %vm135_vm0, %v4353_v5, 0.0 }
0x26e0   :  { %2265 = vadd.xlane.f32.xlu1 %v2264_v47 }
0x26e2   :  { %v2257_v55 = vpop.f32.mrf.mxu2 }
0x26e3   :  { %v2261_v23 = vadd.f32 %v2257_v55, %v4220_v24 }
0x26e5   :  { %v4359_v15 = vadd.f32 %v2261_v23, %v3619_v61 }
0x26e7   :  { %v2267_v57 = vsel %vm135_vm0, %v4359_v15, 0.0 }
0x26e8   :  { %2268 = vadd.xlane.f32.xlu0 %v2267_v57 }
0x2753   :  { %v2266_v59 = vpop.xlane.xlu1 %2265 }
0x2754   :  { %v2270_v18 = vmul.f32 %v2266_v59, %v3338_v13 }
0x2756   :  { %v2272_v22 = vsub.f32 %v4353_v5, %v2270_v18 }
0x2758   :  { %v2274_v42 = vmul.f32 %v2272_v22, %v2272_v22 }
0x275a   :  { %v2276_v1 = vsel %vm135_vm0, %v2274_v42, 0.0 }
0x275b   :  { %2277 = vadd.xlane.f32.xlu2 %v2276_v1  ;;  %v2269_v2 = vpop.xlane.xlu0 %2268 }
0x275c   :  { %v2271_v40 = vmul.f32 %v2269_v2, %v3338_v13 }
0x275e   :  { %v2273_v24 = vsub.f32 %v4359_v15, %v2271_v40 }
0x2760   :  { %v2275_v26 = vmul.f32 %v2273_v24, %v2273_v24 }
0x2762   :  { %v2279_v50 = vsel %vm135_vm0, %v2275_v26, 0.0 }
0x2763   :  { %2280 = vadd.xlane.f32.xlu1 %v2279_v50 }
0x27ce   :  { %v2278_v36 = vpop.xlane.xlu2 %2277 }
0x27cf   :  { %v2282_v41 = vmul.f32 %v2278_v36, %v3338_v13 }
0x27d1   :  { %v2284_v44 = vadd.f32 1e-05, %v2282_v41 }
0x27d3   :  { %3173 = vrsqrt.f32 %v2284_v44  ;;  %vm2292_vm5 = vweird.f32 %v2284_v44 }
0x27d6   :  { %v2281_v14 = vpop.xlane.xlu1 %2280 }
0x27d7   :  { %v2283_v45 = vmul.f32 %v2281_v14, %v3338_v13 }
0x27d9   :  { %v3174_v51 = vpop.eup %3173  ;;  %v2285_v25 = vadd.f32 1e-05, %v2283_v45 }
0x27da   :  { %v2287_v35 = vmul.f32 %v3174_v51, %v2284_v44  ;;  %vm2293_vm2 = vweird.f32 %v3174_v51 }
0x27db   :  { %3175 = vrsqrt.f32 %v2285_v25  ;;  %vm2294_vm6 = vmor %vm2292_vm5, %vm2293_vm2  ;;  %vm2302_vm8 = vweird.f32 %v2285_v25 }
0x27dc   :  { %v2288_v8 = vmul.f32 %v3174_v51, %v2287_v35 }
0x27de   :  { %v2289_v43 = vmul.f32 0.5, %v2288_v8 }
0x27e0   :  { %v2290_v4 = vsub.f32 1.5, %v2289_v43 }
0x27e1   :  { %v3176_v20 = vpop.eup %3175 }
0x27e2   :  { %v2291_v37 = vmul.f32 %v3174_v51, %v2290_v4  ;;  %v2297_v52 = vmul.f32 %v3176_v20, %v2285_v25  ;;  %vm2303_vm7 = vweird.f32 %v3176_v20 }
0x27e3   :  { %vm2304_vm9 = vmor %vm2302_vm8, %vm2303_vm7 }
0x27e4   :  { %v2298_v27 = vmul.f32 %v3176_v20, %v2297_v52  ;;  %v2295_v30 = vsel %vm2294_vm6, %v3174_v51, %v2291_v37 }
0x27e5   :  { %v2306_v17 = vmul.f32 %v2295_v30, %v2272_v22 }
0x27e6   :  { %v2299_v63 = vmul.f32 0.5, %v2298_v27 }
0x27e7   :  { %v2308_v55 = vmul.f32 %v2306_v17, %v3663_v56 }
0x27e8   :  { %v2300_v7 = vsub.f32 1.5, %v2299_v63 }
0x27e9   :  { %v2310_v59 = vadd.f32 %v2308_v55, %v3671_v19 }
0x27ea   :  { %v2301_v6 = vmul.f32 %v3176_v20, %v2300_v7 }
0x27ec   :  { %v2305_v47 = vsel %vm2304_vm9, %v3176_v20, %v2301_v6 }
0x27ed   :  { %v2307_v23 = vmul.f32 %v2305_v47, %v2273_v24 }
0x27ef   :  { %v2309_v57 = vmul.f32 %v2307_v23, %v3663_v56 }
0x27f1   :  { %v2311_v18 = vadd.f32 %v2309_v57, %v3671_v19 }
0x27f3   :  { %v2312_v42 = vpack.c.bf16 %v2311_v18, %v2310_v59 }
0x27f5   :  { %2907 = vmatmul.msk.bf16.vlgmr.msrb.gmra.mxu0 %vm135_vm0, %v2312_v42 }
0x2872   :  { %v2325_v1 = vpop.f32.mrf.mxu0 }
0x2873   :  { %v2326_v2 = vadd.f32 %v2325_v1, %v3686_v11 }
0x2875   :  { %v2330_v26 = vmax.f32 %v2326_v2, 0.0 }
0x287a   :  { %v2327_v22 = vpop.f32.mrf.mxu0 }
0x287b   :  { %v2328_v40 = vadd.f32 %v2327_v22, %v3686_v11 }
0x287d   :  { %v2331_v50 = vmax.f32 %v2328_v40, 0.0 }
0x287f   :  { %v2332_v36 = vpack.c.bf16 %v2331_v50, %v2330_v26 }
0x2881   :  { %2908 = vmatmul.msk.bf16.vlgmr.msrb.gmra.mxu1 %vm355_vm10, %v2332_v36 }
0x28fe   :  { %v2345_v24 = vpop.f32.mrf.mxu1 }
0x28ff   :  { %v2350_v41 = vadd.f32 %v2345_v24, %v4353_v5 }
0x2901   :  { %v4381_v44 = vadd.f32 %v2350_v41, %v3691_v33 }
0x2903   :  { %v2354_v14 = vsel %vm135_vm0, %v4381_v44, 0.0 }
0x2904   :  { %2355 = vadd.xlane.f32.xlu0 %v2354_v14 }
0x2906   :  { %v2347_v45 = vpop.f32.mrf.mxu1 }
0x2907   :  { %v2351_v51 = vadd.f32 %v2347_v45, %v4359_v15 }
0x2909   :  { %v4387_v25 = vadd.f32 %v2351_v51, %v3691_v33 }
0x290b   :  { %v2357_v35 = vsel %vm135_vm0, %v4387_v25, 0.0 }
0x290c   :  { %2358 = vadd.xlane.f32.xlu1 %v2357_v35 }
0x2977   :  { %v2356_v8 = vpop.xlane.xlu0 %2355 }
0x2978   :  { %v2360_v5 = vmul.f32 %v2356_v8, %v3338_v13 }
0x297a   :  { %v2362_v43 = vsub.f32 %v4381_v44, %v2360_v5 }
0x297c   :  { %v2364_v4 = vmul.f32 %v2362_v43, %v2362_v43 }
0x297e   :  { %v2366_v20 = vsel %vm135_vm0, %v2364_v4, 0.0 }
0x297f   :  { %2367 = vadd.xlane.f32.xlu0 %v2366_v20  ;;  %v2359_v37 = vpop.xlane.xlu1 %2358 }
0x2980   :  { %v2361_v52 = vmul.f32 %v2359_v37, %v3338_v13 }
0x2982   :  { %v2363_v15 = vsub.f32 %v4387_v25, %v2361_v52 }
0x2984   :  { %v2365_v27 = vmul.f32 %v2363_v15, %v2363_v15 }
0x2986   :  { %v2369_v30 = vsel %vm135_vm0, %v2365_v27, 0.0  ;;  %v4632_v27 = vld [vmem:[#allocation15_spill] sm:$0xff] }
0x2987   :  { %2370 = vadd.xlane.f32.xlu1 %v2369_v30 }
0x29f2   :  { %v2368_v63 = vpop.xlane.xlu0 %2367 }
0x29f3   :  { %v2372_v7 = vmul.f32 %v2368_v63, %v3338_v13  ;;  %v4633_v63 = vld [vmem:[#allocation12_spill] sm:$0xff] }
0x29f5   :  { %v2374_v17 = vadd.f32 1e-05, %v2372_v7 }
0x29f7   :  { %3177 = vrsqrt.f32 %v2374_v17  ;;  %vm2382_vm12 = vweird.f32 %v2374_v17 }
0x29fa   :  { %v2371_v6 = vpop.xlane.xlu1 %2370 }
0x29fb   :  { %v2373_v47 = vmul.f32 %v2371_v6, %v3338_v13 }
0x29fd   :  { %v3178_v55 = vpop.eup %3177  ;;  %v2375_v23 = vadd.f32 1e-05, %v2373_v47 }
0x29fe   :  { %v2377_v57 = vmul.f32 %v3178_v55, %v2374_v17  ;;  %vm2383_vm11 = vweird.f32 %v3178_v55  ;;  %v4634_v17 = vld [vmem:[#allocation16_spill] sm:$0xff] }
0x29ff   :  { %3179 = vrsqrt.f32 %v2375_v23  ;;  %vm2384_vm13 = vmor %vm2382_vm12, %vm2383_vm11  ;;  %vm2392_vm15 = vweird.f32 %v2375_v23 }
0x2a00   :  { %v2378_v59 = vmul.f32 %v3178_v55, %v2377_v57  ;;  %v4637_v57 = vld [vmem:[#allocation18_spill] sm:$0xff] }
0x2a02   :  { %v2379_v18 = vmul.f32 0.5, %v2378_v59 }
0x2a04   :  { %v2380_v42 = vsub.f32 1.5, %v2379_v18 }
0x2a05   :  { %v3180_v1 = vpop.eup %3179 }
0x2a06   :  { %v2381_v2 = vmul.f32 %v3178_v55, %v2380_v42  ;;  %v2387_v22 = vmul.f32 %v3180_v1, %v2375_v23  ;;  %vm2393_vm14 = vweird.f32 %v3180_v1 }
0x2a07   :  { %vm2394_vm1 = vmor %vm2392_vm15, %vm2393_vm14 }
0x2a08   :  { %v2388_v40 = vmul.f32 %v3180_v1, %v2387_v22  ;;  %v2385_v26 = vsel %vm2384_vm13, %v3178_v55, %v2381_v2  ;;  %v4636_v55 = vld [vmem:[#allocation19_spill] sm:$0xff] }
0x2a09   :  { %v2396_v24 = vmul.f32 %v2385_v26, %v2362_v43 }
0x2a0a   :  { %v2389_v50 = vmul.f32 0.5, %v2388_v40 }
0x2a0b   :  { %v2398_v45 = vmul.f32 %v2396_v24, %v3334_v10 }
0x2a0c   :  { %v2390_v36 = vsub.f32 1.5, %v2389_v50 }
0x2a0d   :  { %v2400_v8 = vadd.f32 %v2398_v45, %v3355_v49 }
0x2a0e   :  { %v2391_v41 = vmul.f32 %v3180_v1, %v2390_v36 }
0x2a10   :  { %v2395_v14 = vsel %vm2394_vm1, %v3180_v1, %v2391_v41 }
0x2a11   :  { %v2397_v51 = vmul.f32 %v2395_v14, %v2363_v15  ;;  %v4631_v15 = vld [vmem:[#allocation17_spill] sm:$0xff] }
0x2a13   :  { %v2399_v35 = vmul.f32 %v2397_v51, %v3334_v10 }
0x2a15   :  { %v2401_v5 = vadd.f32 %v2399_v35, %v3355_v49 }
0x2a17   :  { %v2402_v4 = vpack.c.bf16 %v2401_v5, %v2400_v8 }
0x2a19   :  { %2909 = vmatmul.msk.bf16.vlgmr.msrb.gmra.mxu3 %vm135_vm0, %v2402_v4 }
0x2a9c   :  { %v2415_v20 = vpop.f32.mrf.mxu3 }
0x2a9d   :  { %v4405_v37 = vadd.f32 %v2415_v20, %v3362_v54 }
0x2a9f   :  { %2422 = vrot.lane.b32.xlu0 %v4405_v37, %s3290_s1  ;;  %v2554_v10 = vmul.f32 %v4621_v0, %v4405_v37  ;;  %v2550_v49 = vmul.f32 %v4631_v15, %v4405_v37  ;;  %v4418_v30 = vmul.f32 %v4632_v27, %v4405_v37  ;;  %v4635_v0 = vld [vmem:[#allocation14_spill] sm:$0xff]  ;;  %v4434_v23 = vmul.f32 %v4636_v55, %v4405_v37 }
0x2aa4   :  { %v2417_v43 = vpop.f32.mrf.mxu3 }
0x2aa5   :  { %v4410_v52 = vadd.f32 %v2417_v43, %v3362_v54 }
0x2aa7   :  { %2424 = vrot.lane.b32.xlu1 %v4410_v52, %s3290_s1  ;;  %v2555_v7 = vmul.f32 %v4633_v63, %v4410_v52  ;;  %v2551_v54 = vmul.f32 %v4634_v17, %v4410_v52  ;;  %v2518_v6 = vpack.c.bf16 %v4410_v52, %v4405_v37  ;;  %v4430_v47 = vmul.f32 %v4635_v0, %v4410_v52 }
0x2aa8   :  { %v4438_v59 = vmul.f32 %v4637_v57, %v4410_v52 }
0x2aa9   :  { %v3075_v18 = vpack.i.bf16 %v2555_v7, %v2554_v10  ;;  %v3085_v42 = vpack.i.bf16 %v2551_v54, %v2550_v49  ;;  %v3080_v1 = vpack.i.bf16 %v4430_v47, %v4418_v30 }
0x2aaa   :  { %v3090_v2 = vpack.i.bf16 %v4438_v59, %v4434_v23 }
0x2b11   :  { %v2423_v22 = vpop.permute.xlu0 %2422 }
0x2b12   :  { %2428 = vxpose.xlu2.b32.start [1/2] (short) (narrow) %v2423_v22, 32 }
0x2b19   :  { %v2425_v40 = vpop.permute.xlu1 %2424 }
0x2b1a   :  { %2429 = vxpose.xlu2.b32.end [2/2] (short) (narrow) %v2425_v40, 32 }
0x2bab   :  { %v2444_v26 = vpop.trf.xlu2 }
0x2bac   :  { %2488 = vrot.lane.b32.xlu2 %v2444_v26, %s3294_s24  ;;  %2464 = vrot.lane.b32.xlu1 %v2444_v26, %s3293_s23 }
0x2bb3   :  { %v2445_v50 = vpop.trf.xlu2 }
0x2bb4   :  { %2476 = vrot.lane.b32.xlu1 %v2444_v26, %s3292_s22  ;;  %2466 = vrot.lane.b32.xlu0 %v2445_v50, %s3293_s23 }
0x2bbb   :  { %v2446_v36 = vpop.trf.xlu2 }
0x2bbc   :  { %2480 = vrot.lane.b32.xlu1 %v2446_v36, %s3292_s22  ;;  %2468 = vrot.lane.b32.xlu0 %v2446_v36, %s3293_s23 }
0x2bc3   :  { %v2447_v24 = vpop.trf.xlu2 }
0x2bc4   :  { %2492 = vrot.lane.b32.xlu1 %v2446_v36, %s3294_s24  ;;  %2470 = vrot.lane.b32.xlu0 %v2447_v24, %s3293_s23 }
0x2bcc   :  { %2490 = vrot.lane.b32.xlu1 %v2445_v50, %s3294_s24  ;;  %2482 = vrot.lane.b32.xlu0 %v2447_v24, %s3292_s22 }
0x2bd4   :  { %2494 = vrot.lane.b32.xlu0 %v2447_v24, %s3294_s24 }
0x2bdc   :  { %2478 = vrot.lane.b32.xlu0 %v2445_v50, %s3292_s22 }
0x2be4   :  { %3076 = vrot.lane.b32.xlu0 %v3075_v18, %s3287_s21 }
0x2bec   :  { %3086 = vrot.lane.b32.xlu0 %v3085_v42, %s3287_s21 }
0x2c06   :  { %v2489_v57 = vpop.permute.xlu2 %2488 }
0x2c1e   :  { %v2465_v41 = vpop.permute.xlu1 %2464 }
0x2c1f   :  { %v2500_v54 = vsel %vm133_vm3, %v2444_v26, %v2465_v41 }
0x2c26   :  { %v2467_v14 = vpop.permute.xlu0 %2466  ;;  %v2477_v45 = vpop.permute.xlu1 %2476 }
0x2c27   :  { %v2504_v55 = vsel %vm135_vm0, %v2500_v54, %v2477_v45  ;;  %v2501_v42 = vsel %vm133_vm3, %v2445_v50, %v2467_v14 }
0x2c28   :  { %v2508_v18 = vsel %vm137_vm4, %v2504_v55, %v2489_v57 }
0x2c2e   :  { %v2469_v51 = vpop.permute.xlu0 %2468  ;;  %v2481_v8 = vpop.permute.xlu1 %2480 }
0x2c2f   :  { %v2502_v4 = vsel %vm133_vm3, %v2446_v36, %v2469_v51 }
0x2c30   :  { %v2506_v43 = vsel %vm135_vm0, %v2502_v4, %v2481_v8 }
0x2c36   :  { %v2471_v35 = vpop.permute.xlu0 %2470  ;;  %v2493_v20 = vpop.permute.xlu1 %2492 }
0x2c37   :  { %v2510_v10 = vsel %vm137_vm4, %v2506_v43, %v2493_v20  ;;  %v2503_v15 = vsel %vm133_vm3, %v2447_v24, %v2471_v35 }
0x2c38   :  { %v2514_v7 = vmul.f32 %v3477_v62, %v2510_v10  ;;  %v2512_v62 = vmul.f32 %v3496_v32, %v2508_v18 }
0x2c3e   :  { %v2483_v5 = vpop.permute.xlu0 %2482  ;;  %v2491_v40 = vpop.permute.xlu1 %2490 }
0x2c3f   :  { %v2507_v49 = vsel %vm135_vm0, %v2503_v15, %v2483_v5 }
0x2c46   :  { %v2495_v27 = vpop.permute.xlu0 %2494 }
0x2c47   :  { %v2511_v63 = vsel %vm137_vm4, %v2507_v49, %v2495_v27 }
0x2c48   :  { %v2515_v17 = vmul.f32 %v3480_v12, %v2511_v63 }
0x2c4a   :  { %v2517_v0 = vpack.c.bf16 %v2515_v17, %v2514_v7 }
0x2c4c   :  { %2528 = vmatpush.bf16.msrb.mxu2 %v2517_v0 }
0x2c4e   :  { %v2479_v22 = vpop.permute.xlu0 %2478 }
0x2c4f   :  { %v2505_v36 = vsel %vm135_vm0, %v2501_v42, %v2479_v22 }
0x2c50   :  { %v2509_v24 = vsel %vm137_vm4, %v2505_v36, %v2491_v40 }
0x2c51   :  { %v2513_v12 = vmul.f32 %v3500_v34, %v2509_v24 }
0x2c53   :  { %v2516_v26 = vpack.c.bf16 %v2513_v12, %v2512_v62 }
0x2c55   :  { %2529 = vmatpush.bf16.msrb.mxu2 %v2516_v26 }
0x2c56   :  { %v3077_v41 = vpop.permute.xlu0 %3076 }
0x2c57   :  { %v3079_v45 = vunpack.i.h.bf16 %v3077_v41  ;;  %v3078_v51 = vunpack.i.l.bf16 %v3077_v41 }
0x2c58   :  { %2910 = vmatmul.msk.bf16.vlgmr.msrb.gmra.mxu2 %vm135_vm0, %v2518_v6 }
0x2c59   :  { %2754 = vmatpush.bf16.msra.mxu2 %v3665_v48  ;;  %v2595_v50 = vsel %vm135_vm0, %v3079_v45, %v3544_v21  ;;  %v2594_v32 = vsel %vm135_vm0, %v3078_v51, %v3546_v16 }
0x2c5a   :  { %v2599_v14 = vpack.c.bf16 %v2595_v50, %v2594_v32 }
0x2c5c   :  { %2608 = vmatpush.bf16.msra.mxu0 %v2599_v14 }
0x2c5d   :  { %2755 = vmatpush.bf16.msra.mxu2 %v3667_v53 }
0x2c5e   :  { %v3087_v16 = vpop.permute.xlu0 %3086 }
0x2c5f   :  { %v3088_v8 = vunpack.i.l.bf16 %v3087_v16 }
0x2c61   :  { %2756 = vmatpush.bf16.msra.mxu2 %v3675_v46  ;;  %v2590_v10 = vsel %vm135_vm0, %v3088_v8, %v3562_v39 }
0x2c65   :  { %2757 = vmatpush.bf16.msra.mxu2 %v3680_v9 }
0x2cdb   :  { %v2531_v34 = vpop.f32.mrf.mxu2 }
0x2cdc   :  { %v2532_v48 = vadd.f32 %v2531_v34, %v3573_v3 }
0x2cde   :  { %v2536_v37 = vsel %vm355_vm10, %v2532_v48, -inf }
0x2cdf   :  { %2537 = vmax.xlane.f32.xlu1 %v2536_v37 }
0x2ce3   :  { %v2533_v52 = vpop.f32.mrf.mxu2 }
0x2ce4   :  { %v2534_v21 = vadd.f32 %v2533_v52, %v3581_v60  ;;  %v3089_v60 = vunpack.i.h.bf16 %v3087_v16 }
0x2ce6   :  { %v2539_v6 = vsel %vm355_vm10, %v2534_v21, -inf  ;;  %v2591_v15 = vsel %vm135_vm0, %v3089_v60, %v3560_v38 }
0x2ce7   :  { %2540 = vmax.xlane.f32.xlu0 %v2539_v6  ;;  %v2597_v49 = vpack.c.bf16 %v2591_v15, %v2590_v10 }
0x2cf8   :  { %3081 = vrot.lane.b32.xlu1 %v3080_v1, %s3287_s21 }
0x2cfb   :  { %3091 = vrot.lane.b32.xlu0 %v3090_v2, %s3287_s21 }
0x2d52   :  { %v2538_v3 = vpop.xlane.xlu1 %2537 }
0x2d53   :  { %v2542_v9 = vsub.f32 %v2532_v48, %v2538_v3 }
0x2d55   :  { %v2544_v23 = vmul.f32 1.442695, %v2542_v9 }
0x2d5a   :  { %v2541_v53 = vpop.xlane.xlu0 %2540 }
0x2d5b   :  { %v2543_v46 = vsub.f32 %v2534_v21, %v2541_v53 }
0x2d5d   :  { %v2546_v20 = vmul.f32 1.442695, %v2543_v46 }
0x2d5f   :  { %3181 = vpow2.f32 %v2546_v20 }
0x2d60   :  { %3183 = vpow2.f32 %v2544_v23 }
0x2d65   :  { %v3182_v27 = vpop.eup %3181 }
0x2d66   :  { %v3184_v7 = vpop.eup %3183 }
0x2d67   :  { %v2600_v17 = vpack.c.bf16 %v3182_v27, %v3184_v7 }
0x2d6a   :  { %v3082_v35 = vpop.permute.xlu1 %3081 }
0x2d6b   :  { %v3084_v5 = vunpack.i.h.bf16 %v3082_v35  ;;  %v3083_v4 = vunpack.i.l.bf16 %v3082_v35 }
0x2d6d   :  { %v3092_v43 = vpop.permute.xlu0 %3091  ;;  %v2592_v30 = vsel %vm135_vm0, %v3083_v4, %v3554_v29  ;;  %v2593_v47 = vsel %vm135_vm0, %v3084_v5, %v3552_v28 }
0x2d6e   :  { %v2598_v59 = vpack.c.bf16 %v2593_v47, %v2592_v30  ;;  %v3094_v1 = vunpack.i.h.bf16 %v3092_v43  ;;  %v3093_v2 = vunpack.i.l.bf16 %v3092_v43 }
0x2d70   :  { %2609 = vmatpush.bf16.msra.mxu0 %v2598_v59  ;;  %v2588_v29 = vsel %vm135_vm0, %v3093_v2, %v3598_v58  ;;  %v2589_v28 = vsel %vm135_vm0, %v3094_v1, %v3596_v31 }
0x2d71   :  { %v2596_v63 = vpack.c.bf16 %v2589_v28, %v2588_v29 }
0x2d74   :  { %2610 = vmatpush.bf16.msra.mxu0 %v2597_v49 }
0x2d78   :  { %2611 = vmatpush.bf16.msra.mxu0 %v2596_v63 }
0x2d7b   :  { %2911 = vmatmul.msk.bf16.vlgmr.msra.gmra.mxu0 %vm355_vm10, %v2600_v17 }
0x2df8   :  { %v2613_v39 = vpop.f32.mrf.mxu0 }
0x2df9   :  { %2620 = vrot.lane.b32.xlu1 %v2613_v39, %s3290_s1 }
0x2e00   :  { %v2615_v38 = vpop.f32.mrf.mxu0 }
0x2e01   :  { %2622 = vrot.lane.b32.xlu0 %v2615_v38, %s3290_s1 }
0x2e6b   :  { %v2621_v54 = vpop.permute.xlu1 %2620 }
0x2e6c   :  { %3185 = vrcp.f32 %v2621_v54  ;;  %v2637_v40 = vand.u32 2147483648, %v2621_v54  ;;  %vm2631_vm4 = vweird.f32 %v2621_v54  ;;  %v2635_v36 = vand.u32 2147483647, %v2621_v54 }
0x2e6e   :  { %v2638_v45 = vor.u32 1.1754944e-38, %v2637_v40  ;;  %vm2636_vm6 = vcmp.eq.f32.partialorder %v2635_v36, 8.507059e+37 }
0x2e72   :  { %v3186_v58 = vpop.eup %3185 }
0x2e73   :  { %v2627_v0 = vmul.f32 %v3186_v58, %v2621_v54  ;;  %v2623_v55 = vpop.permute.xlu0 %2622  ;;  %vm2632_vm3 = vweird.f32 %v3186_v58 }
0x2e74   :  { %3187 = vrcp.f32 %v2623_v55  ;;  %vm2633_vm2 = vmor %vm2631_vm4, %vm2632_vm3  ;;  %v2652_v62 = vand.u32 2147483648, %v2623_v55  ;;  %v2650_v41 = vand.u32 2147483647, %v2623_v55  ;;  %vm2646_vm7 = vweird.f32 %v2623_v55 }
0x2e75   :  { %v2628_v31 = vsub.f32 1.0, %v2627_v0 }
0x2e76   :  { %v2653_v32 = vor.u32 1.1754944e-38, %v2652_v62  ;;  %vm2651_vm9 = vcmp.eq.f32.partialorder %v2650_v41, 8.507059e+37 }
0x2e77   :  { %v2629_v57 = vmul.f32 %v3186_v58, %v2628_v31 }
0x2e79   :  { %v2630_v42 = vadd.f32 %v3186_v58, %v2629_v57 }
0x2e7a   :  { %v3188_v18 = vpop.eup %3187 }
0x2e7b   :  { %v2642_v22 = vmul.f32 %v3188_v18, %v2623_v55  ;;  %v2634_v12 = vsel %vm2633_vm2, %v3186_v58, %v2630_v42  ;;  %vm2647_vm5 = vweird.f32 %v3188_v18 }
0x2e7c   :  { %v2639_v50 = vsel %vm2636_vm6, %v2638_v45, %v2634_v12  ;;  %vm2648_vm8 = vmor %vm2646_vm7, %vm2647_vm5 }
0x2e7d   :  { %v2643_v24 = vsub.f32 1.0, %v2642_v22  ;;  %v2640_v48 = vmul.f32 %v2639_v50, %v2613_v39 }
0x2e7f   :  { %v2644_v26 = vmul.f32 %v3188_v18, %v2643_v24 }
0x2e81   :  { %v2645_v51 = vadd.f32 %v3188_v18, %v2644_v26 }
0x2e83   :  { %v2649_v14 = vsel %vm2648_vm8, %v3188_v18, %v2645_v51 }
0x2e84   :  { %v2654_v34 = vsel %vm2651_vm9, %v2653_v32, %v2649_v14 }
0x2e85   :  { %v2655_v37 = vmul.f32 %v2654_v34, %v2615_v38 }
0x2e87   :  { %v2656_v52 = vpack.c.bf16 %v2655_v37, %v2640_v48 }
0x2e89   :  { %2912 = vmatmul.msk.bf16.vlgmr.msra.gmra.mxu1 %vm135_vm0, %v2656_v52 }
0x2f06   :  { %v2669_v21 = vpop.f32.mrf.mxu1 }
0x2f07   :  { %v2674_v6 = vadd.f32 %v2669_v21, %v4381_v44 }
0x2f09   :  { %v4516_v16 = vadd.f32 %v2674_v6, %v3619_v61 }
0x2f0b   :  { %v2678_v3 = vsel %vm135_vm0, %v4516_v16, 0.0 }
0x2f0c   :  { %2679 = vadd.xlane.f32.xlu1 %v2678_v3 }
0x2f0e   :  { %v2671_v53 = vpop.f32.mrf.mxu1 }
0x2f0f   :  { %v2675_v46 = vadd.f32 %v2671_v53, %v4387_v25 }
0x2f11   :  { %v4522_v9 = vadd.f32 %v2675_v46, %v3619_v61 }
0x2f13   :  { %v2681_v35 = vsel %vm135_vm0, %v4522_v9, 0.0 }
0x2f14   :  { %2682 = vadd.xlane.f32.xlu0 %v2681_v35 }
0x2f7f   :  { %v2680_v60 = vpop.xlane.xlu1 %2679 }
0x2f80   :  { %v2684_v44 = vmul.f32 %v2680_v60, %v3338_v13 }
0x2f82   :  { %v2686_v8 = vsub.f32 %v4516_v16, %v2684_v44 }
0x2f84   :  { %v2688_v5 = vmul.f32 %v2686_v8, %v2686_v8 }
0x2f86   :  { %v2690_v4 = vsel %vm135_vm0, %v2688_v5, 0.0 }
0x2f87   :  { %2691 = vadd.xlane.f32.xlu2 %v2690_v4  ;;  %v2683_v20 = vpop.xlane.xlu0 %2682 }
0x2f88   :  { %v2685_v43 = vmul.f32 %v2683_v20, %v3338_v13 }
0x2f8a   :  { %v2687_v25 = vsub.f32 %v4522_v9, %v2685_v43 }
0x2f8c   :  { %v2689_v61 = vmul.f32 %v2687_v25, %v2687_v25 }
0x2f8e   :  { %v2693_v30 = vsel %vm135_vm0, %v2689_v61, 0.0 }
0x2f8f   :  { %2694 = vadd.xlane.f32.xlu1 %v2693_v30 }
0x2ffa   :  { %v2692_v47 = vpop.xlane.xlu2 %2691 }
0x2ffb   :  { %v2696_v23 = vmul.f32 %v2692_v47, %v3338_v13 }
0x2ffd   :  { %v2698_v59 = vadd.f32 1e-05, %v2696_v23 }
0x2fff   :  { %3189 = vrsqrt.f32 %v2698_v59  ;;  %vm2706_vm12 = vweird.f32 %v2698_v59 }
0x3002   :  { %v2695_v1 = vpop.xlane.xlu1 %2694 }
0x3003   :  { %v2697_v2 = vmul.f32 %v2695_v1, %v3338_v13 }
0x3005   :  { %v3190_v10 = vpop.eup %3189  ;;  %v2699_v15 = vadd.f32 1e-05, %v2697_v2 }
0x3006   :  { %v2701_v49 = vmul.f32 %v3190_v10, %v2698_v59  ;;  %vm2707_vm11 = vweird.f32 %v3190_v10 }
0x3007   :  { %3191 = vrsqrt.f32 %v2699_v15  ;;  %vm2708_vm13 = vmor %vm2706_vm12, %vm2707_vm11  ;;  %vm2716_vm15 = vweird.f32 %v2699_v15 }
0x3008   :  { %v2702_v29 = vmul.f32 %v3190_v10, %v2701_v49 }
0x300a   :  { %v2703_v28 = vmul.f32 0.5, %v2702_v29 }
0x300c   :  { %v2704_v27 = vsub.f32 1.5, %v2703_v28 }
0x300d   :  { %v3192_v63 = vpop.eup %3191 }
0x300e   :  { %v2705_v7 = vmul.f32 %v3190_v10, %v2704_v27  ;;  %v2711_v17 = vmul.f32 %v3192_v63, %v2699_v15  ;;  %vm2717_vm14 = vweird.f32 %v3192_v63 }
0x300f   :  { %vm2718_vm1 = vmor %vm2716_vm15, %vm2717_vm14 }
0x3010   :  { %v2712_v39 = vmul.f32 %v3192_v63, %v2711_v17  ;;  %v2709_v38 = vsel %vm2708_vm13, %v3190_v10, %v2705_v7 }
0x3011   :  { %v2720_v0 = vmul.f32 %v2709_v38, %v2686_v8 }
0x3012   :  { %v2713_v54 = vmul.f32 0.5, %v2712_v39 }
0x3013   :  { %v2722_v57 = vmul.f32 %v2720_v0, %v3663_v56 }
0x3014   :  { %v2714_v58 = vsub.f32 1.5, %v2713_v54 }
0x3015   :  { %v2724_v22 = vadd.f32 %v2722_v57, %v3671_v19 }
0x3016   :  { %v2715_v55 = vmul.f32 %v3192_v63, %v2714_v58 }
0x3018   :  { %v2719_v31 = vsel %vm2718_vm1, %v3192_v63, %v2715_v55 }
0x3019   :  { %v2721_v18 = vmul.f32 %v2719_v31, %v2687_v25 }
0x301b   :  { %v2723_v42 = vmul.f32 %v2721_v18, %v3663_v56 }
0x301d   :  { %v2725_v40 = vadd.f32 %v2723_v42, %v3671_v19 }
0x301f   :  { %v2726_v36 = vpack.c.bf16 %v2725_v40, %v2724_v22 }
0x3021   :  { %2913 = vmatmul.msk.bf16.vlgmr.msra.gmra.mxu3 %vm135_vm0, %v2726_v36 }
0x30a4   :  { %v2739_v24 = vpop.f32.mrf.mxu3 }
0x30a5   :  { %v2740_v62 = vadd.f32 %v2739_v24, %v3686_v11 }
0x30a7   :  { %v2744_v41 = vmax.f32 %v2740_v62, 0.0 }
0x30ac   :  { %v2741_v12 = vpop.f32.mrf.mxu3 }
0x30ad   :  { %v2742_v26 = vadd.f32 %v2741_v12, %v3686_v11 }
0x30af   :  { %v2745_v45 = vmax.f32 %v2742_v26, 0.0 }
0x30b1   :  { %v2746_v51 = vpack.c.bf16 %v2745_v45, %v2744_v41 }
0x30b3   :  { %2914 = vmatmul.msk.bf16.vlgmr.msra.gmra.mxu2 %vm355_vm10, %v2746_v51 }
0x3136   :  { %v2759_v50 = vpop.f32.mrf.mxu2 }
0x3137   :  { %v2764_v56 = vadd.f32 %v2759_v50, %v4516_v16 }
0x3139   :  { %v2766_v32 = vadd.f32 %v2764_v56, %v3691_v33 }
0x313b   :  { %v2768_v19 = vsel %vm135_vm0, %v2766_v32, 0.0 }
0x313c   :  { %2769 = vadd.xlane.f32.xlu0 %v2768_v19 }
0x313e   :  { %v2761_v14 = vpop.f32.mrf.mxu2 }
0x313f   :  { %v2765_v34 = vadd.f32 %v2761_v14, %v4522_v9 }
0x3141   :  { %v2767_v48 = vadd.f32 %v2765_v34, %v3691_v33  ;;  %v4638_v33 = vld [vmem:[#allocation11_spill] sm:$0xff] }
0x3142   :  { %v2812_v60 = vperm.slane %v4638_v33, 3 }
0x3143   :  { %v2771_v11 = vsel %vm135_vm0, %v2767_v48, 0.0 }
0x3144   :  { %2772 = vadd.xlane.f32.xlu1 %v2771_v11 }
0x31af   :  { %v2770_v37 = vpop.xlane.xlu0 %2769 }
0x31b0   :  { %v2774_v52 = vmul.f32 %v2770_v37, %v3338_v13 }
0x31b2   :  { %v2776_v21 = vsub.f32 %v2766_v32, %v2774_v52 }
0x31b4   :  { %v2778_v6 = vmul.f32 %v2776_v21, %v2776_v21 }
0x31b6   :  { %v2780_v16 = vsel %vm135_vm0, %v2778_v6, 0.0 }
0x31b7   :  { %2781 = vadd.xlane.f32.xlu0 %v2780_v16  ;;  %v2773_v3 = vpop.xlane.xlu1 %2772 }
0x31b8   :  { %v2775_v53 = vmul.f32 %v2773_v3, %v3338_v13 }
0x31ba   :  { %v2777_v46 = vsub.f32 %v2767_v48, %v2775_v53 }
0x31bc   :  { %v2779_v35 = vmul.f32 %v2777_v46, %v2777_v46 }
0x31be   :  { %v2783_v9 = vsel %vm135_vm0, %v2779_v35, 0.0 }
0x31bf   :  { %2784 = vadd.xlane.f32.xlu1 %v2783_v9 }
0x31cb   :  { %2816 = vrot.lane.b32.xlu0 %v2812_v60, %s3290_s1 }
0x322a   :  { %v2782_v44 = vpop.xlane.xlu0 %2781 }
0x322b   :  { %v2786_v8 = vmul.f32 %v2782_v44, %v3338_v13 }
0x322d   :  { %v2788_v5 = vadd.f32 1e-05, %v2786_v8 }
0x322f   :  { %3193 = vrsqrt.f32 %v2788_v5  ;;  %vm2796_vm3 = vweird.f32 %v2788_v5 }
0x3232   :  { %v2785_v4 = vpop.xlane.xlu1 %2784 }
0x3233   :  { %v2787_v20 = vmul.f32 %v2785_v4, %v3338_v13 }
0x3235   :  { %v3194_v43 = vpop.eup %3193  ;;  %v2789_v25 = vadd.f32 1e-05, %v2787_v20 }
0x3236   :  { %v2791_v61 = vmul.f32 %v3194_v43, %v2788_v5  ;;  %vm2797_vm10 = vweird.f32 %v3194_v43 }
0x3237   :  { %3195 = vrsqrt.f32 %v2789_v25  ;;  %vm2798_vm4 = vmor %vm2796_vm3, %vm2797_vm10  ;;  %vm2806_vm5 = vweird.f32 %v2789_v25 }
0x3238   :  { %v2792_v30 = vmul.f32 %v3194_v43, %v2791_v61 }
0x323a   :  { %v2793_v47 = vmul.f32 0.5, %v2792_v30 }
0x323c   :  { %v2794_v23 = vsub.f32 1.5, %v2793_v47 }
0x323d   :  { %v3196_v59 = vpop.eup %3195  ;;  %v2817_v28 = vpop.permute.xlu0 %2816 }
0x323e   :  { %v2801_v1 = vmul.f32 %v3196_v59, %v2789_v25  ;;  %v2795_v2 = vmul.f32 %v3194_v43, %v2794_v23  ;;  %vm2807_vm2 = vweird.f32 %v3196_v59 }
0x323f   :  { %vm2808_vm6 = vmor %vm2806_vm5, %vm2807_vm2 }
0x3240   :  { %v2802_v10 = vmul.f32 %v3196_v59, %v2801_v1  ;;  %v2799_v15 = vsel %vm2798_vm4, %v3194_v43, %v2795_v2 }
0x3241   :  { %v2810_v49 = vmul.f32 %v2799_v15, %v2776_v21 }
0x3242   :  { %v2803_v29 = vmul.f32 0.5, %v2802_v10 }
0x3243   :  { %v2813_v27 = vmul.f32 %v2812_v60, %v2810_v49 }
0x3244   :  { %v2804_v13 = vsub.f32 1.5, %v2803_v29 }
0x3245   :  { %v2819_v63 = vadd.f32 %v2817_v28, %v2813_v27 }
0x3246   :  { %v2805_v7 = vmul.f32 %v3196_v59, %v2804_v13 }
0x3247   :  { %2821 = vst.msk [vmem:[#allocation7] sm:$0xff] %vm135_vm0, %v2819_v63 }
0x3248   :  { %v2809_v17 = vsel %vm2808_vm6, %v3196_v59, %v2805_v7 }
0x3249   :  { %v2811_v39 = vmul.f32 %v2809_v17, %v2777_v46 }
0x324b   :  { %v2814_v38 = vmul.f32 %v2812_v60, %v2811_v39 }
0x324d   :  { %v2820_v54 = vadd.f32 %v2817_v28, %v2814_v38 }
0x324f   :  { %2822 = vst.msk [vmem:[#allocation7 + $0x8] sm:$0xff] %vm135_vm0, %v2820_v54 }
0x3250   :  { %2835 = dma.vmem_to_hbm [thread:$0]  %s2828_s26, 256, %s2830_s29, [#allocation4], %s3284_s17, %s3284_s17, %s3285_s18  }
0x3251   :  { %3281 = dma.done.wait [#allocation4], 256  }
0x3252   :  { %3282 = vsyncadd [#allocation4], 4294967040 }
0x3253   :  { %2840 = vsyncpa [#allocation3], 1 }
0x3254   :  { %2841 = vsyncpa [#allocation6], 1 }
0x3255   :  { %2842 = vsyncpa [#allocation4], 1 }

</bundles_post_ra>
